<compile_context>
chip_gen: v7x
topology: tpu7x:2x2x1
jax: 0.10.0
libtpu: 0.0.40
codegen_flags: <defaults>
</compile_context>

<pallas_src>
import jax
import jax.numpy as jnp
from jax.experimental import pallas as pl
from jax.experimental.pallas import tpu as pltpu

NEG_SLOPE = 0.01                 # nn.LeakyReLU default
BN_EPS = 1e-5                    # nn.BatchNorm2d default
FILTER_LEN = 5                   # _DenseFilter filter_len
MATMUL_DTYPE = jnp.bfloat16      # MXU operand dtype (set to jnp.float32 to disable)
TILE_T = 512                     # time tile (lane axis); only matters for long signals
                                 # (halve on v7x / raise vmem_limit_bytes for big shapes)


def _leaky_relu(x):
    return jnp.where(x >= 0, x, NEG_SLOPE * x)


# ----------------------------- fused Pallas kernel -----------------------------

def _make_fused_kernel(depth, in_ch, growth, collapse):
    """Build the fused _DenseSpatialFilter kernel for a static configuration."""
    G = growth
    n_in = depth * 6 + (3 if collapse else 0)

    def kernel(x_ref, *refs):
        params = refs[:n_in]
        o_ref = refs[n_in]
        feat = refs[n_in + 1]                     # VMEM scratch (n_filters, C, Tt), f32
        C, Tt = feat.shape[1], feat.shape[2]

        # Load the input channels into the VMEM-resident feature stack.
        feat[pl.ds(0, in_ch), :, :] = x_ref[0].astype(jnp.float32)

        off = in_ch
        for d in range(depth):                    # static unroll over dense layers
            s1, t1, w1, sh1, w2f, b2 = params[d * 6:(d + 1) * 6]
            F = in_ch + growth * d

            # BatchNorm2d (inference, folded) -> LeakyReLU
            h = feat[pl.ds(0, F), :, :] * s1[...] + t1[...]
            h = _leaky_relu(h)

            # 1x1 Conv2d with BN2 scale folded into w1 and (bias, BN2 shift) in sh1,
            # then LeakyReLU.  (Bo, F) x (F, C, Tt) -> (Bo, C, Tt) on the MXU.
            h = jax.lax.dot_general(
                w1[...], h.astype(w1.dtype), (((1,), (0,)), ((), ())),
                preferred_element_type=jnp.float32) + sh1[...]
            h = _leaky_relu(h)

            # (5,1) Conv2d along the electrode axis, padding (2,0): one MXU push for
            # all 5 taps (w2 flattened to (5*G, Bo)), then zero-filled sublane shifts
            # of the small (G, C, Tt) tap outputs realize the +/-1, +/-2 offsets.
            y = jax.lax.dot_general(
                w2f[...], h.astype(w2f.dtype), (((1,), (0,)), ((), ())),
                preferred_element_type=jnp.float32)            # (5*G, C, Tt)
            acc = y[2 * G:3 * G]                                # center tap: no shift
            for k in (0, 1, 3, 4):
                yk = y[k * G:(k + 1) * G]                       # (G, C, Tt)
                s = 2 - k                                       # out[c] += y_k[c - s]
                if s > 0:
                    zk = jnp.concatenate(
                        [jnp.zeros((G, s, Tt), jnp.float32), yk[:, :C - s, :]], axis=1)
                else:
                    zk = jnp.concatenate(
                        [yk[:, -s:, :], jnp.zeros((G, -s, Tt), jnp.float32)], axis=1)
                acc = acc + zk

            # Dropout2d: identity in eval mode.  Append the G new channels in place.
            feat[pl.ds(off, G), :, :] = acc + b2[...]
            off += G

        if collapse:
            wc, sc, tc = params[depth * 6:depth * 6 + 3]
            nf = feat.shape[0]
            # _ConvBlock2D: Conv2d kernel (in_chans, 1), bias=False -> contract over
            # (channel, electrode); then Dropout(0) -> LeakyReLU -> BatchNorm2d.
            xf = feat[...].reshape(nf * C, Tt).astype(wc.dtype)
            yc = jnp.dot(wc[...], xf, preferred_element_type=jnp.float32)   # (nf, Tt)
            yc = _leaky_relu(yc)
            yc = yc * sc[...] + tc[...]
            o_ref[0] = yc.astype(o_ref.dtype)      # .squeeze(-2) already implicit
        else:
            o_ref[0] = feat[...].astype(o_ref.dtype)

    return kernel


def dense_spatial_filter_forward(x, params, collapse=True):
    """Fused forward pass of _DenseSpatialFilter (eval mode)."""
    if x.ndim < 4:
        # matches torch: x.unsqueeze(1).permute([0, 1, 3, 2])
        x = jnp.transpose(x[:, None, :, :], (0, 1, 3, 2))
    B, in_ch, C, T = x.shape
    cfg = params["cfg"]
    depth, growth = cfg["depth"], cfg["growth"]
    n_filters = in_ch + growth * depth

    flat = []
    for lp in params["dense"]:
        flat.extend(lp)
    if collapse:
        flat.extend(params["collapse"])

    tt = T if T <= TILE_T else TILE_T
    grid = (B, pl.cdiv(T, tt))

    def _full_spec(a):
        return pl.BlockSpec(a.shape, lambda b, t, _nd=a.ndim: (0,) * _nd)

    in_specs = [pl.BlockSpec((1, in_ch, C, tt), lambda b, t: (b, 0, 0, t))]
    in_specs += [_full_spec(a) for a in flat]
    if collapse:
        out_shape = jax.ShapeDtypeStruct((B, n_filters, T), x.dtype)
        out_specs = pl.BlockSpec((1, n_filters, tt), lambda b, t: (b, 0, t))
    else:
        out_shape = jax.ShapeDtypeStruct((B, n_filters, C, T), x.dtype)
        out_specs = pl.BlockSpec((1, n_filters, C, tt), lambda b, t: (b, 0, 0, t))

    kernel = _make_fused_kernel(depth, in_ch, growth, collapse)
    return pl.pallas_call(
        kernel,
        out_shape=out_shape,
        grid=grid,
        in_specs=in_specs,
        out_specs=out_specs,
        # Whole dense feature stack stays resident in VMEM across the cascade.
        scratch_shapes=[pltpu.VMEM((n_filters, C, tt), jnp.float32)],
        compiler_params=pltpu.CompilerParams(
            dimension_semantics=("parallel", "parallel")),
    )(x, *flat)


# ----------------------------- parameters -----------------------------

def init_dense_spatial_filter(key, in_chans, growth, depth, in_ch=1, bottleneck=4):
    """Random parameters in PyTorch-module form (inference / eval mode)."""
    Bo, G = bottleneck * growth, growth
    keys = jax.random.split(key, depth + 1)

    def rand_bn(k, n):
        ks = jax.random.split(k, 4)
        gamma = 1.0 + 0.1 * jax.random.normal(ks[0], (n,), jnp.float32)
        beta = 0.1 * jax.random.normal(ks[1], (n,), jnp.float32)
        mean = 0.05 * jax.random.normal(ks[2], (n,), jnp.float32)
        var = 1.0 + 0.1 * jax.random.uniform(ks[3], (n,), jnp.float32)
        return gamma, beta, mean, var

    dense = []
    for d in range(depth):
        F = in_ch + growth * d
        k = jax.random.split(keys[d], 6)
        dense.append({
            "bn1": rand_bn(k[0], F),
            "w1": 0.3 * jax.random.normal(k[1], (Bo, F), jnp.float32),   # Conv2d 1x1
            "b1": 0.1 * jax.random.normal(k[2], (Bo,), jnp.float32),
            "bn2": rand_bn(k[3], Bo),
            "w2": 0.15 * jax.random.normal(k[4], (G, Bo, FILTER_LEN), jnp.float32),
            "b2": 0.1 * jax.random.normal(k[5], (G,), jnp.float32),
        })
    nf = in_ch + growth * depth
    kc = jax.random.split(keys[depth], 2)
    collapse = {"w": 0.1 * jax.random.normal(kc[0], (nf, nf, in_chans), jnp.float32),
                "bn": rand_bn(kc[1], nf)}
    return {"cfg": {"in_chans": in_chans, "growth": growth, "depth": depth,
                    "in_ch": in_ch, "bottleneck": bottleneck},
            "dense": dense, "collapse": collapse}


def _bn_scale_shift(bn):
    g, b, m, v = bn
    s = g / jnp.sqrt(v + BN_EPS)
    return s, b - m * s


def prepare_params(raw):
    """Fold inference BN + biases into kernel-ready tensors; cast MXU weights."""
    dense = []
    for lp in raw["dense"]:
        Bo, F = lp["w1"].shape
        G = lp["w2"].shape[0]
        s1, t1 = _bn_scale_shift(lp["bn1"])
        s2, t2 = _bn_scale_shift(lp["bn2"])
        w1s = (s2[:, None] * lp["w1"]).astype(MATMUL_DTYPE)          # fold BN2 scale
        sh1 = (s2 * lp["b1"] + t2).reshape(Bo, 1, 1)                 # bias + BN2 shift
        # (G, Bo, 5) -> (5, G, Bo) -> (5*G, Bo): one MXU push for all 5 taps
        w2f = jnp.transpose(lp["w2"], (2, 0, 1)).reshape(FILTER_LEN * G, Bo)
        dense.append((s1.reshape(F, 1, 1), t1.reshape(F, 1, 1),
                      w1s, sh1, w2f.astype(MATMUL_DTYPE),
                      lp["b2"].reshape(G, 1, 1)))
    out = {"cfg": raw["cfg"], "dense": dense, "collapse": None}
    if raw.get("collapse") is not None:
        nf, _, C = raw["collapse"]["w"].shape
        sc, tc = _bn_scale_shift(raw["collapse"]["bn"])
        wc = raw["collapse"]["w"].reshape(nf, nf * C).astype(MATMUL_DTYPE)
        out["collapse"] = (wc, sc.reshape(nf, 1), tc.reshape(nf, 1))
    return out


# ----------------------------- pure-JAX reference -----------------------------

def _bn_apply(x, bn, axis=1):
    g, b, m, v = bn
    shp = [1] * x.ndim
    shp[axis] = -1
    return ((x - m.reshape(shp)) / jnp.sqrt(v.reshape(shp) + BN_EPS)
            * g.reshape(shp) + b.reshape(shp))


def reference_forward(x, raw, collapse=True):
    """Op-for-op JAX port of the PyTorch module (eval mode), from raw params."""
    if x.ndim < 4:
        x = jnp.transpose(x[:, None, :, :], (0, 1, 3, 2))
    for lp in raw["dense"]:
        C = x.shape[2]
        h = _bn_apply(x, lp["bn1"])                                   # BatchNorm2d
        h = _leaky_relu(h)                                            # LeakyReLU
        h = jnp.einsum("of,bfct->boct", lp["w1"], h) \
            + lp["b1"][None, :, None, None]                           # Conv2d 1x1
        h = _bn_apply(h, lp["bn2"])                                   # BatchNorm2d
        h = _leaky_relu(h)                                            # LeakyReLU
        z = jnp.pad(h, ((0, 0), (0, 0), (2, 2), (0, 0)))              # Conv2d (5,1)
        out = sum(jnp.einsum("gi,bict->bgct", lp["w2"][:, :, k], z[:, :, k:k + C, :])
                  for k in range(FILTER_LEN)) + lp["b2"][None, :, None, None]
        # Dropout2d: identity in eval mode
        x = jnp.concatenate([x, out], axis=1)                         # torch.cat dim=1
    if not collapse:
        return x
    cp = raw["collapse"]
    y = jnp.einsum("oic,bict->bot", cp["w"], x)     # Conv2d (in_chans,1), bias=False
    y = _leaky_relu(y)                              # Dropout(0) -> LeakyReLU
    y = _bn_apply(y, cp["bn"], axis=1)              # BatchNorm2d, then squeeze(-2)
    return y


# ----------------------------- demo / self-check -----------------------------

if __name__ == "__main__":
    in_chans, growth, depth, in_ch, bottleneck = 16, 4, 2, 1, 4
    B, T = 2, 128
    key = jax.random.PRNGKey(0)
    kp, kx = jax.random.split(key)

    raw = init_dense_spatial_filter(kp, in_chans, growth, depth, in_ch, bottleneck)
    params = prepare_params(raw)
    x = jax.random.normal(kx, (B, in_ch, in_chans, T), jnp.float32)

    y = jax.block_until_ready(dense_spatial_filter_forward(x, params))
    n_filters = in_ch + growth * depth
    assert y.shape == (B, n_filters, T), y.shape

    # Tolerance accounts for bf16 MXU operands (f32 accumulation) vs the f32 reference.
    y_ref = reference_forward(x, raw)
    assert jnp.allclose(y, y_ref, atol=5e-2, rtol=5e-2), "mismatch vs JAX reference"
    print("KERNEL_OK")
</pallas_src>

<mosaic_0001>
module attributes {stable_mosaic.version = 11 : i64} {
  func.func @kernel(%arg0: i32, %arg1: i32, %arg2: memref<1x1x16x128xf32, #tpu.memory_space<vmem>>, %arg3: memref<1x1x1xf32, #tpu.memory_space<vmem>>, %arg4: memref<1x1x1xf32, #tpu.memory_space<vmem>>, %arg5: memref<16x1xbf16, #tpu.memory_space<vmem>>, %arg6: memref<16x1x1xf32, #tpu.memory_space<vmem>>, %arg7: memref<20x16xbf16, #tpu.memory_space<vmem>>, %arg8: memref<4x1x1xf32, #tpu.memory_space<vmem>>, %arg9: memref<5x1x1xf32, #tpu.memory_space<vmem>>, %arg10: memref<5x1x1xf32, #tpu.memory_space<vmem>>, %arg11: memref<16x5xbf16, #tpu.memory_space<vmem>>, %arg12: memref<16x1x1xf32, #tpu.memory_space<vmem>>, %arg13: memref<20x16xbf16, #tpu.memory_space<vmem>>, %arg14: memref<4x1x1xf32, #tpu.memory_space<vmem>>, %arg15: memref<9x144xbf16, #tpu.memory_space<vmem>>, %arg16: memref<9x1xf32, #tpu.memory_space<vmem>>, %arg17: memref<9x1xf32, #tpu.memory_space<vmem>>, %arg18: memref<1x9x128xf32, #tpu.memory_space<vmem>>, %arg19: memref<9x16x128xf32, #tpu.memory_space<vmem>>) attributes {dimension_semantics = [#tpu.dimension_semantics<parallel>, #tpu.dimension_semantics<parallel>], iteration_bounds = array<i64: 2, 1>, scalar_prefetch = 0 : i64, scratch_operands = 1 : i64, tpu.core_type = #tpu.core_type<tc>, window_params = [{transform_indices = @transform_0, window_bounds = array<i64: 1, 1, 16, 128>}, {pipeline_mode = #tpu.pipeline_mode<synchronous>, transform_indices = @transform_1, window_bounds = array<i64: 1, 1, 1>}, {pipeline_mode = #tpu.pipeline_mode<synchronous>, transform_indices = @transform_2, window_bounds = array<i64: 1, 1, 1>}, {pipeline_mode = #tpu.pipeline_mode<synchronous>, transform_indices = @transform_3, window_bounds = array<i64: 16, 1>}, {pipeline_mode = #tpu.pipeline_mode<synchronous>, transform_indices = @transform_4, window_bounds = array<i64: 16, 1, 1>}, {pipeline_mode = #tpu.pipeline_mode<synchronous>, transform_indices = @transform_5, window_bounds = array<i64: 20, 16>}, {pipeline_mode = #tpu.pipeline_mode<synchronous>, transform_indices = @transform_6, window_bounds = array<i64: 4, 1, 1>}, {pipeline_mode = #tpu.pipeline_mode<synchronous>, transform_indices = @transform_7, window_bounds = array<i64: 5, 1, 1>}, {pipeline_mode = #tpu.pipeline_mode<synchronous>, transform_indices = @transform_8, window_bounds = array<i64: 5, 1, 1>}, {pipeline_mode = #tpu.pipeline_mode<synchronous>, transform_indices = @transform_9, window_bounds = array<i64: 16, 5>}, {pipeline_mode = #tpu.pipeline_mode<synchronous>, transform_indices = @transform_10, window_bounds = array<i64: 16, 1, 1>}, {pipeline_mode = #tpu.pipeline_mode<synchronous>, transform_indices = @transform_11, window_bounds = array<i64: 20, 16>}, {pipeline_mode = #tpu.pipeline_mode<synchronous>, transform_indices = @transform_12, window_bounds = array<i64: 4, 1, 1>}, {pipeline_mode = #tpu.pipeline_mode<synchronous>, transform_indices = @transform_13, window_bounds = array<i64: 9, 144>}, {pipeline_mode = #tpu.pipeline_mode<synchronous>, transform_indices = @transform_14, window_bounds = array<i64: 9, 1>}, {pipeline_mode = #tpu.pipeline_mode<synchronous>, transform_indices = @transform_15, window_bounds = array<i64: 9, 1>}, {transform_indices = @transform_16, window_bounds = array<i64: 1, 9, 128>}]} {
    %c0 = arith.constant 0 : index
    %c0_0 = arith.constant 0 : index
    %c0_1 = arith.constant 0 : index
    %c0_2 = arith.constant 0 : index
    %0 = vector.load %arg2[%c0, %c0_0, %c0_1, %c0_2] : memref<1x1x16x128xf32, #tpu.memory_space<vmem>>, vector<1x1x16x128xf32>
    %1 = vector.shape_cast %0 : vector<1x1x16x128xf32> to vector<1x16x128xf32>
    %c0_3 = arith.constant 0 : index
    %c0_4 = arith.constant 0 : index
    %c0_5 = arith.constant 0 : index
    %2 = vector.load %arg19[%c0_3, %c0_4, %c0_5] : memref<9x16x128xf32, #tpu.memory_space<vmem>>, vector<1x16x128xf32>
    tpu.vector_store %arg19[%c0_3, %c0_4, %c0_5], %1 {strides = array<i32>} : memref<9x16x128xf32, #tpu.memory_space<vmem>>, vector<1x16x128xf32>,
    %c0_6 = arith.constant 0 : index
    %c0_7 = arith.constant 0 : index
    %c0_8 = arith.constant 0 : index
    %3 = vector.load %arg19[%c0_6, %c0_7, %c0_8] : memref<9x16x128xf32, #tpu.memory_space<vmem>>, vector<1x16x128xf32>
    %c0_9 = arith.constant 0 : index
    %c0_10 = arith.constant 0 : index
    %c0_11 = arith.constant 0 : index
    %4 = vector.load %arg3[%c0_9, %c0_10, %c0_11] : memref<1x1x1xf32, #tpu.memory_space<vmem>>, vector<1x1x1xf32>
    %5 = vector.broadcast %4 : vector<1x1x1xf32> to vector<1x16x128xf32>
    %6 = arith.mulf %3, %5 : vector<1x16x128xf32>
    %c0_12 = arith.constant 0 : index
    %c0_13 = arith.constant 0 : index
    %c0_14 = arith.constant 0 : index
    %7 = vector.load %arg4[%c0_12, %c0_13, %c0_14] : memref<1x1x1xf32, #tpu.memory_space<vmem>>, vector<1x1x1xf32>
    %8 = vector.broadcast %7 : vector<1x1x1xf32> to vector<1x16x128xf32>
    %9 = arith.addf %6, %8 : vector<1x16x128xf32>
    %cst = arith.constant 0.000000e+00 : f32
    %10 = vector.broadcast %cst : f32 to vector<1x16x128xf32>
    %11 = arith.cmpf oge, %9, %10 : vector<1x16x128xf32>
    %cst_15 = arith.constant 0.00999999977 : f32
    %12 = vector.broadcast %cst_15 : f32 to vector<1x16x128xf32>
    %13 = arith.mulf %12, %9 : vector<1x16x128xf32>
    %14 = arith.select %11, %9, %13 : vector<1x16x128xi1>, vector<1x16x128xf32>
    %c0_16 = arith.constant 0 : index
    %c0_17 = arith.constant 0 : index
    %15 = vector.load %arg5[%c0_16, %c0_17] : memref<16x1xbf16, #tpu.memory_space<vmem>>, vector<16x1xbf16>
    %16 = arith.truncf %14 : vector<1x16x128xf32> to vector<1x16x128xbf16>
    %cst_18 = arith.constant dense<0.000000e+00> : vector<16x16x128xf32>
    %17 = tpu.matmul %15, %16, %cst_18 {dimension_numbers = #tpu.dot_dimension_numbers<[1], [0], [0], [1, 2], [0, 0, 1, 1, 1, 2], [], []>} : vector<16x1xbf16>, vector<1x16x128xbf16>, vector<16x16x128xf32> -> vector<16x16x128xf32>
    %c0_19 = arith.constant 0 : index
    %c0_20 = arith.constant 0 : index
    %c0_21 = arith.constant 0 : index
    %18 = vector.load %arg6[%c0_19, %c0_20, %c0_21] : memref<16x1x1xf32, #tpu.memory_space<vmem>>, vector<16x1x1xf32>
    %19 = vector.broadcast %18 : vector<16x1x1xf32> to vector<16x16x128xf32>
    %20 = arith.addf %17, %19 : vector<16x16x128xf32>
    %cst_22 = arith.constant 0.000000e+00 : f32
    %21 = vector.broadcast %cst_22 : f32 to vector<16x16x128xf32>
    %22 = arith.cmpf oge, %20, %21 : vector<16x16x128xf32>
    %cst_23 = arith.constant 0.00999999977 : f32
    %23 = vector.broadcast %cst_23 : f32 to vector<16x16x128xf32>
    %24 = arith.mulf %23, %20 : vector<16x16x128xf32>
    %25 = arith.select %22, %20, %24 : vector<16x16x128xi1>, vector<16x16x128xf32>
    %c0_24 = arith.constant 0 : index
    %c0_25 = arith.constant 0 : index
    %26 = vector.load %arg7[%c0_24, %c0_25] : memref<20x16xbf16, #tpu.memory_space<vmem>>, vector<20x16xbf16>
    %27 = arith.truncf %25 : vector<16x16x128xf32> to vector<16x16x128xbf16>
    %cst_26 = arith.constant dense<0.000000e+00> : vector<20x16x128xf32>
    %28 = tpu.matmul %26, %27, %cst_26 {dimension_numbers = #tpu.dot_dimension_numbers<[1], [0], [0], [1, 2], [0, 0, 1, 1, 1, 2], [], []>} : vector<20x16xbf16>, vector<16x16x128xbf16>, vector<20x16x128xf32> -> vector<20x16x128xf32>
    %29 = vector.extract_strided_slice %28 {offsets = [8, 0, 0], sizes = [4, 16, 128], strides = [1, 1, 1]} : vector<20x16x128xf32> to vector<4x16x128xf32>
    %30 = vector.extract_strided_slice %28 {offsets = [0, 0, 0], sizes = [4, 16, 128], strides = [1, 1, 1]} : vector<20x16x128xf32> to vector<4x16x128xf32>
    %cst_27 = arith.constant 0.000000e+00 : f32
    %31 = vector.broadcast %cst_27 : f32 to vector<4x2x128xf32>
    %32 = vector.extract_strided_slice %30 {offsets = [0, 0, 0], sizes = [4, 14, 128], strides = [1, 1, 1]} : vector<4x16x128xf32> to vector<4x14x128xf32>
    %33 = tpu.concatenate %31, %32 in 1 : vector<4x2x128xf32>, vector<4x14x128xf32> -> vector<4x16x128xf32>
    %34 = arith.addf %29, %33 : vector<4x16x128xf32>
    %35 = vector.extract_strided_slice %28 {offsets = [4, 0, 0], sizes = [4, 16, 128], strides = [1, 1, 1]} : vector<20x16x128xf32> to vector<4x16x128xf32>
    %cst_28 = arith.constant 0.000000e+00 : f32
    %36 = vector.broadcast %cst_28 : f32 to vector<4x1x128xf32>
    %37 = vector.extract_strided_slice %35 {offsets = [0, 0, 0], sizes = [4, 15, 128], strides = [1, 1, 1]} : vector<4x16x128xf32> to vector<4x15x128xf32>
    %38 = tpu.concatenate %36, %37 in 1 : vector<4x1x128xf32>, vector<4x15x128xf32> -> vector<4x16x128xf32>
    %39 = arith.addf %34, %38 : vector<4x16x128xf32>
    %40 = vector.extract_strided_slice %28 {offsets = [12, 0, 0], sizes = [4, 16, 128], strides = [1, 1, 1]} : vector<20x16x128xf32> to vector<4x16x128xf32>
    %41 = vector.extract_strided_slice %40 {offsets = [0, 1, 0], sizes = [4, 15, 128], strides = [1, 1, 1]} : vector<4x16x128xf32> to vector<4x15x128xf32>
    %cst_29 = arith.constant 0.000000e+00 : f32
    %42 = vector.broadcast %cst_29 : f32 to vector<4x1x128xf32>
    %43 = tpu.concatenate %41, %42 in 1 : vector<4x15x128xf32>, vector<4x1x128xf32> -> vector<4x16x128xf32>
    %44 = arith.addf %39, %43 : vector<4x16x128xf32>
    %45 = vector.extract_strided_slice %28 {offsets = [16, 0, 0], sizes = [4, 16, 128], strides = [1, 1, 1]} : vector<20x16x128xf32> to vector<4x16x128xf32>
    %46 = vector.extract_strided_slice %45 {offsets = [0, 2, 0], sizes = [4, 14, 128], strides = [1, 1, 1]} : vector<4x16x128xf32> to vector<4x14x128xf32>
    %cst_30 = arith.constant 0.000000e+00 : f32
    %47 = vector.broadcast %cst_30 : f32 to vector<4x2x128xf32>
    %48 = tpu.concatenate %46, %47 in 1 : vector<4x14x128xf32>, vector<4x2x128xf32> -> vector<4x16x128xf32>
    %49 = arith.addf %44, %48 : vector<4x16x128xf32>
    %c0_31 = arith.constant 0 : index
    %c0_32 = arith.constant 0 : index
    %c0_33 = arith.constant 0 : index
    %50 = vector.load %arg8[%c0_31, %c0_32, %c0_33] : memref<4x1x1xf32, #tpu.memory_space<vmem>>, vector<4x1x1xf32>
    %51 = vector.broadcast %50 : vector<4x1x1xf32> to vector<4x16x128xf32>
    %52 = arith.addf %49, %51 : vector<4x16x128xf32>
    %c1 = arith.constant 1 : index
    %c0_34 = arith.constant 0 : index
    %c0_35 = arith.constant 0 : index
    %53 = vector.load %arg19[%c1, %c0_34, %c0_35] : memref<9x16x128xf32, #tpu.memory_space<vmem>>, vector<4x16x128xf32>
    tpu.vector_store %arg19[%c1, %c0_34, %c0_35], %52 {strides = array<i32>} : memref<9x16x128xf32, #tpu.memory_space<vmem>>, vector<4x16x128xf32>,
    %c0_36 = arith.constant 0 : index
    %c0_37 = arith.constant 0 : index
    %c0_38 = arith.constant 0 : index
    %54 = vector.load %arg19[%c0_36, %c0_37, %c0_38] : memref<9x16x128xf32, #tpu.memory_space<vmem>>, vector<5x16x128xf32>
    %c0_39 = arith.constant 0 : index
    %c0_40 = arith.constant 0 : index
    %c0_41 = arith.constant 0 : index
    %55 = vector.load %arg9[%c0_39, %c0_40, %c0_41] : memref<5x1x1xf32, #tpu.memory_space<vmem>>, vector<5x1x1xf32>
    %56 = vector.broadcast %55 : vector<5x1x1xf32> to vector<5x16x128xf32>
    %57 = arith.mulf %54, %56 : vector<5x16x128xf32>
    %c0_42 = arith.constant 0 : index
    %c0_43 = arith.constant 0 : index
    %c0_44 = arith.constant 0 : index
    %58 = vector.load %arg10[%c0_42, %c0_43, %c0_44] : memref<5x1x1xf32, #tpu.memory_space<vmem>>, vector<5x1x1xf32>
    %59 = vector.broadcast %58 : vector<5x1x1xf32> to vector<5x16x128xf32>
    %60 = arith.addf %57, %59 : vector<5x16x128xf32>
    %cst_45 = arith.constant 0.000000e+00 : f32
    %61 = vector.broadcast %cst_45 : f32 to vector<5x16x128xf32>
    %62 = arith.cmpf oge, %60, %61 : vector<5x16x128xf32>
    %cst_46 = arith.constant 0.00999999977 : f32
    %63 = vector.broadcast %cst_46 : f32 to vector<5x16x128xf32>
    %64 = arith.mulf %63, %60 : vector<5x16x128xf32>
    %65 = arith.select %62, %60, %64 : vector<5x16x128xi1>, vector<5x16x128xf32>
    %c0_47 = arith.constant 0 : index
    %c0_48 = arith.constant 0 : index
    %66 = vector.load %arg11[%c0_47, %c0_48] : memref<16x5xbf16, #tpu.memory_space<vmem>>, vector<16x5xbf16>
    %67 = arith.truncf %65 : vector<5x16x128xf32> to vector<5x16x128xbf16>
    %cst_49 = arith.constant dense<0.000000e+00> : vector<16x16x128xf32>
    %68 = tpu.matmul %66, %67, %cst_49 {dimension_numbers = #tpu.dot_dimension_numbers<[1], [0], [0], [1, 2], [0, 0, 1, 1, 1, 2], [], []>} : vector<16x5xbf16>, vector<5x16x128xbf16>, vector<16x16x128xf32> -> vector<16x16x128xf32>
    %c0_50 = arith.constant 0 : index
    %c0_51 = arith.constant 0 : index
    %c0_52 = arith.constant 0 : index
    %69 = vector.load %arg12[%c0_50, %c0_51, %c0_52] : memref<16x1x1xf32, #tpu.memory_space<vmem>>, vector<16x1x1xf32>
    %70 = vector.broadcast %69 : vector<16x1x1xf32> to vector<16x16x128xf32>
    %71 = arith.addf %68, %70 : vector<16x16x128xf32>
    %cst_53 = arith.constant 0.000000e+00 : f32
    %72 = vector.broadcast %cst_53 : f32 to vector<16x16x128xf32>
    %73 = arith.cmpf oge, %71, %72 : vector<16x16x128xf32>
    %cst_54 = arith.constant 0.00999999977 : f32
    %74 = vector.broadcast %cst_54 : f32 to vector<16x16x128xf32>
    %75 = arith.mulf %74, %71 : vector<16x16x128xf32>
    %76 = arith.select %73, %71, %75 : vector<16x16x128xi1>, vector<16x16x128xf32>
    %c0_55 = arith.constant 0 : index
    %c0_56 = arith.constant 0 : index
    %77 = vector.load %arg13[%c0_55, %c0_56] : memref<20x16xbf16, #tpu.memory_space<vmem>>, vector<20x16xbf16>
    %78 = arith.truncf %76 : vector<16x16x128xf32> to vector<16x16x128xbf16>
    %cst_57 = arith.constant dense<0.000000e+00> : vector<20x16x128xf32>
    %79 = tpu.matmul %77, %78, %cst_57 {dimension_numbers = #tpu.dot_dimension_numbers<[1], [0], [0], [1, 2], [0, 0, 1, 1, 1, 2], [], []>} : vector<20x16xbf16>, vector<16x16x128xbf16>, vector<20x16x128xf32> -> vector<20x16x128xf32>
    %80 = vector.extract_strided_slice %79 {offsets = [8, 0, 0], sizes = [4, 16, 128], strides = [1, 1, 1]} : vector<20x16x128xf32> to vector<4x16x128xf32>
    %81 = vector.extract_strided_slice %79 {offsets = [0, 0, 0], sizes = [4, 16, 128], strides = [1, 1, 1]} : vector<20x16x128xf32> to vector<4x16x128xf32>
    %cst_58 = arith.constant 0.000000e+00 : f32
    %82 = vector.broadcast %cst_58 : f32 to vector<4x2x128xf32>
    %83 = vector.extract_strided_slice %81 {offsets = [0, 0, 0], sizes = [4, 14, 128], strides = [1, 1, 1]} : vector<4x16x128xf32> to vector<4x14x128xf32>
    %84 = tpu.concatenate %82, %83 in 1 : vector<4x2x128xf32>, vector<4x14x128xf32> -> vector<4x16x128xf32>
    %85 = arith.addf %80, %84 : vector<4x16x128xf32>
    %86 = vector.extract_strided_slice %79 {offsets = [4, 0, 0], sizes = [4, 16, 128], strides = [1, 1, 1]} : vector<20x16x128xf32> to vector<4x16x128xf32>
    %cst_59 = arith.constant 0.000000e+00 : f32
    %87 = vector.broadcast %cst_59 : f32 to vector<4x1x128xf32>
    %88 = vector.extract_strided_slice %86 {offsets = [0, 0, 0], sizes = [4, 15, 128], strides = [1, 1, 1]} : vector<4x16x128xf32> to vector<4x15x128xf32>
    %89 = tpu.concatenate %87, %88 in 1 : vector<4x1x128xf32>, vector<4x15x128xf32> -> vector<4x16x128xf32>
    %90 = arith.addf %85, %89 : vector<4x16x128xf32>
    %91 = vector.extract_strided_slice %79 {offsets = [12, 0, 0], sizes = [4, 16, 128], strides = [1, 1, 1]} : vector<20x16x128xf32> to vector<4x16x128xf32>
    %92 = vector.extract_strided_slice %91 {offsets = [0, 1, 0], sizes = [4, 15, 128], strides = [1, 1, 1]} : vector<4x16x128xf32> to vector<4x15x128xf32>
    %cst_60 = arith.constant 0.000000e+00 : f32
    %93 = vector.broadcast %cst_60 : f32 to vector<4x1x128xf32>
    %94 = tpu.concatenate %92, %93 in 1 : vector<4x15x128xf32>, vector<4x1x128xf32> -> vector<4x16x128xf32>
    %95 = arith.addf %90, %94 : vector<4x16x128xf32>
    %96 = vector.extract_strided_slice %79 {offsets = [16, 0, 0], sizes = [4, 16, 128], strides = [1, 1, 1]} : vector<20x16x128xf32> to vector<4x16x128xf32>
    %97 = vector.extract_strided_slice %96 {offsets = [0, 2, 0], sizes = [4, 14, 128], strides = [1, 1, 1]} : vector<4x16x128xf32> to vector<4x14x128xf32>
    %cst_61 = arith.constant 0.000000e+00 : f32
    %98 = vector.broadcast %cst_61 : f32 to vector<4x2x128xf32>
    %99 = tpu.concatenate %97, %98 in 1 : vector<4x14x128xf32>, vector<4x2x128xf32> -> vector<4x16x128xf32>
    %100 = arith.addf %95, %99 : vector<4x16x128xf32>
    %c0_62 = arith.constant 0 : index
    %c0_63 = arith.constant 0 : index
    %c0_64 = arith.constant 0 : index
    %101 = vector.load %arg14[%c0_62, %c0_63, %c0_64] : memref<4x1x1xf32, #tpu.memory_space<vmem>>, vector<4x1x1xf32>
    %102 = vector.broadcast %101 : vector<4x1x1xf32> to vector<4x16x128xf32>
    %103 = arith.addf %100, %102 : vector<4x16x128xf32>
    %c5 = arith.constant 5 : index
    %c0_65 = arith.constant 0 : index
    %c0_66 = arith.constant 0 : index
    %104 = vector.load %arg19[%c5, %c0_65, %c0_66] : memref<9x16x128xf32, #tpu.memory_space<vmem>>, vector<4x16x128xf32>
    tpu.vector_store %arg19[%c5, %c0_65, %c0_66], %103 {strides = array<i32>} : memref<9x16x128xf32, #tpu.memory_space<vmem>>, vector<4x16x128xf32>,
    %c0_67 = arith.constant 0 : index
    %c0_68 = arith.constant 0 : index
    %c0_69 = arith.constant 0 : index
    %105 = vector.load %arg19[%c0_67, %c0_68, %c0_69] : memref<9x16x128xf32, #tpu.memory_space<vmem>>, vector<9x16x128xf32>
    %106 = vector.shape_cast %105 : vector<9x16x128xf32> to vector<144x128xf32>
    %107 = arith.truncf %106 : vector<144x128xf32> to vector<144x128xbf16>
    %c0_70 = arith.constant 0 : index
    %c0_71 = arith.constant 0 : index
    %108 = vector.load %arg15[%c0_70, %c0_71] : memref<9x144xbf16, #tpu.memory_space<vmem>>, vector<9x144xbf16>
    %cst_72 = arith.constant dense<0.000000e+00> : vector<9x128xf32>
    %109 = tpu.matmul %108, %107, %cst_72 {dimension_numbers = #tpu.dot_dimension_numbers<[1], [0], [0], [1], [0, 0, 1, 1], [], []>} : vector<9x144xbf16>, vector<144x128xbf16>, vector<9x128xf32> -> vector<9x128xf32>
    %cst_73 = arith.constant 0.000000e+00 : f32
    %110 = vector.broadcast %cst_73 : f32 to vector<9x128xf32>
    %111 = arith.cmpf oge, %109, %110 : vector<9x128xf32>
    %cst_74 = arith.constant 0.00999999977 : f32
    %112 = vector.broadcast %cst_74 : f32 to vector<9x128xf32>
    %113 = arith.mulf %112, %109 : vector<9x128xf32>
    %114 = arith.select %111, %109, %113 : vector<9x128xi1>, vector<9x128xf32>
    %c0_75 = arith.constant 0 : index
    %c0_76 = arith.constant 0 : index
    %115 = vector.load %arg16[%c0_75, %c0_76] : memref<9x1xf32, #tpu.memory_space<vmem>>, vector<9x1xf32>
    %116 = vector.broadcast %115 : vector<9x1xf32> to vector<9x128xf32>
    %117 = arith.mulf %114, %116 : vector<9x128xf32>
    %c0_77 = arith.constant 0 : index
    %c0_78 = arith.constant 0 : index
    %118 = vector.load %arg17[%c0_77, %c0_78] : memref<9x1xf32, #tpu.memory_space<vmem>>, vector<9x1xf32>
    %119 = vector.broadcast %118 : vector<9x1xf32> to vector<9x128xf32>
    %120 = arith.addf %117, %119 : vector<9x128xf32>
    %c0_79 = arith.constant 0 : index
    %c0_80 = arith.constant 0 : index
    %c0_81 = arith.constant 0 : index
    %121 = vector.load %arg18[%c0_79, %c0_80, %c0_81] : memref<1x9x128xf32, #tpu.memory_space<vmem>>, vector<1x9x128xf32>
    %122 = vector.shape_cast %121 : vector<1x9x128xf32> to vector<9x128xf32>
    %123 = vector.shape_cast %120 : vector<9x128xf32> to vector<1x9x128xf32>
    tpu.vector_store %arg18[%c0_79, %c0_80, %c0_81], %123 {strides = array<i32>} : memref<1x9x128xf32, #tpu.memory_space<vmem>>, vector<1x9x128xf32>,
    return
  }
  func.func @transform_0(%arg0: i32, %arg1: i32) -> (i32, i32, i32, i32) {
    %c0_i32 = arith.constant 0 : i32
    %c0_i32_0 = arith.constant 0 : i32
    %c0_i32_1 = arith.constant 0 : i32
    return %arg0, %c0_i32, %c0_i32_0, %arg1 : i32, i32, i32, i32
  }
  func.func @transform_1(%arg0: i32, %arg1: i32) -> (i32, i32, i32) {
    %c0_i32 = arith.constant 0 : i32
    %c0_i32_0 = arith.constant 0 : i32
    %c0_i32_1 = arith.constant 0 : i32
    %c0_i32_2 = arith.constant 0 : i32
    return %c0_i32, %c0_i32_0, %c0_i32_1 : i32, i32, i32
  }
  func.func @transform_2(%arg0: i32, %arg1: i32) -> (i32, i32, i32) {
    %c0_i32 = arith.constant 0 : i32
    %c0_i32_0 = arith.constant 0 : i32
    %c0_i32_1 = arith.constant 0 : i32
    %c0_i32_2 = arith.constant 0 : i32
    return %c0_i32, %c0_i32_0, %c0_i32_1 : i32, i32, i32
  }
  func.func @transform_3(%arg0: i32, %arg1: i32) -> (i32, i32) {
    %c0_i32 = arith.constant 0 : i32
    %c0_i32_0 = arith.constant 0 : i32
    %c0_i32_1 = arith.constant 0 : i32
    return %c0_i32, %c0_i32_0 : i32, i32
  }
  func.func @transform_4(%arg0: i32, %arg1: i32) -> (i32, i32, i32) {
    %c0_i32 = arith.constant 0 : i32
    %c0_i32_0 = arith.constant 0 : i32
    %c0_i32_1 = arith.constant 0 : i32
    %c0_i32_2 = arith.constant 0 : i32
    return %c0_i32, %c0_i32_0, %c0_i32_1 : i32, i32, i32
  }
  func.func @transform_5(%arg0: i32, %arg1: i32) -> (i32, i32) {
    %c0_i32 = arith.constant 0 : i32
    %c0_i32_0 = arith.constant 0 : i32
    %c0_i32_1 = arith.constant 0 : i32
    return %c0_i32, %c0_i32_0 : i32, i32
  }
  func.func @transform_6(%arg0: i32, %arg1: i32) -> (i32, i32, i32) {
    %c0_i32 = arith.constant 0 : i32
    %c0_i32_0 = arith.constant 0 : i32
    %c0_i32_1 = arith.constant 0 : i32
    %c0_i32_2 = arith.constant 0 : i32
    return %c0_i32, %c0_i32_0, %c0_i32_1 : i32, i32, i32
  }
  func.func @transform_7(%arg0: i32, %arg1: i32) -> (i32, i32, i32) {
    %c0_i32 = arith.constant 0 : i32
    %c0_i32_0 = arith.constant 0 : i32
    %c0_i32_1 = arith.constant 0 : i32
    %c0_i32_2 = arith.constant 0 : i32
    return %c0_i32, %c0_i32_0, %c0_i32_1 : i32, i32, i32
  }
  func.func @transform_8(%arg0: i32, %arg1: i32) -> (i32, i32, i32) {
    %c0_i32 = arith.constant 0 : i32
    %c0_i32_0 = arith.constant 0 : i32
    %c0_i32_1 = arith.constant 0 : i32
    %c0_i32_2 = arith.constant 0 : i32
    return %c0_i32, %c0_i32_0, %c0_i32_1 : i32, i32, i32
  }
  func.func @transform_9(%arg0: i32, %arg1: i32) -> (i32, i32) {
    %c0_i32 = arith.constant 0 : i32
    %c0_i32_0 = arith.constant 0 : i32
    %c0_i32_1 = arith.constant 0 : i32
    return %c0_i32, %c0_i32_0 : i32, i32
  }
  func.func @transform_10(%arg0: i32, %arg1: i32) -> (i32, i32, i32) {
    %c0_i32 = arith.constant 0 : i32
    %c0_i32_0 = arith.constant 0 : i32
    %c0_i32_1 = arith.constant 0 : i32
    %c0_i32_2 = arith.constant 0 : i32
    return %c0_i32, %c0_i32_0, %c0_i32_1 : i32, i32, i32
  }
  func.func @transform_11(%arg0: i32, %arg1: i32) -> (i32, i32) {
    %c0_i32 = arith.constant 0 : i32
    %c0_i32_0 = arith.constant 0 : i32
    %c0_i32_1 = arith.constant 0 : i32
    return %c0_i32, %c0_i32_0 : i32, i32
  }
  func.func @transform_12(%arg0: i32, %arg1: i32) -> (i32, i32, i32) {
    %c0_i32 = arith.constant 0 : i32
    %c0_i32_0 = arith.constant 0 : i32
    %c0_i32_1 = arith.constant 0 : i32
    %c0_i32_2 = arith.constant 0 : i32
    return %c0_i32, %c0_i32_0, %c0_i32_1 : i32, i32, i32
  }
  func.func @transform_13(%arg0: i32, %arg1: i32) -> (i32, i32) {
    %c0_i32 = arith.constant 0 : i32
    %c0_i32_0 = arith.constant 0 : i32
    %c0_i32_1 = arith.constant 0 : i32
    return %c0_i32, %c0_i32_0 : i32, i32
  }
  func.func @transform_14(%arg0: i32, %arg1: i32) -> (i32, i32) {
    %c0_i32 = arith.constant 0 : i32
    %c0_i32_0 = arith.constant 0 : i32
    %c0_i32_1 = arith.constant 0 : i32
    return %c0_i32, %c0_i32_0 : i32, i32
  }
  func.func @transform_15(%arg0: i32, %arg1: i32) -> (i32, i32) {
    %c0_i32 = arith.constant 0 : i32
    %c0_i32_0 = arith.constant 0 : i32
    %c0_i32_1 = arith.constant 0 : i32
    return %c0_i32, %c0_i32_0 : i32, i32
  }
  func.func @transform_16(%arg0: i32, %arg1: i32) -> (i32, i32, i32) {
    %c0_i32 = arith.constant 0 : i32
    %c0_i32_0 = arith.constant 0 : i32
    return %arg0, %c0_i32, %arg1 : i32, i32, i32
  }
}

</mosaic_0001>

<bundles_post_ra>
// kernel: tpu_custom_call.1
= control target key start
LH: loop header
LB: loop body
LE: loop exit
PB: predicated region body
PF: predicated region fallthrough
CT: control target
= control target key end

     0   :  { %s7913_s25 = smov 0   ;;  %s7915_s26 = smov 0   ;;  %s10232_s0 = inlined_call_operand.vmem [shape: f32[2,1,16,128], index: 0, kind: input, shape index: {}]   ;;  %s10233_s1 = inlined_call_operand.<no memory space> [shape: f32[1,1,1], index: 1, kind: input, shape index: {}]   ;;  %s10234_s3 = inlined_call_operand.vmem [shape: bf16[16,1], index: 3, kind: input, shape index: {}]   ;;  %s10235_s4 = inlined_call_operand.vmem [shape: f32[16,1,1], index: 4, kind: input, shape index: {}]   ;;  %s10236_s5 = inlined_call_operand.vmem [shape: bf16[20,16], index: 5, kind: input, shape index: {}]   ;;  %s10237_s6 = inlined_call_operand.vmem [shape: f32[4,1,1], index: 6, kind: input, shape index: {}]   ;;  %s10238_s7 = inlined_call_operand.vmem [shape: f32[5,1,1], index: 7, kind: input, shape index: {}]   ;;  %s10239_s8 = inlined_call_operand.vmem [shape: f32[5,1,1], index: 8, kind: input, shape index: {}]   ;;  %s10240_s9 = inlined_call_operand.vmem [shape: bf16[16,5], index: 9, kind: input, shape index: {}]   ;;  %s10241_s10 = inlined_call_operand.vmem [shape: f32[16,1,1], index: 10, kind: input, shape index: {}]   ;;  %s10242_s11 = inlined_call_operand.vmem [shape: bf16[20,16], index: 11, kind: input, shape index: {}]   ;;  %s10243_s12 = inlined_call_operand.vmem [shape: f32[4,1,1], index: 12, kind: input, shape index: {}]   ;;  %s10244_s13 = inlined_call_operand.vmem [shape: bf16[9,144], index: 13, kind: input, shape index: {}]   ;;  %s10245_s14 = inlined_call_operand.vmem [shape: f32[9,1], index: 14, kind: input, shape index: {}]   ;;  %s10246_s15 = inlined_call_operand.vmem [shape: f32[9,1], index: 15, kind: input, shape index: {}]   ;;  %s10247_s16 = inlined_call_operand.vmem [shape: f32[2,9,128], index: 16, kind: output, shape index: {}]   ;;  %s10248_s2 = inlined_call_operand.<no memory space> [shape: f32[1,1,1], index: 2, kind: input, shape index: {}]  }
   0x1   :  { %10305 = sst [smem:[#allocation34_spill]] %s10232_s0  ;;  %v21_v0 = vstv %s10233_s1  ;;  %v23_v1 = vstv %s10248_s2  ;;  %s7917_s27 = smov 0  }
   0x2   :  { %22 = vst [vmem:[#allocation3] sm:$0x1] %v21_v0  ;;  %24 = vst [vmem:[#allocation4] sm:$0x1] %v23_v1 }
   0x3 LB: > { %s42_s1 = sadd.s32 1, %s7811_s26  ;;  %p7599_p0 = scmp.ge.s32.totalorder %s7815_s27, 1  ;;  %s7815_s27 = sphi %s7917_s27, %s30_s27   ;;  %s7811_s26 = sphi %s7915_s26, %s10401_s26   ;;  %s7807_s25 = sphi %s7913_s25, %s10400_s25  }
   0x4   : > { %p44_p1 = scmp.ge.s32.totalorder %s42_s1, 2  ;;  %p485_p2 = scmp.lt.s32.totalorder %s7815_s27, 3 }
   0x6   : > { %s10403_s1 = smov (%p44_p1, %s42_s1), 0  ;;  %p486_p3 = pnand %p7599_p0, %p485_p2 }
   0x8   : > { %489 = sbr.rel (%p486_p3) target bundleno = 1692 (0x69c), region = 84 }
   0xf   : > { %v7606_v2 = vld [vmem:[%s10235_s4] ss:$0 sm:$0xff]  ;;  %v10249_v4 = vmov 0   ;;  %v7607_v5 = vld [vmem:[%s10235_s4 + $0x1] ss:$0 sm:$0xff]  ;;  %p541_p4 = scmp.lt.s32.totalorder %s7807_s25, 1 }
  0x10   : > { %v7604_v3 = vld [vmem:[#allocation3] ss:$0 sm:$0xff]  ;;  %7779 = vset.pattern.permute.xlu1 %v10249_v4  ;;  %7778 = vset.pattern.permute.xlu0 %v10249_v4  ;;  %v7605_v6 = vld [vmem:[#allocation4] ss:$0 sm:$0xff]  ;;  %v7609_v7 = vld [vmem:[%s10235_s4 + $0x3] ss:$0 sm:$0xff] }
  0x11   : > { %694 = vperm.xlu1 %7779, %v7606_v2   ;;  %571 = vperm.xlu0 %7778, %v7604_v3   ;;  %v7608_v8 = vld [vmem:[%s10235_s4 + $0x2] ss:$0 sm:$0xff]  ;;  %v7611_v9 = vld [vmem:[%s10235_s4 + $0x5] ss:$0 sm:$0xff]  ;;  %v7610_v10 = vld [vmem:[%s10235_s4 + $0x4] ss:$0 sm:$0xff] }
  0x12   : > { %1231 = vmatprep.mubr.bf16.mxu0 %v10249_v4  ;;  %1274 = vmatprep.mubr.bf16.mxu1 %v10249_v4  ;;  %v7613_v11 = vld [vmem:[%s10235_s4 + $0x7] ss:$0 sm:$0xff]  ;;  %v7612_v12 = vld [vmem:[%s10235_s4 + $0x6] ss:$0 sm:$0xff]  ;;  %v7615_v13 = vld [vmem:[%s10235_s4 + $0x9] ss:$0 sm:$0xff] }
  0x13   : > { %v7614_v14 = vld [vmem:[%s10235_s4 + $0x8] ss:$0 sm:$0xff]  ;;  %v7617_v15 = vld [vmem:[%s10235_s4 + $0xb] ss:$0 sm:$0xff]  ;;  %v7616_v16 = vld [vmem:[%s10235_s4 + $0xa] ss:$0 sm:$0xff] }
  0x14   : > { %v7619_v17 = vld [vmem:[%s10235_s4 + $0xd] ss:$0 sm:$0xff]  ;;  %v7618_v18 = vld [vmem:[%s10235_s4 + $0xc] ss:$0 sm:$0xff]  ;;  %v7621_v19 = vld [vmem:[%s10235_s4 + $0xf] ss:$0 sm:$0xff] }
  0x15   : > { %698 = vperm.xlu1 %7779, %v7607_v5   ;;  %583 = vperm.xlu0 %7778, %v7605_v6   ;;  %v7620_v20 = vld [vmem:[%s10235_s4 + $0xe] ss:$0 sm:$0xff]  ;;  %v7668_v21 = vld [vmem:[%s10237_s6 + $0x3] ss:$0 sm:$0xff]  ;;  %v7665_v22 = vld [vmem:[%s10237_s6] ss:$0 sm:$0xff]  ;;  %v773_v6 = vlaneseq }
  0x16   : > { %v7667_v23 = vld [vmem:[%s10237_s6 + $0x2] ss:$0 sm:$0xff]  ;;  %v7666_v24 = vld [vmem:[%s10237_s6 + $0x1] ss:$0 sm:$0xff]  ;;  %v7669_v26 = vld [vmem:[%s10238_s7] ss:$0 sm:$0xff] }
  0x17   : > { %v7670_v25 = vld [vmem:[%s10238_s7 + $0x1] ss:$0 sm:$0xff]  ;;  %v7671_v27 = vld [vmem:[%s10238_s7 + $0x2] ss:$0 sm:$0xff]  ;;  %v7673_v28 = vld [vmem:[%s10238_s7 + $0x4] ss:$0 sm:$0xff] }
  0x18   : > { %v7674_v29 = vld [vmem:[%s10239_s8] ss:$0 sm:$0xff]  ;;  %v7672_v30 = vld [vmem:[%s10238_s7 + $0x3] ss:$0 sm:$0xff]  ;;  %v7678_v31 = vld [vmem:[%s10239_s8 + $0x4] ss:$0 sm:$0xff] }
  0x19   : > { %706 = vperm.xlu1 %7779, %v7609_v7   ;;  %702 = vperm.xlu0 %7778, %v7608_v8   ;;  %v7675_v32 = vld [vmem:[%s10239_s8 + $0x1] ss:$0 sm:$0xff]  ;;  %v7677_v33 = vld [vmem:[%s10239_s8 + $0x3] ss:$0 sm:$0xff]  ;;  %v7676_v34 = vld [vmem:[%s10239_s8 + $0x2] ss:$0 sm:$0xff] }
  0x1a   : > { %v7680_v35 = vld [vmem:[%s10241_s10 + $0x1] ss:$0 sm:$0xff]  ;;  %v7679_v36 = vld [vmem:[%s10241_s10] ss:$0 sm:$0xff]  ;;  %v7682_v37 = vld [vmem:[%s10241_s10 + $0x3] ss:$0 sm:$0xff] }
  0x1b   : > { %v7681_v38 = vld [vmem:[%s10241_s10 + $0x2] ss:$0 sm:$0xff]  ;;  %v7684_v39 = vld [vmem:[%s10241_s10 + $0x5] ss:$0 sm:$0xff]  ;;  %v7683_v40 = vld [vmem:[%s10241_s10 + $0x4] ss:$0 sm:$0xff] }
  0x1c   : > { %v7686_v41 = vld [vmem:[%s10241_s10 + $0x7] ss:$0 sm:$0xff]  ;;  %v7685_v42 = vld [vmem:[%s10241_s10 + $0x6] ss:$0 sm:$0xff]  ;;  %v7688_v43 = vld [vmem:[%s10241_s10 + $0x9] ss:$0 sm:$0xff] }
  0x1d   : > { %714 = vperm.xlu1 %7779, %v7611_v9   ;;  %710 = vperm.xlu0 %7778, %v7610_v10   ;;  %v7687_v44 = vld [vmem:[%s10241_s10 + $0x8] ss:$0 sm:$0xff]  ;;  %v7690_v45 = vld [vmem:[%s10241_s10 + $0xb] ss:$0 sm:$0xff]  ;;  %v7689_v46 = vld [vmem:[%s10241_s10 + $0xa] ss:$0 sm:$0xff] }
  0x1e   : > { %v7692_v47 = vld [vmem:[%s10241_s10 + $0xd] ss:$0 sm:$0xff]  ;;  %v7691_v48 = vld [vmem:[%s10241_s10 + $0xc] ss:$0 sm:$0xff]  ;;  %v7694_v49 = vld [vmem:[%s10241_s10 + $0xf] ss:$0 sm:$0xff] }
  0x1f   : > { %v7693_v50 = vld [vmem:[%s10241_s10 + $0xe] ss:$0 sm:$0xff]  ;;  %v7738_v51 = vld [vmem:[%s10243_s12] ss:$0 sm:$0xff]  ;;  %v7739_v52 = vld [vmem:[%s10243_s12 + $0x1] ss:$0 sm:$0xff] }
  0x20   : > { %v7740_v53 = vld [vmem:[%s10243_s12 + $0x2] ss:$0 sm:$0xff]  ;;  %v7741_v54 = vld [vmem:[%s10243_s12 + $0x3] ss:$0 sm:$0xff]  ;;  %v7483_v56 = vld [vmem:[%s10245_s14 + $0x8] sm:$0x1] }
  0x21   : > { %722 = vperm.xlu1 %7779, %v7613_v11   ;;  %718 = vperm.xlu0 %7778, %v7612_v12   ;;  %v7482_v55 = vld [vmem:[%s10245_s14] sm:$0xff]  ;;  %v7497_v58 = vld [vmem:[%s10246_s15 + $0x8] sm:$0x1]  ;;  %s10405_s25 = smov (!%p541_p4, %s7807_s25), 1  ;;  %s10306_s19 = sld [smem:[#allocation34_spill]]  ;;  %vm1148_vm2 = vcmask 1040384  }
  0x22   : > { %v7496_v57 = vld [vmem:[%s10246_s15] sm:$0xff]  ;;  %s7747_s0 = sshll.u32 %s10405_s25, 4  ;;  %v7818_v3 = vmov 1983009808   ;;  %v7819_v7 = vmov 1934713408  }
  0x23   : > { %v771_v5 = vunpack.c.l.s4 %v7818_v3  ;;  %v786_v8 = vunpack.c.l.s4 %v7819_v7  ;;  %vm1144_vm3 = vcmask 7168   ;;  %s556_s29 = scalar_lea.vmem %s10247_s16, %s7747_s0 }
  0x25   : > { %730 = vperm.xlu1 %7779, %v7615_v13   ;;  %726 = vperm.xlu0 %7778, %v7614_v14   ;;  %v772_v13 = vunpack.c.0.s8 %v771_v5  ;;  %v774_v14 = vshrl.u32 %v773_v6, 7 }
  0x27   : > { %s8109_s20 = scalar_lea.vmem %s10306_s19, %s7747_s0 }
  0x28   : > { %v558_v60 = vld [vmem:[%s8109_s20] sm:$0xff]  ;;  %v559_v61 = vld [vmem:[%s8109_s20 + $0x8] sm:$0xff] }
  0x29   : > { %738 = vperm.xlu1 %7779, %v7617_v15   ;;  %734 = vperm.xlu0 %7778, %v7616_v16   ;;  %v787_v16 = vunpack.c.0.s8 %v786_v8 }
  0x2d   : > { %746 = vperm.xlu1 %7779, %v7619_v17   ;;  %742 = vperm.xlu0 %7778, %v7618_v18  }
  0x31   : > { %754 = vperm.xlu1 %7779, %v7621_v19   ;;  %750 = vperm.xlu0 %7778, %v7620_v20   ;;  %v8114_v19 = vsub.s32 %v772_v13, %v774_v14  ;;  %v8116_v20 = vsub.s32 %v787_v16, %v774_v14 }
  0x35   : > { %3901 = vperm.xlu1 %7779, %v7668_v21   ;;  %3889 = vperm.xlu0 %7778, %v7665_v22  }
  0x39   : > { %3897 = vperm.xlu1 %7779, %v7667_v23   ;;  %3893 = vperm.xlu0 %7778, %v7666_v24   ;;  %v8122_v23 = vpack.i.b16 %v10249_v4, %v10249_v4 }
  0x3b   : > { %10307 = vst [vmem:[#allocation5_spill] sm:$0xff] %v8122_v23 }
  0x3d   : > { %3966 = vperm.xlu1 %7779, %v7670_v25   ;;  %3962 = vperm.xlu0 %7778, %v7669_v26  }
  0x41   : > { %3970 = vperm.xlu1 %7779, %v7671_v27   ;;  %3978 = vperm.xlu0 %7778, %v7673_v28  }
  0x45   : > { %4022 = vperm.xlu1 %7779, %v7674_v29   ;;  %3974 = vperm.xlu0 %7778, %v7672_v30   ;;  %v8132_v30 = vsel %vm1148_vm2, 65535, %v10249_v4 }
  0x49   : > { %4038 = vperm.xlu1 %7779, %v7678_v31   ;;  %4026 = vperm.xlu0 %7778, %v7675_v32  }
  0x4d   : > { %4034 = vperm.xlu1 %7779, %v7677_v33   ;;  %4030 = vperm.xlu0 %7778, %v7676_v34  }
  0x51   : > { %4189 = vperm.xlu1 %7779, %v7680_v35   ;;  %4185 = vperm.xlu0 %7778, %v7679_v36  }
  0x55   : > { %4197 = vperm.xlu1 %7779, %v7682_v37   ;;  %4193 = vperm.xlu0 %7778, %v7681_v38  }
  0x59   : > { %4205 = vperm.xlu1 %7779, %v7684_v39   ;;  %4201 = vperm.xlu0 %7778, %v7683_v40  }
  0x5d   : > { %4213 = vperm.xlu1 %7779, %v7686_v41   ;;  %4209 = vperm.xlu0 %7778, %v7685_v42   ;;  %v7780_v41 = vld [vmem:[%s10234_s3] sm:$0xff]  }
  0x61   : > { %4221 = vperm.xlu1 %7779, %v7688_v43   ;;  %4217 = vperm.xlu0 %7778, %v7687_v44  }
  0x65   : > { %4229 = vperm.xlu1 %7779, %v7690_v45   ;;  %4225 = vperm.xlu0 %7778, %v7689_v46  }
  0x69   : > { %4237 = vperm.xlu1 %7779, %v7692_v47   ;;  %4233 = vperm.xlu0 %7778, %v7691_v48  }
  0x6d   : > { %4245 = vperm.xlu1 %7779, %v7694_v49   ;;  %4241 = vperm.xlu0 %7778, %v7693_v50  }
  0x71   : > { %7362 = vperm.xlu0 %7778, %v7738_v51   ;;  %7366 = vperm.xlu1 %7779, %v7739_v52  }
  0x75   : > { %7370 = vperm.xlu0 %7778, %v7740_v53   ;;  %7374 = vperm.xlu1 %7779, %v7741_v54  }
  0x79   : > { %7486 = vperm.xlu0 %7778, %v7482_v55   ;;  %7491 = vperm.xlu1 %7779, %v7483_v56  }
  0x7d   : > { %7500 = vperm.xlu0 %7778, %v7496_v57   ;;  %7505 = vperm.xlu1 %7779, %v7497_v58  }
  0x90   : > { %v572_v59 = vpop.permute.xlu0 %571  ;;  %v695_v3 = vpop.permute.xlu1 %694 }
  0x91   : > { %v574_v62 = vmul.f32 %v572_v59, %v558_v60  ;;  %v575_v63 = vmul.f32 %v572_v59, %v559_v61 }
  0x94   : > { %v584_v0 = vpop.permute.xlu0 %583  ;;  %v699_v5 = vpop.permute.xlu1 %698 }
  0x95   : > { %v586_v1 = vadd.f32 %v584_v0, %v574_v62  ;;  %v587_v2 = vadd.f32 %v584_v0, %v575_v63 }
  0x97   : > { %vm588_vm0 = vcmp.ge.f32.partialorder %v586_v1, 0.0  ;;  %vm589_vm1 = vcmp.ge.f32.partialorder %v587_v2, 0.0  ;;  %v590_v9 = vmul.f32 0.01, %v586_v1  ;;  %v591_v10 = vmul.f32 0.01, %v587_v2 }
  0x98   : > { %v707_v6 = vpop.permute.xlu1 %706  ;;  %v703_v7 = vpop.permute.xlu0 %702 }
  0x99   : > { %v592_v11 = vsel %vm588_vm0, %v586_v1, %v590_v9  ;;  %v593_v12 = vsel %vm589_vm1, %v587_v2, %v591_v10 }
  0x9a   : > { %v596_v15 = vpack.c.bf16 %v593_v12, %v592_v11 }
  0x9c   : > { %v761_v17 = vshrl.u32 %v596_v15, 16  ;;  %v759_v18 = vpack.i.b16 %v10249_v4, %v596_v15  ;;  %v715_v8 = vpop.permute.xlu1 %714  ;;  %v711_v9 = vpop.permute.xlu0 %710 }
  0x9e   : > { %v763_v21 = vpack.i.b16 %v10249_v4, %v761_v17  ;;  %v776_v22 = vrot.slane %v759_v18, %v8114_v19  ;;  %v769_v33 = vcombine.high %v759_v18, %v8122_v23 }
  0xa0   : > { %v825_v24 = vrot.slane %v763_v21, %v8114_v19  ;;  %v791_v25 = vrot.slane %v776_v22, %v8116_v20  ;;  %v818_v26 = vcombine.high %v763_v21, %v8122_v23  ;;  %v784_v27 = vcombine.high %v776_v22, %v10249_v4  ;;  %v723_v10 = vpop.permute.xlu1 %722  ;;  %v719_v11 = vpop.permute.xlu0 %718 }
  0xa1   : > { %v783_v46 = vrot.slane %v769_v33, %v8114_v19  ;;  %v915_v18 = vcombine.low %v715_v8, %v723_v10  ;;  %v899_v21 = vcombine.low %v711_v9, %v719_v11 }
  0xa2   : > { %v833_v28 = vcombine.high %v825_v24, %v10249_v4  ;;  %v840_v29 = vrot.slane %v825_v24, %v8116_v20  ;;  %v814_v31 = vcombine.high %v791_v25, %v10249_v4  ;;  %v1152_v36 = vand.u32 %v8132_v30, %v791_v25 }
  0xa3   : > { %v798_v37 = vrot.slane %v784_v27, %v8116_v20  ;;  %v832_v38 = vrot.slane %v818_v26, %v8114_v19  ;;  %v806_v52 = vrot.slane %v783_v46, %v8116_v20  ;;  %v799_v56 = vcombine.high %v783_v46, %v10249_v4 }
  0xa4   : > { %v1155_v32 = vand.u32 %v8132_v30, %v840_v29  ;;  %v863_v34 = vcombine.high %v840_v29, %v10249_v4  ;;  %v847_v35 = vrot.slane %v833_v28, %v8116_v20  ;;  %v1158_v43 = vand.u32 %v8132_v30, %v814_v31  ;;  %v731_v12 = vpop.permute.xlu1 %730  ;;  %v727_v13 = vpop.permute.xlu0 %726 }
  0xa5   : > { %v855_v45 = vrot.slane %v832_v38, %v8116_v20  ;;  %v1164_v47 = vand.u32 %v8132_v30, %v798_v37  ;;  %v815_v49 = vcombine.high %v798_v37, %v10249_v4  ;;  %v848_v54 = vcombine.high %v832_v38, %v10249_v4 }
  0xa6   : > { %1199 = vmatprep.subr.bf16.mxu0 %v1155_v32  ;;  %v1161_v39 = vand.u32 %v8132_v30, %v863_v34  ;;  %v1167_v40 = vand.u32 %v8132_v30, %v847_v35  ;;  %v864_v42 = vcombine.high %v847_v35, %v10249_v4  ;;  %v816_v55 = vcombine.high %v806_v52, %v10249_v4 }
  0xa7   : > { %1200 = vmatpush1.bf16.msra.mxu0 %v1152_v36  ;;  %v1179_v48 = vand.u32 %v8132_v30, %v855_v45  ;;  %v865_v50 = vcombine.high %v855_v45, %v10249_v4  ;;  %v1170_v51 = vand.u32 %v8132_v30, %v815_v49  ;;  %v862_v57 = vrot.slane %v848_v54, %v8116_v20 }
  0xa8   : > { %1242 = vmatprep.subr.bf16.mxu1 %v1161_v39  ;;  %1285 = vmatprep.subr.bf16.mxu0 %v1167_v40  ;;  %v1173_v44 = vand.u32 %v8132_v30, %v864_v42  ;;  %v1176_v58 = vand.u32 %v8132_v30, %v806_v52  ;;  %v1182_v61 = vand.u32 %v8132_v30, %v816_v55  ;;  %v739_v14 = vpop.permute.xlu1 %738  ;;  %v735_v15 = vpop.permute.xlu0 %734 }
  0xa9   : > { %1243 = vmatpush1.bf16.msra.mxu1 %v1158_v43  ;;  %v1185_v53 = vand.u32 %v8132_v30, %v865_v50  ;;  %v1191_v59 = vand.u32 %v8132_v30, %v862_v57  ;;  %v866_v60 = vcombine.high %v862_v57, %v10249_v4  ;;  %v813_v62 = vrot.slane %v799_v56, %v8116_v20 }
  0xaa   : > { %7623 = vmatmul.mubr.msk.bf16.vlgmr.msra.gmra.mrb[0].mxu0 %vm1144_vm3, %v7780_v41  ;;  %1328 = vmatprep.subr.bf16.mxu1 %v1173_v44  ;;  %v883_v25 = vcombine.low %v699_v5, %v707_v6  ;;  %v867_v26 = vcombine.low %v695_v3, %v703_v7  ;;  %v884_v27 = vcombine.high %v699_v5, %v707_v6 }
  0xab   : > { %1286 = vmatpush1.bf16.msra.mxu0 %v1164_v47  ;;  %1317 = vmatprep.mubr.bf16.mxu0 %v10249_v4  ;;  %v1197_v63 = vand.u32 %v8132_v30, %v866_v60  ;;  %v817_v0 = vcombine.high %v813_v62, %v10249_v4  ;;  %v1188_v1 = vand.u32 %v8132_v30, %v813_v62 }
  0xac   : > { %7624 = vmatmul.mubr.msk.bf16.vlgmr.msra.gmra.mrb[0].mxu1 %vm1144_vm3, %v7780_v41  ;;  %1371 = vmatprep.subr.bf16.mxu0 %v1179_v48  ;;  %v747_v16 = vpop.permute.xlu1 %746  ;;  %v743_v17 = vpop.permute.xlu0 %742  ;;  %v868_v28 = vcombine.high %v695_v3, %v703_v7  ;;  %v916_v29 = vcombine.high %v715_v8, %v723_v10  ;;  %v923_v33 = vrot.slane %v915_v18, %v8114_v19 }
  0xad   : > { %1360 = vmatprep.mubr.bf16.mxu1 %v10249_v4  ;;  %1329 = vmatpush1.bf16.msra.mxu1 %v1170_v51  ;;  %v1194_v2 = vand.u32 %v8132_v30, %v817_v0  ;;  %v900_v30 = vcombine.high %v711_v9, %v719_v11  ;;  %v907_v34 = vrot.slane %v899_v21, %v8114_v19 }
  0xae   : > { %1414 = vmatprep.subr.bf16.mxu1 %v1185_v53  ;;  %v891_v37 = vrot.slane %v883_v25, %v8114_v19  ;;  %v875_v38 = vrot.slane %v867_v26, %v8114_v19  ;;  %v1019_v39 = vcombine.low %v731_v12, %v739_v14  ;;  %v1003_v40 = vcombine.low %v727_v13, %v735_v15 }
  0xaf   : > { %v1020_v42 = vcombine.high %v731_v12, %v739_v14  ;;  %v1004_v43 = vcombine.high %v727_v13, %v735_v15  ;;  %v882_v44 = vrot.slane %v868_v28, %v8114_v19  ;;  %v930_v45 = vrot.slane %v916_v29, %v8114_v19 }
  0xb0   : > { %v755_v22 = vpop.permute.xlu1 %754  ;;  %v751_v24 = vpop.permute.xlu0 %750  ;;  %v914_v48 = vrot.slane %v900_v30, %v8114_v19  ;;  %v963_v49 = vcombine.low %v907_v34, %v923_v33  ;;  %v931_v52 = vcombine.low %v875_v38, %v891_v37  ;;  %v1027_v53 = vrot.slane %v1019_v39, %v8114_v19 }
  0xb1   : > { %v1051_v31 = vcombine.low %v747_v16, %v755_v22  ;;  %v1035_v32 = vcombine.low %v743_v17, %v751_v24  ;;  %v1052_v35 = vcombine.high %v747_v16, %v755_v22  ;;  %v1036_v36 = vcombine.high %v743_v17, %v751_v24 }
  0xb2   : > { %7625 = vmatmul.mubr.msk.bf16.vlgmr.msra.gmra.mrb[4].mxu0 %vm1144_vm3, %v7780_v41  ;;  %v1011_v54 = vrot.slane %v1003_v40, %v8114_v19  ;;  %v932_v55 = vcombine.high %v875_v38, %v891_v37  ;;  %v964_v56 = vcombine.high %v907_v34, %v923_v33  ;;  %v1034_v57 = vrot.slane %v1020_v42, %v8114_v19 }
  0xb3   : > { %1372 = vmatpush1.bf16.msra.mxu0 %v1176_v58  ;;  %1403 = vmatprep.mubr.bf16.mxu0 %v10249_v4  ;;  %v1059_v46 = vrot.slane %v1051_v31, %v8114_v19  ;;  %v1043_v47 = vrot.slane %v1035_v32, %v8114_v19  ;;  %v1066_v50 = vrot.slane %v1052_v35, %v8114_v19 }
  0xb4   : > { %1457 = vmatprep.subr.bf16.mxu0 %v1191_v59  ;;  %7626 = vmatmul.mubr.msk.bf16.vlgmr.msra.gmra.mrb[4].mxu1 %vm1144_vm3, %v7780_v41  ;;  %v1050_v51 = vrot.slane %v1036_v36, %v8114_v19  ;;  %v1018_v58 = vrot.slane %v1004_v43, %v8114_v19  ;;  %v1067_v3 = vcombine.low %v1011_v54, %v1027_v53 }
  0xb5   : > { %1415 = vmatpush1.bf16.msra.mxu1 %v1182_v61  ;;  %1446 = vmatprep.mubr.bf16.mxu1 %v10249_v4  ;;  %v1099_v61 = vcombine.low %v1043_v47, %v1059_v46  ;;  %v1100_v62 = vcombine.high %v1043_v47, %v1059_v46  ;;  %v1068_v5 = vcombine.high %v1011_v54, %v1027_v53 }
  0xb6   : > { %1500 = vmatprep.subr.bf16.mxu1 %v1197_v63  ;;  %v979_v63 = vcombine.low %v914_v48, %v930_v45  ;;  %v1115_v0 = vcombine.low %v1050_v51, %v1066_v50  ;;  %v939_v6 = vrot.slane %v931_v52, %v8116_v20  ;;  %v1083_v7 = vcombine.low %v1018_v58, %v1034_v57 }
  0xb7   : > { %v1116_v8 = vcombine.high %v1050_v51, %v1066_v50  ;;  %v946_v9 = vrot.slane %v932_v55, %v8116_v20  ;;  %v978_v10 = vrot.slane %v964_v56, %v8116_v20  ;;  %v1107_v11 = vrot.slane %v1099_v61, %v8116_v20 }
  0xb8   : > { %v1114_v12 = vrot.slane %v1100_v62, %v8116_v20  ;;  %v1084_v15 = vcombine.high %v1018_v58, %v1034_v57  ;;  %v987_v17 = vrot.slane %v979_v63, %v8116_v20  ;;  %v1123_v18 = vrot.slane %v1115_v0, %v8116_v20 }
  0xb9   : > { %v1075_v22 = vrot.slane %v1067_v3, %v8116_v20  ;;  %v1082_v24 = vrot.slane %v1068_v5, %v8116_v20  ;;  %v8223_v28 = vcombine.high %v946_v9, %v978_v10  ;;  %v1091_v29 = vrot.slane %v1083_v7, %v8116_v20 }
  0xba   : > { %7627 = vmatmul.mubr.msk.bf16.vlgmr.msra.gmra.mrb[8].mxu0 %vm1144_vm3, %v7780_v41  ;;  %v1130_v30 = vrot.slane %v1116_v8, %v8116_v20 }
  0xbb   : > { %1458 = vmatpush1.bf16.msra.mxu0 %v1188_v1  ;;  %1489 = vmatprep.mubr.bf16.mxu0 %v10249_v4  ;;  %v971_v1 = vrot.slane %v963_v49, %v8116_v20  ;;  %v8227_v32 = vcombine.low %v1075_v22, %v1107_v11  ;;  %v8229_v33 = vcombine.high %v1075_v22, %v1107_v11 }
  0xbc   : > { %7628 = vmatmul.mubr.msk.bf16.vlgmr.msra.gmra.mrb[8].mxu1 %vm1144_vm3, %v7780_v41  ;;  %v8231_v34 = vcombine.low %v1082_v24, %v1114_v12  ;;  %v8233_v35 = vcombine.high %v1082_v24, %v1114_v12  ;;  %v8239_v40 = vcombine.low %v1091_v29, %v1123_v18  ;;  %v8246_v47 = vcombine.high %v1091_v29, %v1123_v18 }
  0xbd   : > { %1501 = vmatpush1.bf16.msra.mxu1 %v1194_v2  ;;  %1532 = vmatprep.mubr.bf16.mxu1 %v10249_v4  ;;  %v980_v2 = vcombine.high %v914_v48, %v930_v45  ;;  %v8212_v16 = vcombine.low %v939_v6, %v971_v1  ;;  %v8216_v21 = vcombine.high %v939_v6, %v971_v1 }
  0xbf   : > { %v994_v25 = vrot.slane %v980_v2, %v8116_v20 }
  0xc2   : > { %7629 = vmatmul.mubr.msk.bf16.vlgmr.msra.gmra.mrb[12].mxu0 %vm1144_vm3, %v7780_v41 }
  0xc3   : > { %2747 = vmatprep.mubr.bf16.mxu0 %v10249_v4 }
  0xc4   : > { %7630 = vmatmul.mubr.msk.bf16.vlgmr.msra.gmra.mrb[12].mxu1 %vm1144_vm3, %v7780_v41  ;;  %v898_v41 = vrot.slane %v884_v27, %v8114_v19  ;;  %v8221_v27 = vcombine.low %v946_v9, %v978_v10 }
  0xc5   : > { %2645 = vmatprep.mubr.bf16.mxu1 %v10249_v4 }
  0xc6   : > { %v947_v59 = vcombine.low %v882_v44, %v898_v41  ;;  %v948_v60 = vcombine.high %v882_v44, %v898_v41  ;;  %v1098_v41 = vrot.slane %v1084_v15, %v8116_v20 }
  0xc8   : > { %v955_v13 = vrot.slane %v947_v59, %v8116_v20  ;;  %v962_v14 = vrot.slane %v948_v60, %v8116_v20  ;;  %v8252_v52 = vcombine.low %v1098_v41, %v1130_v30  ;;  %v8265_v12 = vcombine.high %v1098_v41, %v1130_v30 }
  0xca   : > { %v8235_v38 = vcombine.low %v955_v13, %v987_v17  ;;  %v8237_v39 = vcombine.high %v955_v13, %v987_v17  ;;  %v8244_v46 = vcombine.low %v962_v14, %v994_v25  ;;  %v8250_v51 = vcombine.high %v962_v14, %v994_v25 }
 0x17d   : > { %v1233_v26 = vpop.f32.mrb[0].mxu0 }
 0x17e   : > { %v1235_v31 = vpop.f32.mrb[1].mxu0  ;;  %v1234_v42 = vadd.f32 %v1233_v26, %v8212_v16 }
 0x17f   : > { %v1237_v36 = vpop.f32.mrb[2].mxu0  ;;  %v1276_v37 = vpop.f32.mrb[0].mxu1  ;;  %v1236_v48 = vadd.f32 %v1235_v31, %v8216_v21 }
 0x180   : > { %v1277_v43 = vadd.f32 %v1276_v37, %v8221_v27  ;;  %v1239_v44 = vpop.f32.mrb[3].mxu0  ;;  %v1278_v45 = vpop.f32.mrb[1].mxu1  ;;  %v1238_v53 = vadd.f32 %v1237_v36, %v8227_v32 }
 0x181   : > { %v1279_v49 = vadd.f32 %v1278_v45, %v8223_v28  ;;  %v1280_v50 = vpop.f32.mrb[2].mxu1  ;;  %v1240_v58 = vadd.f32 %v1239_v44, %v8229_v33 }
 0x182   : > { %v1543_v54 = vcombine.low %v1234_v42, %v1277_v43  ;;  %v1544_v55 = vcombine.high %v1234_v42, %v1277_v43  ;;  %v1281_v56 = vadd.f32 %v1280_v50, %v8231_v34  ;;  %v1282_v57 = vpop.f32.mrb[3].mxu1 }
 0x183   : > { %v1559_v59 = vcombine.low %v1236_v48, %v1279_v49  ;;  %v1560_v60 = vcombine.high %v1236_v48, %v1279_v49  ;;  %v1283_v61 = vadd.f32 %v1282_v57, %v8233_v35 }
 0x184   : > { %v1551_v62 = vrot.slane %v1543_v54, %v8114_v19  ;;  %v1558_v63 = vrot.slane %v1544_v55, %v8114_v19  ;;  %v1815_v0 = vcombine.low %v1238_v53, %v1281_v56  ;;  %v1816_v1 = vcombine.high %v1238_v53, %v1281_v56 }
 0x185   : > { %v1567_v2 = vrot.slane %v1559_v59, %v8114_v19  ;;  %v1574_v3 = vrot.slane %v1560_v60, %v8114_v19  ;;  %v1831_v5 = vcombine.low %v1240_v58, %v1283_v61  ;;  %v1832_v6 = vcombine.high %v1240_v58, %v1283_v61  ;;  %v1319_v7 = vpop.f32.mrb[4].mxu0 }
 0x186   : > { %v1823_v8 = vrot.slane %v1815_v0, %v8114_v19  ;;  %v1830_v9 = vrot.slane %v1816_v1, %v8114_v19  ;;  %v1320_v10 = vadd.f32 %v1319_v7, %v8235_v38  ;;  %v1321_v11 = vpop.f32.mrb[5].mxu0 }
 0x187   : > { %v1607_v13 = vcombine.low %v1551_v62, %v1567_v2  ;;  %v1608_v14 = vcombine.high %v1551_v62, %v1567_v2  ;;  %v1623_v15 = vcombine.low %v1558_v63, %v1574_v3  ;;  %v1624_v17 = vcombine.high %v1558_v63, %v1574_v3  ;;  %v1323_v18 = vpop.f32.mrb[6].mxu0  ;;  %v1362_v22 = vpop.f32.mrb[4].mxu1 }
 0x188   : > { %v1839_v24 = vrot.slane %v1831_v5, %v8114_v19  ;;  %v1846_v25 = vrot.slane %v1832_v6, %v8114_v19  ;;  %v1322_v26 = vadd.f32 %v1321_v11, %v8237_v39  ;;  %v1324_v29 = vadd.f32 %v1323_v18, %v8239_v40  ;;  %v1325_v31 = vpop.f32.mrb[7].mxu0  ;;  %v1364_v36 = vpop.f32.mrb[5].mxu1 }
 0x189   : > { %v1615_v37 = vrot.slane %v1607_v13, %v8116_v20  ;;  %v1622_v30 = vrot.slane %v1608_v14, %v8116_v20  ;;  %v1631_v41 = vrot.slane %v1623_v15, %v8116_v20  ;;  %v8275_v42 = vrot.slane %v1624_v17, %v8116_v20  ;;  %v1366_v43 = vpop.f32.mrb[6].mxu1 }
 0x18a   : > { %v1879_v44 = vcombine.low %v1823_v8, %v1839_v24  ;;  %v1880_v45 = vcombine.high %v1823_v8, %v1839_v24  ;;  %v1895_v48 = vcombine.low %v1830_v9, %v1846_v25  ;;  %v1896_v49 = vcombine.high %v1830_v9, %v1846_v25  ;;  %v1368_v50 = vpop.f32.mrb[7].mxu1 }
 0x18b   : > { %v1363_v53 = vadd.f32 %v1362_v22, %v8244_v46  ;;  %v1326_v54 = vadd.f32 %v1325_v31, %v8246_v47  ;;  %v1365_v55 = vadd.f32 %v1364_v36, %v8250_v51  ;;  %v1367_v56 = vadd.f32 %v1366_v43, %v8252_v52 }
 0x18c   : > { %v8282_v57 = vrot.slane %v1879_v44, %v8116_v20  ;;  %v8285_v58 = vrot.slane %v1880_v45, %v8116_v20  ;;  %v8288_v59 = vrot.slane %v1895_v48, %v8116_v20  ;;  %v8291_v60 = vrot.slane %v1896_v49, %v8116_v20 }
 0x18d   : > { %v1575_v61 = vcombine.low %v1320_v10, %v1363_v53  ;;  %v1576_v62 = vcombine.high %v1320_v10, %v1363_v53  ;;  %v1591_v63 = vcombine.low %v1322_v26, %v1365_v55  ;;  %v1592_v0 = vcombine.high %v1322_v26, %v1365_v55  ;;  %v1405_v1 = vpop.f32.mrb[8].mxu0 }
 0x18e   : > { %v1847_v2 = vcombine.low %v1324_v29, %v1367_v56  ;;  %v1848_v3 = vcombine.high %v1324_v29, %v1367_v56  ;;  %v1369_v5 = vadd.f32 %v1368_v50, %v8265_v12  ;;  %v8295_v6 = vadd.f32 %v1405_v1, %v8212_v16  ;;  %v1407_v7 = vpop.f32.mrb[9].mxu0 }
 0x18f   : > { %v1583_v8 = vrot.slane %v1575_v61, %v8114_v19  ;;  %v1590_v9 = vrot.slane %v1576_v62, %v8114_v19  ;;  %v1599_v11 = vrot.slane %v1591_v63, %v8114_v19  ;;  %v1606_v13 = vrot.slane %v1592_v0, %v8114_v19  ;;  %v1409_v10 = vpop.f32.mrb[10].mxu0  ;;  %v8301_v14 = vpop.f32.mrb[8].mxu1 }
 0x190   : > { %v1855_v15 = vrot.slane %v1847_v2, %v8114_v19  ;;  %v8305_v17 = vrot.slane %v1848_v3, %v8114_v19  ;;  %v1863_v18 = vcombine.low %v1326_v54, %v1369_v5  ;;  %v1864_v16 = vcombine.high %v1326_v54, %v1369_v5  ;;  %v8307_v22 = vpop.f32.mrb[11].mxu0  ;;  %v8309_v24 = vpop.f32.mrb[9].mxu1 }
 0x191   : > { %v1639_v25 = vcombine.low %v1583_v8, %v1599_v11  ;;  %v1640_v26 = vcombine.high %v1583_v8, %v1599_v11  ;;  %v1655_v29 = vcombine.low %v1590_v9, %v1606_v13  ;;  %v1656_v31 = vcombine.high %v1590_v9, %v1606_v13  ;;  %v8311_v36 = vpop.f32.mrb[10].mxu1 }
 0x192   : > { %v1871_v43 = vrot.slane %v1863_v18, %v8114_v19  ;;  %v1878_v44 = vrot.slane %v1864_v16, %v8114_v19  ;;  %v8316_v45 = vadd.f32 %v1407_v7, %v8216_v21  ;;  %v8319_v48 = vadd.f32 %v1409_v10, %v8227_v32  ;;  %v8321_v49 = vpop.f32.mrb[11].mxu1 }
 0x193   : > { %v1647_v50 = vrot.slane %v1639_v25, %v8116_v20  ;;  %v1654_v53 = vrot.slane %v1640_v26, %v8116_v20  ;;  %v1663_v54 = vrot.slane %v1655_v29, %v8116_v20  ;;  %v1670_v55 = vrot.slane %v1656_v31, %v8116_v20 }
 0x194   : > { %v1911_v56 = vcombine.low %v1855_v15, %v1871_v43  ;;  %v1912_v61 = vcombine.high %v1855_v15, %v1871_v43  ;;  %v1927_v62 = vcombine.low %v8305_v17, %v1878_v44  ;;  %v1928_v21 = vcombine.high %v8305_v17, %v1878_v44 }
 0x195   : > { %v1671_v63 = vcombine.low %v1615_v37, %v1647_v50  ;;  %v1672_v0 = vcombine.high %v1615_v37, %v1647_v50  ;;  %v1673_v32 = vcombine.low %v1622_v30, %v1654_v53  ;;  %v1674_v1 = vcombine.high %v1622_v30, %v1654_v53  ;;  %v8329_v2 = vpop.f32.mrb[12].mxu0 }
 0x196   : > { %v1675_v3 = vcombine.low %v1631_v41, %v1663_v54  ;;  %v1676_v5 = vcombine.high %v1631_v41, %v1663_v54  ;;  %v1677_v7 = vcombine.low %v8275_v42, %v1670_v55  ;;  %v1678_v8 = vcombine.high %v8275_v42, %v1670_v55  ;;  %v8333_v9 = vpop.f32.mrb[13].mxu0 }
 0x197   : > { %vm2087_vm4 = vcmp.ge.f32.partialorder %v1671_v63, 0.0  ;;  %vm2089_vm5 = vcmp.ge.f32.partialorder %v1672_v0, 0.0  ;;  %vm2091_vm6 = vcmp.ge.f32.partialorder %v1673_v32, 0.0  ;;  %vm2093_vm7 = vcmp.ge.f32.partialorder %v1674_v1, 0.0  ;;  %v8335_v11 = vpop.f32.mrb[14].mxu0  ;;  %v8337_v13 = vpop.f32.mrb[12].mxu1 }
 0x198   : > { %vm2095_vm8 = vcmp.ge.f32.partialorder %v1675_v3, 0.0  ;;  %vm2097_vm9 = vcmp.ge.f32.partialorder %v1676_v5, 0.0  ;;  %vm2099_vm10 = vcmp.ge.f32.partialorder %v1677_v7, 0.0  ;;  %vm2101_vm11 = vcmp.ge.f32.partialorder %v1678_v8, 0.0  ;;  %v8339_v37 = vpop.f32.mrb[15].mxu0  ;;  %v8341_v30 = vpop.f32.mrb[13].mxu1 }
 0x199   : > { %v2119_v41 = vmul.f32 0.01, %v1671_v63  ;;  %v2121_v42 = vmul.f32 0.01, %v1672_v0  ;;  %v2123_v10 = vmul.f32 0.01, %v1673_v32  ;;  %v1919_v15 = vrot.slane %v1911_v56, %v8116_v20 }
 0x19a   : > { %v2125_v17 = vmul.f32 0.01, %v1674_v1  ;;  %v2127_v18 = vmul.f32 0.01, %v1675_v3  ;;  %v2129_v16 = vmul.f32 0.01, %v1676_v5  ;;  %v1926_v25 = vrot.slane %v1912_v61, %v8116_v20 }
 0x19b   : > { %v2131_v26 = vmul.f32 0.01, %v1677_v7  ;;  %v2133_v29 = vmul.f32 0.01, %v1678_v8  ;;  %v8346_v31 = vsel %vm2087_vm4, %v1671_v63, %v2119_v41  ;;  %v8349_v43 = vsel %vm2089_vm5, %v1672_v0, %v2121_v42  ;;  %v8351_v44 = vpop.f32.mrb[14].mxu1 }
 0x19c   : > { %v8354_v50 = vsel %vm2091_vm6, %v1673_v32, %v2123_v10  ;;  %v8357_v53 = vsel %vm2093_vm7, %v1674_v1, %v2125_v17  ;;  %v8360_v54 = vsel %vm2095_vm8, %v1675_v3, %v2127_v18  ;;  %v8363_v55 = vsel %vm2097_vm9, %v1676_v5, %v2129_v16  ;;  %v8365_v56 = vpop.f32.mrb[15].mxu1 }
 0x19d   : > { %v8368_v61 = vsel %vm2099_vm10, %v1677_v7, %v2131_v26  ;;  %v8371_v63 = vsel %vm2101_vm11, %v1678_v8, %v2133_v29  ;;  %v1935_v0 = vrot.slane %v1927_v62, %v8116_v20  ;;  %v1942_v32 = vrot.slane %v1928_v21, %v8116_v20 }
 0x19e   : > { %v1943_v1 = vcombine.low %v8282_v57, %v1919_v15  ;;  %v1944_v3 = vcombine.high %v8282_v57, %v1919_v15  ;;  %v1945_v41 = vcombine.low %v8285_v58, %v1926_v25  ;;  %v1946_v5 = vcombine.high %v8285_v58, %v1926_v25 }
 0x19f   : > { %v1947_v42 = vcombine.low %v8288_v59, %v1935_v0  ;;  %v1948_v7 = vcombine.high %v8288_v59, %v1935_v0  ;;  %v1949_v10 = vcombine.low %v8291_v60, %v1942_v32  ;;  %v1950_v8 = vcombine.high %v8291_v60, %v1942_v32 }
 0x1a0   : > { %vm2103_vm12 = vcmp.ge.f32.partialorder %v1943_v1, 0.0  ;;  %vm2105_vm13 = vcmp.ge.f32.partialorder %v1944_v3, 0.0  ;;  %vm2107_vm14 = vcmp.ge.f32.partialorder %v1945_v41, 0.0  ;;  %vm2109_vm15 = vcmp.ge.f32.partialorder %v1946_v5, 0.0 }
 0x1a1   : > { %vm2111_vm0 = vcmp.ge.f32.partialorder %v1947_v42, 0.0  ;;  %vm2113_vm1 = vcmp.ge.f32.partialorder %v1948_v7, 0.0  ;;  %vm2115_vm3 = vcmp.ge.f32.partialorder %v1949_v10, 0.0  ;;  %vm2117_vm4 = vcmp.ge.f32.partialorder %v1950_v8, 0.0 }
 0x1a2   : > { %v2135_v57 = vmul.f32 0.01, %v1943_v1  ;;  %v2137_v62 = vmul.f32 0.01, %v1944_v3  ;;  %v2139_v21 = vmul.f32 0.01, %v1945_v41  ;;  %v1449_v58 = vadd.f32 %v8301_v14, %v8221_v27 }
 0x1a3   : > { %v2141_v15 = vmul.f32 0.01, %v1946_v5  ;;  %v2143_v59 = vmul.f32 0.01, %v1947_v42  ;;  %v2145_v17 = vmul.f32 0.01, %v1948_v7  ;;  %v1412_v60 = vadd.f32 %v8307_v22, %v8229_v33 }
 0x1a4   : > { %v2147_v18 = vmul.f32 0.01, %v1949_v10  ;;  %v2149_v16 = vmul.f32 0.01, %v1950_v8  ;;  %v8388_v25 = vsel %vm2103_vm12, %v1943_v1, %v2135_v57  ;;  %v8391_v26 = vsel %vm2105_vm13, %v1944_v3, %v2137_v62 }
 0x1a5   : > { %v8394_v29 = vsel %vm2107_vm14, %v1945_v41, %v2139_v21  ;;  %v8397_v0 = vsel %vm2109_vm15, %v1946_v5, %v2141_v15  ;;  %v8400_v27 = vsel %vm2111_vm0, %v1947_v42, %v2143_v59  ;;  %v8403_v14 = vsel %vm2113_vm1, %v1948_v7, %v2145_v17 }
 0x1a6   : > { %v8406_v33 = vsel %vm2115_vm3, %v1949_v10, %v2147_v18  ;;  %v8409_v22 = vsel %vm2117_vm4, %v1950_v8, %v2149_v16  ;;  %v1679_v32 = vcombine.low %v8295_v6, %v1449_v58  ;;  %v1680_v1 = vcombine.high %v8295_v6, %v1449_v58 }
 0x1a7   : > { %v1451_v3 = vadd.f32 %v8309_v24, %v8223_v28  ;;  %v1453_v41 = vadd.f32 %v8311_v36, %v8231_v34  ;;  %v1455_v5 = vadd.f32 %v8321_v49, %v8233_v35  ;;  %v1492_v42 = vadd.f32 %v8329_v2, %v8235_v38 }
 0x1a8   : > { %v1687_v7 = vrot.slane %v1679_v32, %v8114_v19  ;;  %v1694_v10 = vrot.slane %v1680_v1, %v8114_v19  ;;  %v1494_v8 = vadd.f32 %v8333_v9, %v8237_v39  ;;  %v1496_v6 = vadd.f32 %v8335_v11, %v8239_v40 }
 0x1a9   : > { %v1695_v28 = vcombine.low %v8316_v45, %v1451_v3  ;;  %v1696_v34 = vcombine.high %v8316_v45, %v1451_v3  ;;  %v1951_v24 = vcombine.low %v8319_v48, %v1453_v41  ;;  %v1952_v35 = vcombine.high %v8319_v48, %v1453_v41 }
 0x1aa   : > { %v1967_v36 = vcombine.low %v1412_v60, %v1455_v5  ;;  %v1968_v38 = vcombine.high %v1412_v60, %v1455_v5  ;;  %v1535_v49 = vadd.f32 %v8337_v13, %v8244_v46  ;;  %v1498_v2 = vadd.f32 %v8339_v37, %v8246_v47 }
 0x1ab   : > { %v1703_v39 = vrot.slane %v1695_v28, %v8114_v19  ;;  %v1710_v40 = vrot.slane %v1696_v34, %v8114_v19  ;;  %v1959_v9 = vrot.slane %v1951_v24, %v8114_v19  ;;  %v1966_v45 = vrot.slane %v1952_v35, %v8114_v19 }
 0x1ac   : > { %v1975_v11 = vrot.slane %v1967_v36, %v8114_v19  ;;  %v1982_v48 = vrot.slane %v1968_v38, %v8114_v19  ;;  %v1711_v57 = vcombine.low %v1492_v42, %v1535_v49  ;;  %v1712_v62 = vcombine.high %v1492_v42, %v1535_v49 }
 0x1ad   : > { %v1743_v21 = vcombine.low %v1687_v7, %v1703_v39  ;;  %v1744_v58 = vcombine.high %v1687_v7, %v1703_v39  ;;  %v1759_v46 = vcombine.low %v1694_v10, %v1710_v40  ;;  %v1760_v13 = vcombine.high %v1694_v10, %v1710_v40 }
 0x1ae   : > { %v2015_v15 = vcombine.low %v1959_v9, %v1975_v11  ;;  %v2016_v47 = vcombine.high %v1959_v9, %v1975_v11  ;;  %v2031_v37 = vcombine.low %v1966_v45, %v1982_v48  ;;  %v2032_v59 = vcombine.high %v1966_v45, %v1982_v48 }
 0x1af   : > { %v1751_v17 = vrot.slane %v1743_v21, %v8116_v20  ;;  %v1758_v60 = vrot.slane %v1744_v58, %v8116_v20  ;;  %v1767_v18 = vrot.slane %v1759_v46, %v8116_v20  ;;  %v1774_v16 = vrot.slane %v1760_v13, %v8116_v20 }
 0x1b0   : > { %v8446_v32 = vrot.slane %v2015_v15, %v8116_v20  ;;  %v8449_v1 = vrot.slane %v2016_v47, %v8116_v20  ;;  %v8452_v3 = vrot.slane %v2031_v37, %v8116_v20  ;;  %v8455_v41 = vrot.slane %v2032_v59, %v8116_v20 }
 0x1b1   : > { %v1719_v5 = vrot.slane %v1711_v57, %v8114_v19  ;;  %v1726_v42 = vrot.slane %v1712_v62, %v8114_v19  ;;  %v1537_v7 = vadd.f32 %v8341_v30, %v8250_v51  ;;  %v1539_v10 = vadd.f32 %v8351_v44, %v8252_v52 }
 0x1b2   : > { %v1541_v28 = vadd.f32 %v8365_v56, %v8265_v12  ;;  %v7631_v34 = vpack.c.bf16 %v8360_v54, %v8346_v31  ;;  %v7633_v24 = vpack.c.bf16 %v8368_v61, %v8354_v50  ;;  %v7635_v35 = vpack.c.bf16 %v8400_v27, %v8388_v25 }
 0x1b3   : > { %v1727_v36 = vcombine.low %v1494_v8, %v1537_v7  ;;  %v1728_v38 = vcombine.high %v1494_v8, %v1537_v7  ;;  %v1983_v49 = vcombine.low %v1496_v6, %v1539_v10  ;;  %v1984_v39 = vcombine.high %v1496_v6, %v1539_v10 }
 0x1b4   : > { %v1999_v51 = vcombine.low %v1498_v2, %v1541_v28  ;;  %v2000_v30 = vcombine.high %v1498_v2, %v1541_v28  ;;  %v8472_v52 = vrot.slane %v7631_v34, %v8114_v19  ;;  %v8475_v12 = vrot.slane %v7633_v24, %v8114_v19 }
 0x1b5   : > { %v1735_v31 = vrot.slane %v1727_v36, %v8114_v19  ;;  %v1742_v44 = vrot.slane %v1728_v38, %v8114_v19  ;;  %v1991_v50 = vrot.slane %v1983_v49, %v8114_v19  ;;  %v1998_v54 = vrot.slane %v1984_v39, %v8114_v19 }
 0x1b6   : > { %v2007_v56 = vrot.slane %v1999_v51, %v8114_v19  ;;  %v2014_v61 = vrot.slane %v2000_v30, %v8114_v19  ;;  %v8484_v25 = vrot.slane %v7635_v35, %v8114_v19  ;;  %v7637_v27 = vpack.c.bf16 %v8406_v33, %v8394_v29 }
 0x1b7   : > { %v1775_v8 = vcombine.low %v1719_v5, %v1735_v31  ;;  %v1776_v6 = vcombine.high %v1719_v5, %v1735_v31  ;;  %v1791_v2 = vcombine.low %v1726_v42, %v1742_v44  ;;  %v1792_v40 = vcombine.high %v1726_v42, %v1742_v44 }
 0x1b8   : > { %v2047_v9 = vcombine.low %v1991_v50, %v2007_v56  ;;  %v2048_v45 = vcombine.high %v1991_v50, %v2007_v56  ;;  %v2063_v11 = vcombine.low %v1998_v54, %v2014_v61  ;;  %v2064_v48 = vcombine.high %v1998_v54, %v2014_v61 }
 0x1b9   : > { %v1783_v57 = vrot.slane %v1775_v8, %v8116_v20  ;;  %v1790_v62 = vrot.slane %v1776_v6, %v8116_v20  ;;  %v1799_v21 = vrot.slane %v1791_v2, %v8116_v20  ;;  %v1806_v58 = vrot.slane %v1792_v40, %v8116_v20 }
 0x1ba   : > { %v2055_v46 = vrot.slane %v2047_v9, %v8116_v20  ;;  %v2062_v13 = vrot.slane %v2048_v45, %v8116_v20  ;;  %v2071_v15 = vrot.slane %v2063_v11, %v8116_v20  ;;  %v2078_v47 = vrot.slane %v2064_v48, %v8116_v20 }
 0x1bb   : > { %v1807_v37 = vcombine.low %v1751_v17, %v1783_v57  ;;  %v1808_v59 = vcombine.high %v1751_v17, %v1783_v57  ;;  %v1809_v5 = vcombine.low %v1758_v60, %v1790_v62  ;;  %v1810_v42 = vcombine.high %v1758_v60, %v1790_v62 }
 0x1bc   : > { %v1811_v7 = vcombine.low %v1767_v18, %v1799_v21  ;;  %v1812_v10 = vcombine.high %v1767_v18, %v1799_v21  ;;  %v1813_v28 = vcombine.low %v1774_v16, %v1806_v58  ;;  %v1814_v34 = vcombine.high %v1774_v16, %v1806_v58 }
 0x1bd   : > { %vm2088_vm5 = vcmp.ge.f32.partialorder %v1807_v37, 0.0  ;;  %vm2090_vm6 = vcmp.ge.f32.partialorder %v1808_v59, 0.0  ;;  %vm2092_vm7 = vcmp.ge.f32.partialorder %v1809_v5, 0.0  ;;  %vm2094_vm8 = vcmp.ge.f32.partialorder %v1810_v42, 0.0 }
 0x1be   : > { %vm2096_vm9 = vcmp.ge.f32.partialorder %v1811_v7, 0.0  ;;  %vm2098_vm10 = vcmp.ge.f32.partialorder %v1812_v10, 0.0  ;;  %vm2100_vm11 = vcmp.ge.f32.partialorder %v1813_v28, 0.0  ;;  %vm2102_vm12 = vcmp.ge.f32.partialorder %v1814_v34, 0.0 }
 0x1bf   : > { %v2120_v24 = vmul.f32 0.01, %v1807_v37  ;;  %v2122_v35 = vmul.f32 0.01, %v1808_v59  ;;  %v2124_v36 = vmul.f32 0.01, %v1809_v5  ;;  %v2079_v38 = vcombine.low %v8446_v32, %v2055_v46 }
 0x1c0   : > { %v2126_v17 = vmul.f32 0.01, %v1810_v42  ;;  %v2128_v49 = vmul.f32 0.01, %v1811_v7  ;;  %v2130_v60 = vmul.f32 0.01, %v1812_v10  ;;  %v2080_v18 = vcombine.high %v8446_v32, %v2055_v46 }
 0x1c1   : > { %v2132_v39 = vmul.f32 0.01, %v1813_v28  ;;  %v2134_v16 = vmul.f32 0.01, %v1814_v34  ;;  %v8499_v51 = vsel %vm2088_vm5, %v1807_v37, %v2120_v24  ;;  %v8502_v30 = vsel %vm2090_vm6, %v1808_v59, %v2122_v35 }
 0x1c2   : > { %v8505_v31 = vsel %vm2092_vm7, %v1809_v5, %v2124_v36  ;;  %v8508_v44 = vsel %vm2094_vm8, %v1810_v42, %v2126_v17  ;;  %v8511_v50 = vsel %vm2096_vm9, %v1811_v7, %v2128_v49  ;;  %v8514_v54 = vsel %vm2098_vm10, %v1812_v10, %v2130_v60 }
 0x1c3   : > { %v8517_v32 = vsel %vm2100_vm11, %v1813_v28, %v2132_v39  ;;  %v8520_v56 = vsel %vm2102_vm12, %v1814_v34, %v2134_v16  ;;  %v2081_v61 = vcombine.low %v8449_v1, %v2062_v13  ;;  %v2082_v8 = vcombine.high %v8449_v1, %v2062_v13 }
 0x1c4   : > { %v2083_v6 = vcombine.low %v8452_v3, %v2071_v15  ;;  %v2084_v2 = vcombine.high %v8452_v3, %v2071_v15  ;;  %v2085_v40 = vcombine.low %v8455_v41, %v2078_v47  ;;  %v2086_v9 = vcombine.high %v8455_v41, %v2078_v47 }
 0x1c5   : > { %vm2104_vm13 = vcmp.ge.f32.partialorder %v2079_v38, 0.0  ;;  %vm2106_vm14 = vcmp.ge.f32.partialorder %v2080_v18, 0.0  ;;  %vm2108_vm15 = vcmp.ge.f32.partialorder %v2081_v61, 0.0  ;;  %vm2110_vm0 = vcmp.ge.f32.partialorder %v2082_v8, 0.0 }
 0x1c6   : > { %vm2112_vm1 = vcmp.ge.f32.partialorder %v2083_v6, 0.0  ;;  %vm2114_vm3 = vcmp.ge.f32.partialorder %v2084_v2, 0.0  ;;  %vm2116_vm4 = vcmp.ge.f32.partialorder %v2085_v40, 0.0  ;;  %vm2118_vm5 = vcmp.ge.f32.partialorder %v2086_v9, 0.0 }
 0x1c7   : > { %v2136_v45 = vmul.f32 0.01, %v2079_v38  ;;  %v2138_v11 = vmul.f32 0.01, %v2080_v18  ;;  %v2140_v48 = vmul.f32 0.01, %v2081_v61  ;;  %v2258_v1 = vrot.slane %v7637_v27, %v8114_v19 }
 0x1c8   : > { %v2142_v3 = vmul.f32 0.01, %v2082_v8  ;;  %v2144_v57 = vmul.f32 0.01, %v2083_v6  ;;  %v2146_v62 = vmul.f32 0.01, %v2084_v2  ;;  %v2266_v41 = vcombine.low %v8472_v52, %v8475_v12 }
 0x1c9   : > { %v2148_v21 = vmul.f32 0.01, %v2085_v40  ;;  %v2150_v58 = vmul.f32 0.01, %v2086_v9  ;;  %v2168_v46 = vsel %vm2104_vm13, %v2079_v38, %v2136_v45  ;;  %v8536_v13 = vsel %vm2106_vm14, %v2080_v18, %v2138_v11 }
 0x1ca   : > { %v2172_v15 = vsel %vm2108_vm15, %v2081_v61, %v2140_v48  ;;  %v8540_v47 = vsel %vm2110_vm0, %v2082_v8, %v2142_v3  ;;  %v2176_v29 = vsel %vm2112_vm1, %v2083_v6, %v2144_v57  ;;  %v8544_v33 = vsel %vm2114_vm3, %v2084_v2, %v2146_v62 }
 0x1cb   : > { %v2180_v27 = vsel %vm2116_vm4, %v2085_v40, %v2148_v21  ;;  %v8548_v37 = vsel %vm2118_vm5, %v2086_v9, %v2150_v58  ;;  %v2274_v59 = vrot.slane %v2266_v41, %v8116_v20  ;;  %v2298_v5 = vcombine.low %v8484_v25, %v2258_v1 }
 0x1cc   : > { %v7639_v42 = vpack.c.bf16 %v8363_v55, %v8349_v43  ;;  %v7641_v7 = vpack.c.bf16 %v8371_v63, %v8357_v53  ;;  %v7643_v10 = vpack.c.bf16 %v8403_v14, %v8391_v26  ;;  %v7645_v28 = vpack.c.bf16 %v8409_v22, %v8397_v0 }
 0x1cd   : > { %v2306_v34 = vrot.slane %v2298_v5, %v8116_v20  ;;  %v2267_v24 = vcombine.high %v8472_v52, %v8475_v12  ;;  %v2299_v35 = vcombine.high %v8484_v25, %v2258_v1  ;;  %v7632_v36 = vpack.c.bf16 %v8511_v50, %v8499_v51 }
 0x1ce   : > { %v2346_v43 = vrot.slane %v7639_v42, %v8114_v19  ;;  %v2362_v53 = vrot.slane %v7641_v7, %v8114_v19  ;;  %v2378_v55 = vrot.slane %v7643_v10, %v8114_v19  ;;  %v2394_v63 = vrot.slane %v7645_v28, %v8114_v19 }
 0x1cf   : > { %v2330_v26 = vcombine.low %v2274_v59, %v2306_v34  ;;  %v2281_v0 = vrot.slane %v2267_v24, %v8116_v20  ;;  %v2313_v14 = vrot.slane %v2299_v35, %v8116_v20  ;;  %v8572_v22 = vcombine.high %v2274_v59, %v2306_v34 }
 0x1d0   : > { %v2402_v52 = vcombine.low %v2346_v43, %v2362_v53  ;;  %v2434_v12 = vcombine.low %v2378_v55, %v2394_v63  ;;  %v2403_v25 = vcombine.high %v2346_v43, %v2362_v53  ;;  %v2435_v38 = vcombine.high %v2378_v55, %v2394_v63 }
 0x1d1   : > { %v2478_v17 = vshrl.u32 %v2330_v26, 16  ;;  %v2332_v49 = vcombine.low %v2281_v0, %v2313_v14  ;;  %v2486_v60 = vshrl.u32 %v8572_v22, 16  ;;  %v8575_v18 = vcombine.high %v2281_v0, %v2313_v14 }
 0x1d2   : > { %v2410_v39 = vrot.slane %v2402_v52, %v8116_v20  ;;  %v2442_v16 = vrot.slane %v2434_v12, %v8116_v20  ;;  %v2417_v51 = vrot.slane %v2403_v25, %v8116_v20  ;;  %v2449_v50 = vrot.slane %v2435_v38, %v8116_v20 }
 0x1d3   : > { %v2494_v61 = vshrl.u32 %v2332_v49, 16  ;;  %v2502_v8 = vshrl.u32 %v8575_v18, 16  ;;  %v2217_v6 = vrot.slane %v7632_v36, %v8114_v19  ;;  %v7634_v2 = vpack.c.bf16 %v8517_v32, %v8505_v31 }
 0x1d4   : > { %v2466_v40 = vcombine.low %v2410_v39, %v2442_v16  ;;  %v2468_v9 = vcombine.low %v2417_v51, %v2449_v50  ;;  %v2467_v45 = vcombine.high %v2410_v39, %v2442_v16  ;;  %v8585_v11 = vcombine.high %v2417_v51, %v2449_v50 }
 0x1d5   : > { %v2233_v48 = vrot.slane %v7634_v2, %v8114_v19  ;;  %v7636_v1 = vpack.c.bf16 %v2176_v29, %v2168_v46  ;;  %v7638_v3 = vpack.c.bf16 %v2180_v27, %v2172_v15  ;;  %v7640_v57 = vpack.c.bf16 %v8514_v54, %v8502_v30  ;;  %v8600_v27 = vld [vmem:[%s10236_s5] sm:$0xff]  }
 0x1d6   : > { %v2479_v62 = vshrl.u32 %v2466_v40, 16  ;;  %v2495_v41 = vshrl.u32 %v2468_v9, 16  ;;  %v2476_v21 = vpack.i.b16 %v2466_v40, %v2330_v26  ;;  %v2492_v58 = vpack.i.b16 %v2468_v9, %v2332_v49 }
 0x1d7   : > { %v2487_v59 = vshrl.u32 %v2467_v45, 16  ;;  %v2484_v5 = vpack.i.b16 %v2467_v45, %v8572_v22  ;;  %v2503_v31 = vshrl.u32 %v8585_v11, 16  ;;  %v2249_v32 = vrot.slane %v7636_v1, %v8114_v19 }
 0x1d8   : > { %v2480_v42 = vpack.i.b16 %v2479_v62, %v2478_v17  ;;  %v2496_v7 = vpack.i.b16 %v2495_v41, %v2494_v61  ;;  %v2265_v10 = vrot.slane %v7638_v3, %v8114_v19  ;;  %v2282_v46 = vcombine.low %v2217_v6, %v2233_v48  ;;  %v7782_v17 = vld [vmem:[%s10236_s5 + $0x8] ss:$0 sps:$4 sm:$0x33]  }
 0x1d9   : > { %v2488_v15 = vpack.i.b16 %v2487_v59, %v2486_v60  ;;  %v2504_v29 = vpack.i.b16 %v2503_v31, %v2502_v8  ;;  %v2353_v30 = vrot.slane %v7640_v57, %v8114_v19  ;;  %v7642_v54 = vpack.c.bf16 %v8520_v56, %v8508_v44  ;;  %v8666_v31 = vpop.permute.xlu0 %3889 }
 0x1da   : > { %2613 = vmatprep.subr.bf16.mxu1 %v2480_v42  ;;  %2715 = vmatprep.subr.bf16.mxu0 %v2496_v7  ;;  %v2290_v28 = vrot.slane %v2282_v46, %v8116_v20  ;;  %v2314_v34 = vcombine.low %v2249_v32, %v2265_v10  ;;  %v7644_v24 = vpack.c.bf16 %v8544_v33, %v8536_v13  ;;  %vm2606_vm6 = vcmask 130048  }
 0x1db   : > { %2614 = vmatpush1.bf16.msra.mxu1 %v2476_v21  ;;  %2716 = vmatpush1.bf16.msra.mxu0 %v2492_v58  ;;  %v2369_v35 = vrot.slane %v7642_v54, %v8114_v19  ;;  %v7646_v44 = vpack.c.bf16 %v8548_v37, %v8540_v47  ;;  %v2283_v56 = vcombine.high %v2217_v6, %v2233_v48  ;;  %v8662_v58 = vpop.permute.xlu1 %3901  ;;  %v7820_v59 = vmov 0.0  }
 0x1dc   : > { %2664 = vmatprep.subr.bf16.mxu1 %v2488_v15  ;;  %v2322_v36 = vrot.slane %v2314_v34, %v8116_v20  ;;  %v2385_v43 = vrot.slane %v7644_v24, %v8114_v19  ;;  %v2315_v53 = vcombine.high %v2249_v32, %v2265_v10  ;;  %v2500_v55 = vpack.i.b16 %v8585_v11, %v8575_v18 }
 0x1dd   : > { %v2401_v13 = vrot.slane %v7646_v44, %v8114_v19  ;;  %v2418_v33 = vcombine.low %v2353_v30, %v2369_v35  ;;  %v2297_v63 = vrot.slane %v2283_v56, %v8116_v20  ;;  %v2419_v26 = vcombine.high %v2353_v30, %v2369_v35  ;;  %10308 = vst [vmem:[#allocation6_spill] sm:$0xff] %v8662_v58  ;;  %v8681_v35 = vpop.permute.xlu0 %3893 }
 0x1de   : > { %7649 = vmatmul.mubr.msk.bf16.vlgmr.msra.gmra.mrb[16].mxu1 %vm2606_vm6, %v8600_v27  ;;  %7653 = vmatmul.mubr.msk.bf16.vlgmr.msra.gmra.mrb[16].mxu0 %vm2606_vm6, %v8600_v27  ;;  %v2334_v47 = vcombine.low %v2290_v28, %v2322_v36  ;;  %v2329_v37 = vrot.slane %v2315_v53, %v8116_v20  ;;  %v2335_v0 = vcombine.high %v2290_v28, %v2322_v36  ;;  %vm3709_vm7 = vcmask 1041408  }
 0x1df   : > { %2665 = vmatpush1.bf16.msra.mxu1 %v2484_v5  ;;  %2655 = vmatprep.mubr.bf16.mxu1 %v10249_v4  ;;  %v2450_v14 = vcombine.low %v2385_v43, %v2401_v13  ;;  %v2451_v52 = vcombine.high %v2385_v43, %v2401_v13  ;;  %v2426_v12 = vrot.slane %v2418_v33, %v8116_v20  ;;  %v8668_v32 = vpop.permute.xlu1 %3897  ;;  %vm3790_vm8 = vcmask 1046528  }
 0x1e0   : > { %2766 = vmatprep.subr.bf16.mxu1 %v2504_v29  ;;  %2757 = vmatprep.mubr.bf16.mxu0 %v10249_v4  ;;  %v2336_v22 = vcombine.low %v2297_v63, %v2329_v37  ;;  %v2337_v38 = vcombine.high %v2297_v63, %v2329_v37  ;;  %v2433_v49 = vrot.slane %v2419_v26, %v8116_v20  ;;  %v2510_v39 = vshrl.u32 %v2334_v47, 16 }
 0x1e1   : > { %v2458_v25 = vrot.slane %v2450_v14, %v8116_v20  ;;  %v2465_v60 = vrot.slane %v2451_v52, %v8116_v20  ;;  %v2518_v51 = vshrl.u32 %v2335_v0, 16  ;;  %v2538_v5 = vcombine.low %v7820_v59, %v7820_v59  ;;  %10309 = vst [vmem:[#allocation7_spill] sm:$0xff] %v8666_v31  ;;  %10310 = vst [vmem:[#allocation8_spill] sm:$0xff] %v8668_v32 }
 0x1e2   : > { %v2526_v61 = vshrl.u32 %v2336_v22, 16  ;;  %v2534_v6 = vshrl.u32 %v2337_v38, 16  ;;  %v2539_v24 = vcombine.high %v7820_v59, %v7820_v59  ;;  %10311 = vst [vmem:[#allocation9_spill] sm:$0xff] %v8681_v35  ;;  %vm3831_vm11 = vcmask 1045504  }
 0x1e3   : > { %v2470_v18 = vcombine.low %v2426_v12, %v2458_v25  ;;  %v2471_v16 = vcombine.high %v2426_v12, %v2458_v25  ;;  %v2472_v50 = vcombine.low %v2433_v49, %v2465_v60  ;;  %v2473_v8 = vcombine.high %v2433_v49, %v2465_v60  ;;  %v8683_v44 = vpop.permute.xlu1 %3966 }
 0x1e4   : > { %v2546_v10 = vrot.slane %v2538_v5, %v8114_v19  ;;  %10312 = vst [vmem:[#allocation10_spill] sm:$0xff] %v8683_v44  ;;  %v2553_v63 = vrot.slane %v2539_v24, %v8114_v19  ;;  %vm4685_vm5 = vcmask 1042432  }
 0x1e5   : > { %v2511_v2 = vshrl.u32 %v2470_v18, 16  ;;  %v2508_v40 = vpack.i.b16 %v2470_v18, %v2334_v47  ;;  %v2519_v9 = vshrl.u32 %v2471_v16, 16  ;;  %v2516_v45 = vpack.i.b16 %v2471_v16, %v2335_v0  ;;  %v3963_v0 = vpop.permute.xlu0 %3962 }
 0x1e6   : > { %7650 = vmatmul.mubr.msk.bf16.gmra.mrb[20].mxu1 %vm2606_vm6, %v7782_v17  ;;  %7654 = vmatmul.mubr.msk.bf16.gmra.mrb[20].mxu0 %vm2606_vm6, %v7782_v17  ;;  %v2527_v11 = vshrl.u32 %v2472_v50, 16  ;;  %v2524_v48 = vpack.i.b16 %v2472_v50, %v2336_v22  ;;  %v2535_v1 = vshrl.u32 %v2473_v8, 16  ;;  %v2532_v3 = vpack.i.b16 %v2473_v8, %v2337_v38 }
 0x1e7   : > { %v2512_v57 = vpack.i.b16 %v2511_v2, %v2510_v39  ;;  %2696 = vmatprep.mubr.bf16.mxu1 %v10249_v4  ;;  %2849 = vmatprep.mubr.bf16.mxu0 %v10249_v4  ;;  %v2520_v62 = vpack.i.b16 %v2519_v9, %v2518_v51  ;;  %v2554_v28 = vcombine.low %v2546_v10, %v2546_v10  ;;  %v8716_v38 = vpop.permute.xlu1 %3970  ;;  %v7790_v39 = vld [vmem:[%s8109_s20 + $0x8] sm:$0xff] }
 0x1e8   : > { %v2528_v41 = vpack.i.b16 %v2527_v11, %v2526_v61  ;;  %v2536_v21 = vpack.i.b16 %v2535_v1, %v2534_v6  ;;  %v2555_v34 = vcombine.high %v2546_v10, %v2546_v10  ;;  %v2570_v25 = vcombine.low %v2553_v63, %v2553_v63  ;;  %10319 = vst [vmem:[#allocation17_spill] sm:$0xff] %v8716_v38 }
 0x1e9   : > { %2817 = vmatprep.subr.bf16.mxu0 %v2512_v57  ;;  %v8690_v43 = vrot.slane %v2554_v28, %v8116_v20  ;;  %v3982_v16 = vmul.f32 %v7790_v39, %v3963_v0  ;;  %v2571_v11 = vcombine.high %v2553_v63, %v2553_v63 }
 0x1ea   : > { %2818 = vmatpush1.bf16.msra.mxu0 %v2508_v40 }
 0x1eb   : > { %2919 = vmatprep.subr.bf16.mxu0 %v2528_v41  ;;  %10313 = vst [vmem:[#allocation11_spill] sm:$0xff] %v8690_v43  ;;  %v8702_v14 = vcombine.low %v8690_v43, %v8690_v43  ;;  %v8710_v52 = vcombine.high %v8690_v43, %v8690_v43  ;;  %v8725_v50 = vcombine.high %v8690_v43, %v7820_v59 }
 0x1ed   : > { %10315 = vst [vmem:[#allocation13_spill] sm:$0xff] %v8702_v14  ;;  %10317 = vst [vmem:[#allocation15_spill] sm:$0xff] %v8710_v52 }
 0x1ee   : > { %7651 = vmatmul.mubr.msk.bf16.vlgmr.msra.gmra.mrb[24].mxu1 %vm2606_vm6, %v8600_v27  ;;  %7657 = vmatmul.mubr.msk.bf16.vlgmr.msra.gmra.mrb[24].mxu0 %vm2606_vm6, %v8600_v27  ;;  %10320 = vst [vmem:[#allocation18_spill] sm:$0xff] %v8725_v50 }
 0x1ef   : > { %2767 = vmatpush1.bf16.msra.mxu1 %v2500_v55  ;;  %2920 = vmatpush1.bf16.msra.mxu0 %v2524_v48  ;;  %v8695_v55 = vrot.slane %v2555_v34, %v8116_v20 }
 0x1f0   : > { %2868 = vmatprep.subr.bf16.mxu1 %v2520_v62  ;;  %2706 = vmatprep.mubr.bf16.mxu1 %v10249_v4 }
 0x1f1   : > { %2859 = vmatprep.mubr.bf16.mxu0 %v10249_v4  ;;  %10314 = vst [vmem:[#allocation12_spill] sm:$0xff] %v8695_v55  ;;  %v8706_v22 = vcombine.low %v8695_v55, %v8695_v55  ;;  %v8714_v12 = vcombine.high %v8695_v55, %v8695_v55 }
 0x1f3   : > { %10316 = vst [vmem:[#allocation14_spill] sm:$0xff] %v8706_v22  ;;  %10318 = vst [vmem:[#allocation16_spill] sm:$0xff] %v8714_v12 }
 0x1f6   : > { %7652 = vmatmul.mubr.msk.bf16.gmra.mrb[28].mxu1 %vm2606_vm6, %v7782_v17  ;;  %7658 = vmatmul.mubr.msk.bf16.gmra.mrb[28].mxu0 %vm2606_vm6, %v7782_v17 }
 0x1f7   : > { %2798 = vmatprep.mubr.bf16.mxu1 %v10249_v4  ;;  %2951 = vmatprep.mubr.bf16.mxu0 %v10249_v4 }
 0x1fe   : > { %7655 = vmatmul.mubr.msk.bf16.vlgmr.msra.gmra.mrb[32].mxu1 %vm2606_vm6, %v8600_v27  ;;  %7661 = vmatmul.mubr.msk.bf16.vlgmr.msra.gmra.mrb[32].mxu0 %vm2606_vm6, %v8600_v27 }
 0x1ff   : > { %2869 = vmatpush1.bf16.msra.mxu1 %v2516_v45  ;;  %2808 = vmatprep.mubr.bf16.mxu1 %v10249_v4  ;;  %v8733_v45 = vrot.slane %v2570_v25, %v8116_v20  ;;  %v8757_v25 = vcombine.high %v8695_v55, %v7820_v59 }
 0x200   : > { %2970 = vmatprep.subr.bf16.mxu1 %v2536_v21  ;;  %2961 = vmatprep.mubr.bf16.mxu0 %v10249_v4 }
 0x201   : > { %10321 = vst [vmem:[#allocation19_spill] sm:$0xff] %v8733_v45  ;;  %10322 = vst [vmem:[#allocation20_spill] sm:$0xff] %v8757_v25 }
 0x206   : > { %7656 = vmatmul.mubr.msk.bf16.gmra.mrb[36].mxu1 %vm2606_vm6, %v7782_v17  ;;  %7662 = vmatmul.mubr.msk.bf16.gmra.mrb[36].mxu0 %vm2606_vm6, %v7782_v17 }
 0x207   : > { %2900 = vmatprep.mubr.bf16.mxu1 %v10249_v4  ;;  %4768 = vmatprep.mubr.bf16.mxu0 %v10249_v4 }
 0x20e   : > { %7659 = vmatmul.mubr.msk.bf16.vlgmr.msra.gmra.mrb[40].mxu1 %vm2606_vm6, %v8600_v27 }
 0x20f   : > { %2971 = vmatpush1.bf16.msra.mxu1 %v2532_v3  ;;  %2910 = vmatprep.mubr.bf16.mxu1 %v10249_v4 }
 0x216   : > { %7660 = vmatmul.mubr.msk.bf16.gmra.mrb[44].mxu1 %vm2606_vm6, %v7782_v17 }
 0x217   : > { %3002 = vmatprep.mubr.bf16.mxu1 %v10249_v4 }
 0x21e   : > { %7663 = vmatmul.mubr.msk.bf16.vlgmr.msra.gmra.mrb[48].mxu1 %vm2606_vm6, %v8600_v27 }
 0x21f   : > { %3012 = vmatprep.mubr.bf16.mxu1 %v10249_v4 }
 0x226   : > { %7664 = vmatmul.mubr.msk.bf16.gmra.mrb[52].mxu1 %vm2606_vm6, %v7782_v17  ;;  %v7789_v17 = vld [vmem:[%s8109_s20] sm:$0xff] }
 0x227   : > { %4811 = vmatprep.mubr.bf16.mxu1 %v10249_v4  ;;  %v3981_v49 = vmul.f32 %v7789_v17, %v3963_v0  ;;  %v8760_v17 = vrot.slane %v2571_v11, %v8116_v20 }
 0x229   : > { %10323 = vst [vmem:[#allocation21_spill] sm:$0xff] %v8760_v17 }
 0x2b1   : > { %v2647_v42 = vpop.f32.mrb[16].mxu1  ;;  %v8670_v7 = vpop.f32.mrb[16].mxu0 }
 0x2b2   : > { %v2649_v46 = vpop.f32.mrb[17].mxu1  ;;  %v8673_v15 = vpop.f32.mrb[17].mxu0  ;;  %v2648_v51 = vadd.f32 %v2647_v42, %v8702_v14 }
 0x2b3   : > { %v2651_v29 = vpop.f32.mrb[18].mxu1  ;;  %v8675_v30 = vpop.f32.mrb[18].mxu0  ;;  %v2650_v2 = vadd.f32 %v2649_v46, %v8710_v52 }
 0x2b4   : > { %v2653_v54 = vpop.f32.mrb[19].mxu1  ;;  %v8677_v27 = vpop.f32.mrb[19].mxu0  ;;  %v2652_v1 = vadd.f32 %v2651_v29, %v8702_v14 }
 0x2b5   : > { %v2654_v5 = vadd.f32 %v2653_v54, %v8710_v52 }
 0x2b9   : > { %v8685_v56 = vpop.f32.mrb[20].mxu1  ;;  %v8687_v36 = vpop.f32.mrb[20].mxu0 }
 0x2ba   : > { %v8692_v53 = vpop.f32.mrb[21].mxu1  ;;  %v8697_v13 = vpop.f32.mrb[21].mxu0 }
 0x2bb   : > { %v2661_v33 = vpop.f32.mrb[22].mxu1  ;;  %v2763_v26 = vpop.f32.mrb[22].mxu0 }
 0x2bc   : > { %v2662_v47 = vpop.f32.mrb[23].mxu1  ;;  %v2764_v37 = vpop.f32.mrb[23].mxu0 }
 0x2bd   : > { %v4023_v37 = vpop.permute.xlu1 %4022 }
 0x2c1   : > { %v2698_v60 = vpop.f32.mrb[24].mxu1  ;;  %v8719_v18 = vpop.f32.mrb[24].mxu0 }
 0x2c2   : > { %v2699_v61 = vadd.f32 %v2698_v60, %v8706_v22  ;;  %v2700_v8 = vpop.f32.mrb[25].mxu1  ;;  %v8728_v6 = vpop.f32.mrb[25].mxu0 }
 0x2c3   : > { %v2701_v40 = vadd.f32 %v2700_v8, %v8714_v12  ;;  %v2702_v9 = vpop.f32.mrb[26].mxu1  ;;  %v8735_v48 = vpop.f32.mrb[26].mxu0 }
 0x2c4   : > { %v3021_v3 = vcombine.low %v2648_v51, %v2699_v61  ;;  %v3022_v57 = vcombine.high %v2648_v51, %v2699_v61  ;;  %v2703_v62 = vadd.f32 %v2702_v9, %v8706_v22  ;;  %v2704_v41 = vpop.f32.mrb[27].mxu1  ;;  %v2857_v21 = vpop.f32.mrb[27].mxu0 }
 0x2c5   : > { %v3037_v42 = vcombine.low %v2650_v2, %v2701_v40  ;;  %v3038_v10 = vcombine.high %v2650_v2, %v2701_v40  ;;  %v2705_v46 = vadd.f32 %v2704_v41, %v8714_v12  ;;  %v2658_v41 = vadd.f32 %v8685_v56, %v8690_v43 }
 0x2c6   : > { %v3029_v28 = vrot.slane %v3021_v3, %v8114_v19  ;;  %v8743_v34 = vrot.slane %v3022_v57, %v8114_v19  ;;  %v3293_v24 = vcombine.low %v2652_v1, %v2703_v62  ;;  %v3294_v33 = vcombine.high %v2652_v1, %v2703_v62 }
 0x2c7   : > { %v3045_v29 = vrot.slane %v3037_v42, %v8114_v19  ;;  %v8747_v63 = vrot.slane %v3038_v10, %v8114_v19  ;;  %v3309_v26 = vcombine.low %v2654_v5, %v2705_v46  ;;  %v3310_v47 = vcombine.high %v2654_v5, %v2705_v46 }
 0x2c8   : > { %v8750_v54 = vrot.slane %v3293_v24, %v8114_v19  ;;  %v8753_v0 = vrot.slane %v3294_v33, %v8114_v19  ;;  %v8775_v3 = vcombine.low %v8733_v45, %v8733_v45  ;;  %v8777_v62 = vadd.f32 %v4023_v37, %v3981_v49 }
 0x2c9   : > { %v3085_v60 = vcombine.low %v3029_v28, %v3045_v29  ;;  %v3086_v39 = vcombine.high %v3029_v28, %v3045_v29  ;;  %v3101_v51 = vcombine.low %v8743_v34, %v8747_v63  ;;  %v3102_v61 = vcombine.high %v8743_v34, %v8747_v63  ;;  %v2708_v8 = vpop.f32.mrb[28].mxu1  ;;  %v2861_v2 = vpop.f32.mrb[28].mxu0 }
 0x2ca   : > { %v8767_v40 = vrot.slane %v3309_v26, %v8114_v19  ;;  %v8770_v9 = vrot.slane %v3310_v47, %v8114_v19  ;;  %v2709_v1 = vadd.f32 %v2708_v8, %v8695_v55  ;;  %v2710_v11 = vpop.f32.mrb[29].mxu1  ;;  %10324 = vst [vmem:[#allocation22_spill] sm:$0xff] %v8775_v3  ;;  %v2863_v57 = vpop.f32.mrb[29].mxu0  ;;  %10325 = vst [vmem:[#allocation23_spill] sm:$0xff] %v8777_v62 }
 0x2cb   : > { %v2712_v5 = vpop.f32.mrb[30].mxu1  ;;  %v8783_v42 = vcombine.high %v8733_v45, %v8733_v45  ;;  %v8787_v10 = vcombine.high %v8733_v45, %v7820_v59  ;;  %v2865_v46 = vpop.f32.mrb[30].mxu0  ;;  %v8797_v29 = vadd.f32 %v4023_v37, %v3982_v16  ;;  %v2660_v63 = vadd.f32 %v8692_v53, %v8725_v50 }
 0x2cc   : > { %v3357_v28 = vcombine.low %v8750_v54, %v8767_v40  ;;  %v3358_v49 = vcombine.high %v8750_v54, %v8767_v40  ;;  %v3373_v34 = vcombine.low %v8753_v0, %v8770_v9  ;;  %v3374_v56 = vcombine.high %v8753_v0, %v8770_v9  ;;  %v2713_v24 = vpop.f32.mrb[31].mxu1  ;;  %v2866_v33 = vpop.f32.mrb[31].mxu0 }
 0x2cd   : > { %10326 = vst [vmem:[#allocation24_spill] sm:$0xff] %v8783_v42  ;;  %10327 = vst [vmem:[#allocation25_spill] sm:$0xff] %v8787_v10  ;;  %v3565_v26 = vcombine.low %v2658_v41, %v2709_v1  ;;  %v2711_v47 = vadd.f32 %v2710_v11, %v8757_v25  ;;  %v2750_v8 = vadd.f32 %v8670_v7, %v8775_v3 }
 0x2ce   : > { %10328 = vst [vmem:[#allocation26_spill] sm:$0xff] %v8797_v29  ;;  %v8806_v54 = vcombine.low %v8760_v17, %v8760_v17  ;;  %v8810_v0 = vcombine.high %v8760_v17, %v8760_v17  ;;  %v8814_v16 = vcombine.high %v8760_v17, %v7820_v59  ;;  %v2752_v40 = vadd.f32 %v8673_v15, %v8783_v42 }
 0x2cf   : > { %v8817_v53 = vrot.slane %v3565_v26, %v8114_v19  ;;  %v3573_v37 = vcombine.low %v2660_v63, %v2711_v47  ;;  %v8823_v7 = vadd.f32 %v8675_v30, %v8775_v3  ;;  %v8827_v9 = vadd.f32 %v8677_v27, %v8783_v42 }
 0x2d0   : > { %10329 = vst [vmem:[#allocation27_spill] sm:$0xff] %v8806_v54  ;;  %10330 = vst [vmem:[#allocation28_spill] sm:$0xff] %v8810_v0  ;;  %v8831_v1 = vadd.f32 %v8687_v36, %v8733_v45  ;;  %v8835_v59 = vadd.f32 %v8697_v13, %v8787_v10  ;;  %v8839_v11 = vadd.f32 %v8719_v18, %v8702_v14 }
 0x2d1   : > { %10331 = vst [vmem:[#allocation29_spill] sm:$0xff] %v8814_v16  ;;  %v8842_v15 = vrot.slane %v3573_v37, %v8114_v19  ;;  %v2800_v30 = vpop.f32.mrb[32].mxu1  ;;  %v8846_v27 = vadd.f32 %v8728_v6, %v8710_v52  ;;  %v8850_v36 = vadd.f32 %v8735_v48, %v8702_v14  ;;  %v8853_v41 = vadd.f32 %v2857_v21, %v8710_v52  ;;  %v2953_v13 = vpop.f32.mrb[32].mxu0 }
 0x2d2   : > { %v8856_v5 = vrot.slane %v3085_v60, %v8116_v20  ;;  %v8859_v18 = vrot.slane %v3086_v39, %v8116_v20  ;;  %v2801_v46 = vadd.f32 %v2800_v30, %v8806_v54  ;;  %v2802_v24 = vpop.f32.mrb[33].mxu1  ;;  %v8863_v6 = vadd.f32 %v2861_v2, %v8690_v43  ;;  %v2955_v33 = vpop.f32.mrb[33].mxu0 }
 0x2d3   : > { %v8866_v48 = vrot.slane %v3101_v51, %v8116_v20  ;;  %v2803_v63 = vadd.f32 %v2802_v24, %v8810_v0  ;;  %v2804_v39 = vpop.f32.mrb[34].mxu1  ;;  %v8873_v26 = vpop.f32.mrb[34].mxu0  ;;  %v8876_v47 = vrot.slane %v3102_v61, %v8116_v20  ;;  %v8882_v21 = vrot.slane %v3357_v28, %v8116_v20 }
 0x2d4   : > { %v3053_v2 = vcombine.low %v2750_v8, %v2801_v46  ;;  %v3054_v37 = vcombine.high %v2750_v8, %v2801_v46  ;;  %v2805_v30 = vadd.f32 %v2804_v39, %v8806_v54  ;;  %v2806_v51 = vpop.f32.mrb[35].mxu1  ;;  %v8879_v4 = vpop.f32.mrb[35].mxu0  ;;  %v8885_v24 = vadd.f32 %v2863_v57, %v8725_v50 }
 0x2d5   : > { %v3069_v43 = vcombine.low %v2752_v40, %v2803_v63  ;;  %v3070_v60 = vcombine.high %v2752_v40, %v2803_v63  ;;  %v8892_v46 = vrot.slane %v3358_v49, %v8116_v20  ;;  %v2807_v40 = vadd.f32 %v2806_v51, %v8810_v0 }
 0x2d6   : > { %v3061_v52 = vrot.slane %v3053_v2, %v8114_v19  ;;  %v3068_v61 = vrot.slane %v3054_v37, %v8114_v19  ;;  %v3325_v14 = vcombine.low %v8823_v7, %v2805_v30  ;;  %v3326_v8 = vcombine.high %v8823_v7, %v2805_v30 }
 0x2d7   : > { %v3077_v39 = vrot.slane %v3069_v43, %v8114_v19  ;;  %v3084_v28 = vrot.slane %v3070_v60, %v8114_v19  ;;  %v8898_v57 = vrot.slane %v3373_v34, %v8116_v20  ;;  %v8901_v63 = vrot.slane %v3374_v56, %v8116_v20 }
 0x2d8   : > { %v8904_v2 = vadd.f32 %v2953_v13, %v8775_v3  ;;  %v8907_v7 = vadd.f32 %v2955_v33, %v8783_v42  ;;  %v3333_v51 = vrot.slane %v3325_v14, %v8114_v19  ;;  %v3341_v34 = vcombine.low %v8827_v9, %v2807_v40 }
 0x2d9   : > { %v3117_v49 = vcombine.low %v3061_v52, %v3077_v39  ;;  %v3118_v37 = vcombine.high %v3061_v52, %v3077_v39  ;;  %v3133_v43 = vcombine.low %v3068_v61, %v3084_v28  ;;  %v3134_v30 = vcombine.high %v3068_v61, %v3084_v28  ;;  %v2810_v60 = vpop.f32.mrb[36].mxu1  ;;  %v8909_v50 = vpop.f32.mrb[36].mxu0 }
 0x2da   : > { %v3342_v56 = vcombine.high %v8827_v9, %v2807_v40  ;;  %v2811_v23 = vadd.f32 %v2810_v60, %v8760_v17  ;;  %v2812_v13 = vpop.f32.mrb[37].mxu1  ;;  %v8915_v38 = vpop.f32.mrb[37].mxu0  ;;  %v3340_v14 = vrot.slane %v3326_v8, %v8114_v19  ;;  %v3349_v58 = vrot.slane %v3341_v34, %v8114_v19 }
 0x2db   : > { %v3125_v33 = vrot.slane %v3117_v49, %v8116_v20  ;;  %v3132_v52 = vrot.slane %v3118_v37, %v8116_v20  ;;  %v3141_v61 = vrot.slane %v3133_v43, %v8116_v20  ;;  %v3148_v39 = vrot.slane %v3134_v30, %v8116_v20  ;;  %v2814_v28 = vpop.f32.mrb[38].mxu1  ;;  %v2967_v44 = vpop.f32.mrb[38].mxu0 }
 0x2dc   : > { %v3356_v9 = vrot.slane %v3342_v56, %v8114_v19  ;;  %v3581_v40 = vcombine.low %v8831_v1, %v2811_v23  ;;  %v2815_v60 = vpop.f32.mrb[39].mxu1  ;;  %v2968_v32 = vpop.f32.mrb[39].mxu0 }
 0x2dd   : > { %v3149_v49 = vcombine.low %v8856_v5, %v3125_v33  ;;  %v3150_v37 = vcombine.high %v8856_v5, %v3125_v33  ;;  %v3151_v43 = vcombine.low %v8859_v18, %v3132_v52  ;;  %v3152_v30 = vcombine.high %v8859_v18, %v3132_v52 }
 0x2de   : > { %v3153_v44 = vcombine.low %v8866_v48, %v3141_v61  ;;  %v3154_v8 = vcombine.high %v8866_v48, %v3141_v61  ;;  %v3155_v34 = vcombine.low %v8876_v47, %v3148_v39  ;;  %v3156_v56 = vcombine.high %v8876_v47, %v3148_v39 }
 0x2df   : > { %v8933_v28 = vrot.slane %v3149_v49, 6  ;;  %v8935_v23 = vrot.slane %v3150_v37, 6  ;;  %v8937_v32 = vrot.slane %v3151_v43, 6  ;;  %v8939_v1 = vrot.slane %v3152_v30, 6 }
 0x2e0   : > { %v10335_v5 = vcombine.low %v8817_v53, %v8842_v15  ;;  %v10336_v48 = vcombine.high %v8817_v53, %v8842_v15  ;;  %v2813_v47 = vadd.f32 %v2812_v13, %v8814_v16  ;;  %v8956_v52 = vadd.f32 %v8873_v26, %v8775_v3 }
 0x2e1   : > { %10332 = vst [vmem:[#allocation30_spill] sm:$0xff] %v8935_v23  ;;  %10333 = vst [vmem:[#allocation31_spill] sm:$0xff] %v8937_v32  ;;  %v8958_v61 = vrot.slane %v3153_v44, 7  ;;  %v8960_v39 = vrot.slane %v3154_v8, 7  ;;  %v8962_v60 = vrot.slane %v3155_v34, 7  ;;  %v8964_v49 = vrot.slane %v3156_v56, 7 }
 0x2e2   : > { %10334 = vst [vmem:[#allocation32_spill] sm:$0xff] %v8939_v1  ;;  %v8945_v18 = vrot.slane %v10335_v5, %v8116_v20  ;;  %v8951_v33 = vrot.slane %v10336_v48, %v8116_v20  ;;  %v2902_v37 = vpop.f32.mrb[40].mxu1  ;;  %v3730_v53 = vsel %vm3709_vm7, 0.0, %v8933_v28  ;;  %v3731_v15 = vsel %vm3709_vm7, 0.0, %v8935_v23 }
 0x2e3   : > { %10337 = vst [vmem:[#allocation33_spill] sm:$0xff] %v8964_v49  ;;  %v3732_v13 = vsel %vm3709_vm7, 0.0, %v8937_v32  ;;  %v3733_v26 = vsel %vm3709_vm7, 0.0, %v8939_v1  ;;  %v2904_v43 = vpop.f32.mrb[41].mxu1  ;;  %v3389_v30 = vcombine.low %v3333_v51, %v3349_v58  ;;  %v3390_v44 = vcombine.high %v3333_v51, %v3349_v58 }
 0x2e4   : > { %v3405_v8 = vcombine.low %v3340_v14, %v3356_v9  ;;  %v3406_v34 = vcombine.high %v3340_v14, %v3356_v9  ;;  %v2906_v56 = vpop.f32.mrb[42].mxu1  ;;  %v3588_v5 = vrot.slane %v3581_v40, %v8114_v19  ;;  %v3589_v48 = vcombine.low %v8835_v59, %v2813_v47 }
 0x2e5   : > { %v2903_v3 = vadd.f32 %v2902_v37, %v8706_v22  ;;  %v2905_v35 = vadd.f32 %v2904_v43, %v8714_v12  ;;  %v2908_v31 = vpop.f32.mrb[43].mxu1  ;;  %v3397_v29 = vrot.slane %v3389_v30, %v8116_v20  ;;  %v3404_v62 = vrot.slane %v3390_v44, %v8116_v20 }
 0x2e6   : > { %v3413_v1 = vrot.slane %v3405_v8, %v8116_v20  ;;  %v3420_v58 = vrot.slane %v3406_v34, %v8116_v20  ;;  %v3596_v51 = vrot.slane %v3589_v48, %v8114_v19 }
 0x2e7   : > { %v3157_v14 = vcombine.low %v8839_v11, %v2903_v3  ;;  %v3158_v9 = vcombine.high %v8839_v11, %v2903_v3  ;;  %v3173_v59 = vcombine.low %v8846_v27, %v2905_v35  ;;  %v3421_v40 = vcombine.low %v8882_v21, %v3397_v29 }
 0x2e8   : > { %v3422_v47 = vcombine.high %v8882_v21, %v3397_v29  ;;  %v3423_v37 = vcombine.low %v8892_v46, %v3404_v62  ;;  %v3424_v43 = vcombine.high %v8892_v46, %v3404_v62  ;;  %v3425_v30 = vcombine.low %v8898_v57, %v3413_v1 }
 0x2e9   : > { %v3426_v44 = vcombine.high %v8898_v57, %v3413_v1  ;;  %v3427_v8 = vcombine.low %v8901_v63, %v3420_v58  ;;  %v3428_v34 = vcombine.high %v8901_v63, %v3420_v58  ;;  %v3734_v48 = vadd.f32 %v3730_v53, %v3421_v40  ;;  %v2912_v23 = vpop.f32.mrb[44].mxu1 }
 0x2ea   : > { %v3736_v3 = vadd.f32 %v3731_v15, %v3422_v47  ;;  %v3738_v11 = vadd.f32 %v3732_v13, %v3423_v37  ;;  %v3740_v32 = vadd.f32 %v3733_v26, %v3424_v43  ;;  %v3770_v29 = vsel %vm1148_vm2, 0.0, %v8958_v61  ;;  %v2914_v57 = vpop.f32.mrb[45].mxu1 }
 0x2eb   : > { %v3771_v21 = vsel %vm1148_vm2, 0.0, %v8960_v39  ;;  %v3772_v62 = vsel %vm1148_vm2, 0.0, %v8962_v60  ;;  %v3773_v46 = vsel %vm1148_vm2, 0.0, %v8964_v49  ;;  %v9002_v1 = vadd.f32 %v3770_v29, %v3734_v48  ;;  %v2916_v13 = vpop.f32.mrb[46].mxu1 }
 0x2ec   : > { %v9004_v63 = vadd.f32 %v3771_v21, %v3736_v3  ;;  %v9006_v53 = vadd.f32 %v3772_v62, %v3738_v11  ;;  %v9008_v15 = vadd.f32 %v3773_v46, %v3740_v32  ;;  %v3613_v26 = vcombine.low %v3588_v5, %v3596_v51  ;;  %v2917_v37 = vpop.f32.mrb[47].mxu1 }
 0x2ed   : > { %v3614_v58 = vcombine.high %v3588_v5, %v3596_v51  ;;  %v3165_v40 = vrot.slane %v3157_v14, %v8114_v19  ;;  %v3172_v47 = vrot.slane %v3158_v9, %v8114_v19  ;;  %v3174_v43 = vcombine.high %v8846_v27, %v2905_v35 }
 0x2ee   : > { %v3181_v49 = vrot.slane %v3173_v59, %v8114_v19  ;;  %v2907_v48 = vadd.f32 %v2906_v56, %v8706_v22  ;;  %v2909_v3 = vadd.f32 %v2908_v31, %v8714_v12  ;;  %v9017_v11 = vrot.slane %v3613_v26, %v8116_v20 }
 0x2ef   : > { %v9020_v32 = vrot.slane %v3614_v58, %v8116_v20  ;;  %v2913_v5 = vadd.f32 %v2912_v23, %v8695_v55  ;;  %v2915_v51 = vadd.f32 %v2914_v57, %v8757_v25  ;;  %v3188_v14 = vrot.slane %v3174_v43, %v8114_v19 }
 0x2f0   : > { %v3221_v9 = vcombine.low %v3165_v40, %v3181_v49  ;;  %v3222_v35 = vcombine.high %v3165_v40, %v3181_v49  ;;  %v3429_v27 = vcombine.low %v8850_v36, %v2907_v48  ;;  %v9036_v62 = vadd.f32 %v8879_v4, %v8783_v42 }
 0x2f1   : > { %v3237_v29 = vcombine.low %v3172_v47, %v3188_v14  ;;  %v3238_v21 = vcombine.high %v3172_v47, %v3188_v14  ;;  %v3004_v49 = vpop.f32.mrb[48].mxu1  ;;  %v9040_v46 = vadd.f32 %v8909_v50, %v8733_v45  ;;  %v9042_v57 = vrot.slane %v3425_v30, 1 }
 0x2f2   : > { %v9044_v13 = vrot.slane %v3426_v44, 1  ;;  %v9046_v26 = vrot.slane %v3427_v8, 1  ;;  %v9048_v58 = vrot.slane %v3428_v34, 1  ;;  %v3006_v40 = vpop.f32.mrb[49].mxu1  ;;  %v9051_v47 = vrot.slane %v3221_v9, %v8116_v20 }
 0x2f3   : > { %v9054_v4 = vrot.slane %v3222_v35, %v8116_v20  ;;  %v3430_v37 = vcombine.high %v8850_v36, %v2907_v48  ;;  %v3437_v50 = vrot.slane %v3429_v27, %v8114_v19  ;;  %v3008_v43 = vpop.f32.mrb[50].mxu1  ;;  %v3445_v30 = vcombine.low %v8853_v41, %v2909_v3 }
 0x2f4   : > { %v3446_v44 = vcombine.high %v8853_v41, %v2909_v3  ;;  %v3633_v8 = vcombine.low %v8863_v6, %v2913_v5  ;;  %v3641_v34 = vcombine.low %v8885_v24, %v2915_v51  ;;  %v3010_v14 = vpop.f32.mrb[51].mxu1  ;;  %v3005_v23 = vadd.f32 %v3004_v49, %v8806_v54 }
 0x2f5   : > { %v3444_v9 = vrot.slane %v3430_v37, %v8114_v19  ;;  %v3007_v35 = vadd.f32 %v3006_v40, %v8810_v0  ;;  %v3009_v36 = vadd.f32 %v3008_v43, %v8806_v54  ;;  %v3453_v48 = vrot.slane %v3445_v30, %v8114_v19 }
 0x2f6   : > { %v3460_v27 = vrot.slane %v3446_v44, %v8114_v19  ;;  %v9069_v59 = vrot.slane %v3633_v8, %v8114_v19  ;;  %v9072_v41 = vrot.slane %v3641_v34, %v8114_v19  ;;  %v3189_v6 = vcombine.low %v8904_v2, %v3005_v23 }
 0x2f7   : > { %v3190_v24 = vcombine.high %v8904_v2, %v3005_v23  ;;  %v3205_v3 = vcombine.low %v8907_v7, %v3007_v35  ;;  %v3206_v5 = vcombine.high %v8907_v7, %v3007_v35  ;;  %v3493_v51 = vcombine.low %v3437_v50, %v3453_v48 }
 0x2f8   : > { %v3494_v49 = vcombine.high %v3437_v50, %v3453_v48  ;;  %v3509_v40 = vcombine.low %v3444_v9, %v3460_v27  ;;  %v3510_v37 = vcombine.high %v3444_v9, %v3460_v27  ;;  %v3197_v44 = vrot.slane %v3189_v6, %v8114_v19 }
 0x2f9   : > { %v3204_v8 = vrot.slane %v3190_v24, %v8114_v19  ;;  %v3014_v34 = vpop.f32.mrb[52].mxu1  ;;  %v3245_v2 = vrot.slane %v3237_v29, %v8116_v20  ;;  %v3252_v23 = vrot.slane %v3238_v21, %v8116_v20  ;;  %v9087_v7 = vrot.slane %v3493_v51, %v8116_v20 }
 0x2fa   : > { %v9090_v50 = vrot.slane %v3494_v49, %v8116_v20  ;;  %v3016_v9 = vpop.f32.mrb[53].mxu1  ;;  %v9093_v35 = vrot.slane %v3509_v40, %v8116_v20  ;;  %v9096_v48 = vrot.slane %v3510_v37, %v8116_v20  ;;  %v3213_v27 = vrot.slane %v3205_v3, %v8114_v19 }
 0x2fb   : > { %v3220_v6 = vrot.slane %v3206_v5, %v8114_v19  ;;  %v3018_v29 = vpop.f32.mrb[54].mxu1  ;;  %v3461_v21 = vcombine.low %v8956_v52, %v3009_v36  ;;  %v3462_v24 = vcombine.high %v8956_v52, %v3009_v36  ;;  %v3011_v51 = vadd.f32 %v3010_v14, %v8810_v0 }
 0x2fc   : > { %v9105_v49 = vadd.f32 %v8915_v38, %v8787_v10  ;;  %v3019_v40 = vpop.f32.mrb[55].mxu1  ;;  %v3253_v31 = vcombine.low %v3197_v44, %v3213_v27  ;;  %v3254_v56 = vcombine.high %v3197_v44, %v3213_v27  ;;  %v9118_v27 = vadd.f32 %v3014_v34, %v8760_v17 }
 0x2fd   : > { %v3269_v37 = vcombine.low %v3204_v8, %v3220_v6  ;;  %v3270_v30 = vcombine.high %v3204_v8, %v3220_v6  ;;  %v3469_v3 = vrot.slane %v3461_v21, %v8114_v19  ;;  %v3476_v5 = vrot.slane %v3462_v24, %v8114_v19 }
 0x2fe   : > { %v3477_v29 = vcombine.low %v9036_v62, %v3011_v51  ;;  %v3478_v43 = vcombine.high %v9036_v62, %v3011_v51  ;;  %v3261_v52 = vrot.slane %v3253_v31, %v8116_v20  ;;  %v3268_v14 = vrot.slane %v3254_v56, %v8116_v20 }
 0x2ff   : > { %v3277_v38 = vrot.slane %v3269_v37, %v8116_v20  ;;  %v3284_v36 = vrot.slane %v3270_v30, %v8116_v20  ;;  %v9121_v6 = vadd.f32 %v3016_v9, %v8814_v16 }
 0x300   : > { %v3485_v44 = vrot.slane %v3477_v29, %v8114_v19  ;;  %v3492_v8 = vrot.slane %v3478_v43, %v8114_v19  ;;  %v3285_v62 = vcombine.low %v9051_v47, %v3261_v52  ;;  %v3286_v31 = vcombine.high %v9051_v47, %v3261_v52 }
 0x301   : > { %v3287_v56 = vcombine.low %v9054_v4, %v3268_v14  ;;  %v3288_v21 = vcombine.high %v9054_v4, %v3268_v14  ;;  %v3289_v24 = vcombine.low %v3245_v2, %v3277_v38  ;;  %v3290_v30 = vcombine.high %v3245_v2, %v3277_v38  ;;  %v10338_v14 = vld [vmem:[#allocation30_spill] sm:$0xff] }
 0x302   : > { %v3291_v51 = vcombine.low %v3252_v23, %v3284_v36  ;;  %v3292_v40 = vcombine.high %v3252_v23, %v3284_v36  ;;  %v3711_v37 = vrot.slane %v3285_v62, 6  ;;  %v3714_v43 = vrot.slane %v3286_v31, 6  ;;  %v10339_v23 = vld [vmem:[#allocation31_spill] sm:$0xff]  ;;  %v10340_v36 = vld [vmem:[#allocation32_spill] sm:$0xff] }
 0x303   : > { %v3717_v29 = vrot.slane %v3287_v56, 6  ;;  %v3720_v34 = vrot.slane %v3288_v21, 6  ;;  %v3751_v10 = vrot.slane %v3289_v24, 7  ;;  %v3754_v9 = vrot.slane %v3290_v30, 7  ;;  %v10341_v21 = vld [vmem:[#allocation33_spill] sm:$0xff] }
 0x304   : > { %v3757_v16 = vrot.slane %v3291_v51, 7  ;;  %v3760_v17 = vrot.slane %v3292_v40, 7  ;;  %v3525_v45 = vcombine.low %v3469_v3, %v3485_v44  ;;  %v3526_v0 = vcombine.high %v3469_v3, %v3485_v44 }
 0x305   : > { %v3541_v47 = vcombine.low %v3476_v5, %v3492_v8  ;;  %v3542_v52 = vcombine.high %v3476_v5, %v3492_v8  ;;  %v3712_v4 = vsel %vm3709_vm7, %v8933_v28, %v3711_v37  ;;  %v3715_v2 = vsel %vm3709_vm7, %v10338_v14, %v3714_v43 }
 0x306   : > { %v3718_v38 = vsel %vm3709_vm7, %v10339_v23, %v3717_v29  ;;  %v3721_v62 = vsel %vm3709_vm7, %v10340_v36, %v3720_v34  ;;  %v3533_v31 = vrot.slane %v3525_v45, %v8116_v20  ;;  %v3540_v56 = vrot.slane %v3526_v0, %v8116_v20 }
 0x307   : > { %v3549_v3 = vrot.slane %v3541_v47, %v8116_v20  ;;  %v3556_v5 = vrot.slane %v3542_v52, %v8116_v20  ;;  %v3752_v28 = vsel %vm1148_vm2, %v8958_v61, %v3751_v10  ;;  %v3755_v44 = vsel %vm1148_vm2, %v8960_v39, %v3754_v9 }
 0x308   : > { %v3758_v8 = vsel %vm1148_vm2, %v8962_v60, %v3757_v16  ;;  %v3761_v24 = vsel %vm1148_vm2, %v10341_v21, %v3760_v17  ;;  %v3557_v45 = vcombine.low %v9087_v7, %v3533_v31  ;;  %v3558_v0 = vcombine.high %v9087_v7, %v3533_v31 }
 0x309   : > { %v3559_v30 = vcombine.low %v9090_v50, %v3540_v56  ;;  %v3560_v51 = vcombine.high %v9090_v50, %v3540_v56  ;;  %v3561_v40 = vcombine.low %v9093_v35, %v3549_v3  ;;  %v3562_v10 = vcombine.high %v9093_v35, %v3549_v3 }
 0x30a   : > { %v3563_v61 = vcombine.low %v9096_v48, %v3556_v5  ;;  %v3564_v39 = vcombine.high %v9096_v48, %v3556_v5  ;;  %v3735_v16 = vadd.f32 %v3712_v4, %v3557_v45  ;;  %v3737_v60 = vadd.f32 %v3715_v2, %v3558_v0 }
 0x30b   : > { %v3739_v37 = vadd.f32 %v3718_v38, %v3559_v30  ;;  %v3741_v17 = vadd.f32 %v3721_v62, %v3560_v51  ;;  %v3792_v43 = vrot.slane %v3561_v40, 1  ;;  %v3795_v29 = vrot.slane %v3562_v10, 1 }
 0x30c   : > { %v3798_v34 = vrot.slane %v3563_v61, 1  ;;  %v3801_v7 = vrot.slane %v3564_v39, 1  ;;  %v3775_v9 = vadd.f32 %v3752_v28, %v3735_v16  ;;  %v3777_v47 = vadd.f32 %v3755_v44, %v3737_v60  ;;  %v9175_v44 = vpop.permute.xlu0 %3978 }
 0x30d   : > { %v3779_v52 = vadd.f32 %v3758_v8, %v3739_v37  ;;  %v3781_v50 = vadd.f32 %v3761_v24, %v3741_v17  ;;  %v3793_v14 = vsel %vm3790_vm8, %v9042_v57, %v3792_v43  ;;  %v3796_v35 = vsel %vm3790_vm8, %v9044_v13, %v3795_v29  ;;  %v10343_v24 = vld [vmem:[#allocation26_spill] sm:$0xff] }
 0x30e   : > { %v3799_v48 = vsel %vm3790_vm8, %v9046_v26, %v3798_v34  ;;  %v3802_v4 = vsel %vm3790_vm8, %v9048_v58, %v3801_v7  ;;  %v3811_v2 = vsel %vm3790_vm8, %v3792_v43, 0.0  ;;  %v3812_v23 = vsel %vm3790_vm8, %v3795_v29, 0.0 }
 0x30f   : > { %v3813_v38 = vsel %vm3790_vm8, %v3798_v34, 0.0  ;;  %v3814_v36 = vsel %vm3790_vm8, %v3801_v7, 0.0  ;;  %v3815_v62 = vadd.f32 %v3793_v14, %v9002_v1  ;;  %v3816_v57 = vadd.f32 %v3811_v2, %v3775_v9 }
 0x310   : > { %v3817_v31 = vadd.f32 %v3796_v35, %v9004_v63  ;;  %v3818_v13 = vadd.f32 %v3812_v23, %v3777_v47  ;;  %v3819_v56 = vadd.f32 %v3799_v48, %v9006_v53  ;;  %v3820_v26 = vadd.f32 %v3813_v38, %v3779_v52  ;;  %v10342_v63 = vld [vmem:[#allocation23_spill] sm:$0xff]  ;;  %v3975_v10 = vpop.permute.xlu0 %3974  ;;  %v4039_v38 = vpop.permute.xlu1 %4038 }
 0x311   : > { %v3821_v3 = vadd.f32 %v3802_v4, %v9008_v15  ;;  %v3822_v58 = vadd.f32 %v3814_v36, %v3781_v50  ;;  %v3649_v5 = vcombine.low %v9040_v46, %v9118_v27  ;;  %v3657_v28 = vcombine.low %v9105_v49, %v9121_v6 }
 0x312   : > { %v4061_v21 = vmul.f32 0.01, %v10342_v63  ;;  %v4062_v53 = vmul.f32 0.01, %v10343_v24  ;;  %vm4051_vm9 = vcmp.ge.f32.partialorder %v10342_v63, 0.0  ;;  %vm4052_vm10 = vcmp.ge.f32.partialorder %v10343_v24, 0.0 }
 0x313   : > { %v3656_v1 = vrot.slane %v3649_v5, %v8114_v19  ;;  %v3664_v8 = vrot.slane %v3657_v28, %v8114_v19  ;;  %v10344_v46 = vcombine.low %v9069_v59, %v9072_v41  ;;  %v10345_v27 = vcombine.high %v9069_v59, %v9072_v41 }
 0x314   : > { %v4071_v51 = vsel %vm4051_vm9, %v10342_v63, %v4061_v21  ;;  %v4072_v40 = vsel %vm4052_vm10, %v10343_v24, %v4062_v53  ;;  %v10346_v37 = vcombine.low %v8945_v18, %v9017_v11  ;;  %v10347_v59 = vcombine.high %v8945_v18, %v9017_v11  ;;  %v4027_v4 = vpop.permute.xlu0 %4026  ;;  %v10350_v53 = vld [vmem:[#allocation7_spill] sm:$0xff] }
 0x315   : > { %v3681_v15 = vcombine.low %v3656_v1, %v3664_v8  ;;  %v3682_v45 = vcombine.high %v3656_v1, %v3664_v8  ;;  %v3673_v49 = vrot.slane %v10344_v46, %v8116_v20  ;;  %v3680_v6 = vrot.slane %v10345_v27, %v8116_v20  ;;  %v10351_v46 = vld [vmem:[#allocation9_spill] sm:$0xff] }
 0x316   : > { %v3832_v17 = vrot.slane %v10346_v37, 2  ;;  %v3835_v41 = vrot.slane %v10347_v59, 2  ;;  %v10348_v43 = vcombine.low %v8951_v33, %v9020_v32  ;;  %v10349_v34 = vcombine.high %v8951_v33, %v9020_v32  ;;  %v4035_v37 = vpop.permute.xlu1 %4034 }
 0x317   : > { %v3689_v0 = vrot.slane %v3681_v15, %v8116_v20  ;;  %v3696_v30 = vrot.slane %v3682_v45, %v8116_v20  ;;  %v9207_v14 = vpack.c.bf16 %v4072_v40, %v4071_v51  ;;  %vm4681_vm9 = vcmask 39936  }
 0x318   : > { %v3838_v29 = vrot.slane %v10348_v43, 2  ;;  %v3841_v7 = vrot.slane %v10349_v34, 2  ;;  %v4031_v40 = vpop.permute.xlu0 %4030 }
 0x319   : > { %v3697_v61 = vcombine.low %v3673_v49, %v3689_v0  ;;  %v3698_v39 = vcombine.high %v3673_v49, %v3689_v0  ;;  %v3699_v16 = vcombine.low %v3680_v6, %v3696_v30  ;;  %v3700_v60 = vcombine.high %v3680_v6, %v3696_v30  ;;  %v10361_v0 = vld [vmem:[#allocation17_spill] sm:$0xff] }
 0x31b   : > { %v3833_v9 = vrot.slane %v3697_v61, 2  ;;  %v3836_v47 = vrot.slane %v3698_v39, 2  ;;  %v3839_v52 = vrot.slane %v3699_v16, 2  ;;  %v3842_v50 = vrot.slane %v3700_v60, 2 }
 0x31d   : > { %v3834_v35 = vsel %vm3831_vm11, %v3832_v17, %v3833_v9  ;;  %v3837_v48 = vsel %vm3831_vm11, %v3835_v41, %v3836_v47  ;;  %v3840_v18 = vsel %vm3831_vm11, %v3838_v29, %v3839_v52  ;;  %v3843_v11 = vsel %vm3831_vm11, %v3841_v7, %v3842_v50 }
 0x31e   : > { %v3852_v2 = vsel %vm3831_vm11, %v3833_v9, 0.0  ;;  %v3853_v33 = vsel %vm3831_vm11, %v3836_v47, 0.0  ;;  %v3854_v32 = vsel %vm3831_vm11, %v3839_v52, 0.0  ;;  %v3855_v23 = vsel %vm3831_vm11, %v3842_v50, 0.0 }
 0x31f   : > { %v3856_v36 = vadd.f32 %v3834_v35, %v3815_v62  ;;  %v3857_v5 = vadd.f32 %v3852_v2, %v3816_v57  ;;  %v3858_v28 = vadd.f32 %v3837_v48, %v3817_v31  ;;  %v3859_v1 = vadd.f32 %v3853_v33, %v3818_v13  ;;  %v10354_v62 = vld [vmem:[#allocation8_spill] sm:$0xff]  ;;  %v10357_v13 = vld [vmem:[#allocation6_spill] sm:$0xff] }
 0x320   : > { %v3860_v8 = vadd.f32 %v3840_v18, %v3819_v56  ;;  %v3861_v63 = vadd.f32 %v3854_v32, %v3820_v26  ;;  %v3862_v21 = vadd.f32 %v3843_v11, %v3821_v3  ;;  %v3863_v24 = vadd.f32 %v3855_v23, %v3822_v58  ;;  %v10360_v3 = vld [vmem:[#allocation10_spill] sm:$0xff] }
 0x321   : > { %v9218_v15 = vadd.f32 %v10350_v53, %v3856_v36  ;;  %v9221_v45 = vadd.f32 %v10350_v53, %v3857_v5  ;;  %v9224_v49 = vadd.f32 %v10351_v46, %v3858_v28  ;;  %v9227_v27 = vadd.f32 %v10351_v46, %v3859_v1 }
 0x322   : > { %v9230_v57 = vadd.f32 %v10354_v62, %v3860_v8  ;;  %v9233_v31 = vadd.f32 %v10354_v62, %v3861_v63  ;;  %v9236_v56 = vadd.f32 %v10357_v13, %v3862_v21  ;;  %v9239_v26 = vadd.f32 %v10357_v13, %v3863_v24 }
 0x323   : > { %10352 = vst [vmem:[#allocation30_spill] sm:$0xff] %v9224_v49  ;;  %10353 = vst [vmem:[#allocation31_spill] sm:$0xff] %v9227_v27  ;;  %v3983_v58 = vmul.f32 %v10360_v3, %v9218_v15  ;;  %v3984_v6 = vmul.f32 %v10360_v3, %v9221_v45  ;;  %v3985_v30 = vmul.f32 %v10361_v0, %v9224_v49  ;;  %v4252_v46 = vshrl.u32 %v9207_v14, 16 }
 0x324   : > { %10355 = vst [vmem:[#allocation32_spill] sm:$0xff] %v9230_v57  ;;  %10356 = vst [vmem:[#allocation33_spill] sm:$0xff] %v9233_v31  ;;  %v3986_v51 = vmul.f32 %v10361_v0, %v9227_v27  ;;  %v3987_v61 = vmul.f32 %v3975_v10, %v9230_v57  ;;  %v3988_v39 = vmul.f32 %v3975_v10, %v9233_v31 }
 0x325   : > { %10358 = vst [vmem:[#allocation23_spill] sm:$0xff] %v9236_v56  ;;  %10359 = vst [vmem:[#allocation26_spill] sm:$0xff] %v9239_v26  ;;  %v3989_v16 = vmul.f32 %v9175_v44, %v9236_v56  ;;  %v3990_v60 = vmul.f32 %v9175_v44, %v9239_v26  ;;  %v4043_v17 = vadd.f32 %v4027_v4, %v3983_v58 }
 0x326   : > { %v4044_v59 = vadd.f32 %v4027_v4, %v3984_v6  ;;  %v4046_v41 = vadd.f32 %v4031_v40, %v3986_v51  ;;  %v4045_v43 = vadd.f32 %v4031_v40, %v3985_v30  ;;  %v4048_v29 = vadd.f32 %v4035_v37, %v3988_v39 }
 0x327   : > { %v4049_v34 = vadd.f32 %v4039_v38, %v3989_v16  ;;  %v4050_v7 = vadd.f32 %v4039_v38, %v3990_v60  ;;  %v4047_v9 = vadd.f32 %v4035_v37, %v3987_v61  ;;  %vm4053_vm12 = vcmp.ge.f32.partialorder %v4043_v17, 0.0  ;;  %v10363_v37 = vld [vmem:[#allocation5_spill] sm:$0xff] }
 0x328   : > { %vm4054_vm13 = vcmp.ge.f32.partialorder %v4044_v59, 0.0  ;;  %vm4055_vm14 = vcmp.ge.f32.partialorder %v4045_v43, 0.0  ;;  %vm4056_vm15 = vcmp.ge.f32.partialorder %v4046_v41, 0.0  ;;  %vm4058_vm1 = vcmp.ge.f32.partialorder %v4048_v29, 0.0 }
 0x329   : > { %vm4057_vm0 = vcmp.ge.f32.partialorder %v4047_v9, 0.0  ;;  %vm4059_vm3 = vcmp.ge.f32.partialorder %v4049_v34, 0.0  ;;  %vm4060_vm4 = vcmp.ge.f32.partialorder %v4050_v7, 0.0  ;;  %v4063_v10 = vmul.f32 0.01, %v4043_v17 }
 0x32a   : > { %v4064_v47 = vmul.f32 0.01, %v4044_v59  ;;  %v4065_v44 = vmul.f32 0.01, %v4045_v43  ;;  %v4066_v50 = vmul.f32 0.01, %v4046_v41 }
 0x32b   : > { %v4067_v35 = vmul.f32 0.01, %v4047_v9  ;;  %v4068_v48 = vmul.f32 0.01, %v4048_v29  ;;  %v4069_v11 = vmul.f32 0.01, %v4049_v34  ;;  %v4073_v2 = vsel %vm4053_vm12, %v4043_v17, %v4063_v10 }
 0x32c   : > { %v4070_v4 = vmul.f32 0.01, %v4050_v7  ;;  %v4074_v33 = vsel %vm4054_vm13, %v4044_v59, %v4064_v47  ;;  %v4075_v32 = vsel %vm4055_vm14, %v4045_v43, %v4065_v44  ;;  %v4076_v23 = vsel %vm4056_vm15, %v4046_v41, %v4066_v50 }
 0x32d   : > { %v4077_v38 = vsel %vm4057_vm0, %v4047_v9, %v4067_v35  ;;  %v4078_v36 = vsel %vm4058_vm1, %v4048_v29, %v4068_v48  ;;  %v4079_v5 = vsel %vm4059_vm3, %v4049_v34, %v4069_v11  ;;  %v4084_v1 = vpack.c.bf16 %v4074_v33, %v4073_v2 }
 0x32e   : > { %v4080_v28 = vsel %vm4060_vm4, %v4050_v7, %v4070_v4  ;;  %v4085_v8 = vpack.c.bf16 %v4076_v23, %v4075_v32  ;;  %v4086_v63 = vpack.c.bf16 %v4078_v36, %v4077_v38  ;;  %v10362_v30 = vmov 0  }
 0x32f   : > { %v4087_v21 = vpack.c.bf16 %v4080_v28, %v4079_v5  ;;  %v4253_v62 = vshrl.u32 %v4084_v1, 16  ;;  %v4250_v3 = vpack.i.b16 %v4084_v1, %v9207_v14  ;;  %v7821_v35 = vmov 65535  }
 0x330   : > { %v4260_v13 = vshrl.u32 %v4085_v8, 16  ;;  %v4261_v58 = vshrl.u32 %v4086_v63, 16  ;;  %v4258_v0 = vpack.i.b16 %v4086_v63, %v4085_v8  ;;  %v4686_v48 = vsel %vm3709_vm7, 4294967295, %v7821_v35  ;;  %v4190_v35 = vpop.permute.xlu1 %4189 }
 0x331   : > { %v4267_v6 = vshrl.u32 %v4087_v21, 16  ;;  %v4265_v51 = vpack.i.b16 %v10362_v30, %v4087_v21  ;;  %v4254_v40 = vpack.i.b16 %v4253_v62, %v4252_v46  ;;  %v4687_v28 = vsel %vm4685_vm5, %v4686_v48, 0  ;;  %v4186_v48 = vpop.permute.xlu0 %4185 }
 0x332   : > { %v4262_v61 = vpack.i.b16 %v4261_v58, %v4260_v13  ;;  %v4286_v17 = vcombine.high %v4258_v0, %v10363_v37  ;;  %v4293_v43 = vrot.slane %v4258_v0, %v8114_v19  ;;  %v7783_v0 = vld [vmem:[%s10240_s9] sm:$0xff]  }
 0x333   : > { %v4268_v39 = vpack.i.b16 %v10362_v30, %v4267_v6  ;;  %v4270_v16 = vcombine.low %v4250_v3, %v4265_v51  ;;  %v4271_v60 = vcombine.high %v4250_v3, %v4265_v51 }
 0x334   : > { %v4360_v29 = vrot.slane %v4262_v61, %v8114_v19  ;;  %v4353_v34 = vcombine.high %v4262_v61, %v10363_v37  ;;  %v4300_v9 = vrot.slane %v4286_v17, %v8114_v19 }
 0x335   : > { %v4337_v59 = vcombine.low %v4254_v40, %v4268_v39  ;;  %v4278_v41 = vrot.slane %v4270_v16, %v8114_v19  ;;  %v4338_v14 = vcombine.high %v4254_v40, %v4268_v39  ;;  %v9281_v7 = vrot.slane %v4271_v60, %v8114_v19 }
 0x336   : > { %v4367_v11 = vrot.slane %v4353_v34, %v8114_v19 }
 0x337   : > { %v4345_v10 = vrot.slane %v4337_v59, %v8114_v19  ;;  %v4301_v47 = vcombine.low %v4278_v41, %v4293_v43  ;;  %v4302_v44 = vcombine.high %v4278_v41, %v4293_v43  ;;  %v4352_v50 = vrot.slane %v4338_v14, %v8114_v19 }
 0x338   : > { %v4317_v4 = vcombine.low %v9281_v7, %v4300_v9  ;;  %v4318_v2 = vcombine.high %v9281_v7, %v4300_v9 }
 0x339   : > { %v4368_v33 = vcombine.low %v4345_v10, %v4360_v29  ;;  %v4309_v32 = vrot.slane %v4301_v47, %v8116_v20  ;;  %v4369_v23 = vcombine.high %v4345_v10, %v4360_v29  ;;  %v4384_v38 = vcombine.low %v4352_v50, %v4367_v11 }
 0x33a   : > { %v4385_v36 = vcombine.high %v4352_v50, %v4367_v11  ;;  %v4316_v63 = vrot.slane %v4302_v44, %v8116_v20  ;;  %v4325_v17 = vrot.slane %v4317_v4, %v8116_v20  ;;  %v4332_v9 = vrot.slane %v4318_v2, %v8116_v20  ;;  %v4198_v11 = vpop.permute.xlu1 %4197  ;;  %v4194_v4 = vpop.permute.xlu0 %4193 }
 0x33b   : > { %v4376_v5 = vrot.slane %v4368_v33, %v8116_v20  ;;  %v4383_v1 = vrot.slane %v4369_v23, %v8116_v20  ;;  %v4333_v8 = vcombine.high %v4309_v32, %v10362_v30  ;;  %v4392_v62 = vrot.slane %v4384_v38, %v8116_v20 }
 0x33c   : > { %v4689_v13 = vand.u32 %v4687_v28, %v4309_v32  ;;  %v4334_v40 = vcombine.high %v4316_v63, %v10362_v30  ;;  %v4701_v16 = vand.u32 %v4687_v28, %v4316_v63  ;;  %v4399_v41 = vrot.slane %v4385_v36, %v8116_v20 }
 0x33d   : > { %v4692_v21 = vand.u32 %v4687_v28, %v4376_v5  ;;  %v4400_v46 = vcombine.high %v4376_v5, %v10362_v30  ;;  %v4401_v3 = vcombine.high %v4383_v1, %v10362_v30  ;;  %v4704_v6 = vand.u32 %v4687_v28, %v4383_v1 }
 0x33e   : > { %v4695_v51 = vand.u32 %v4687_v28, %v4333_v8  ;;  %v4402_v39 = vcombine.high %v4392_v62, %v10362_v30  ;;  %v4716_v60 = vand.u32 %v4687_v28, %v4392_v62  ;;  %v4707_v37 = vand.u32 %v4687_v28, %v4334_v40  ;;  %v4206_v2 = vpop.permute.xlu1 %4205  ;;  %v4202_v33 = vpop.permute.xlu0 %4201 }
 0x33f   : > { %4736 = vmatprep.subr.bf16.mxu0 %v4692_v21  ;;  %v4698_v58 = vand.u32 %v4687_v28, %v4400_v46  ;;  %v4710_v61 = vand.u32 %v4687_v28, %v4401_v3  ;;  %v4335_v43 = vcombine.high %v4325_v17, %v10362_v30  ;;  %v4403_v14 = vcombine.high %v4399_v41, %v10362_v30 }
 0x340   : > { %4737 = vmatpush1.bf16.msra.mxu0 %v4689_v13  ;;  %v4722_v59 = vand.u32 %v4687_v28, %v4402_v39  ;;  %v4713_v29 = vand.u32 %v4687_v28, %v4325_v17  ;;  %v4728_v34 = vand.u32 %v4687_v28, %v4399_v41  ;;  %v4336_v47 = vcombine.high %v4332_v9, %v10362_v30 }
 0x341   : > { %4779 = vmatprep.subr.bf16.mxu1 %v4698_v58  ;;  %4822 = vmatprep.subr.bf16.mxu0 %v4704_v6  ;;  %v4719_v7 = vand.u32 %v4687_v28, %v4335_v43  ;;  %v4734_v10 = vand.u32 %v4687_v28, %v4403_v14  ;;  %v4725_v44 = vand.u32 %v4687_v28, %v4332_v9 }
 0x342   : > { %4780 = vmatpush1.bf16.msra.mxu1 %v4695_v51  ;;  %v4731_v50 = vand.u32 %v4687_v28, %v4336_v47  ;;  %v4214_v32 = vpop.permute.xlu1 %4213  ;;  %v4210_v23 = vpop.permute.xlu0 %4209  ;;  %v4420_v63 = vcombine.low %v4190_v35, %v4198_v11  ;;  %v4404_v21 = vcombine.low %v4186_v48, %v4194_v4  ;;  %v4421_v13 = vcombine.high %v4190_v35, %v4198_v11 }
 0x343   : > { %7696 = vmatmul.mubr.msk.bf16.vlgmr.msra.gmra.mrb[40].mxu0 %vm4681_vm9, %v7783_v0  ;;  %4865 = vmatprep.subr.bf16.mxu1 %v4710_v61  ;;  %v4452_v46 = vcombine.low %v4206_v2, %v4214_v32  ;;  %v4436_v62 = vcombine.low %v4202_v33, %v4210_v23  ;;  %v4405_v3 = vcombine.high %v4186_v48, %v4194_v4 }
 0x344   : > { %4823 = vmatpush1.bf16.msra.mxu0 %v4701_v16  ;;  %4854 = vmatprep.mubr.bf16.mxu0 %v10362_v30  ;;  %v4437_v51 = vcombine.high %v4202_v33, %v4210_v23  ;;  %v4428_v40 = vrot.slane %v4420_v63, %v8114_v19  ;;  %v4412_v61 = vrot.slane %v4404_v21, %v8114_v19 }
 0x345   : > { %7697 = vmatmul.mubr.msk.bf16.vlgmr.msra.gmra.mrb[56].mxu1 %vm4681_vm9, %v7783_v0  ;;  %4908 = vmatprep.subr.bf16.mxu0 %v4716_v60  ;;  %v4460_v39 = vrot.slane %v4452_v46, %v8114_v19  ;;  %v4444_v16 = vrot.slane %v4436_v62, %v8114_v19  ;;  %v4435_v17 = vrot.slane %v4421_v13, %v8114_v19 }
 0x346   : > { %4866 = vmatpush1.bf16.msra.mxu1 %v4707_v37  ;;  %4897 = vmatprep.mubr.bf16.mxu1 %v10362_v30  ;;  %v4222_v38 = vpop.permute.xlu1 %4221  ;;  %v4218_v36 = vpop.permute.xlu0 %4217  ;;  %v4468_v47 = vcombine.low %v4412_v61, %v4428_v40  ;;  %v4469_v48 = vcombine.high %v4412_v61, %v4428_v40 }
 0x347   : > { %4951 = vmatprep.subr.bf16.mxu1 %v4722_v59  ;;  %v4419_v59 = vrot.slane %v4405_v3, %v8114_v19  ;;  %v4501_v11 = vcombine.high %v4444_v16, %v4460_v39 }
 0x348   : > { %v4476_v62 = vrot.slane %v4468_v47, %v8116_v20  ;;  %v4483_v13 = vrot.slane %v4469_v48, %v8116_v20 }
 0x349   : > { %v4484_v33 = vcombine.low %v4419_v59, %v4435_v17  ;;  %v4515_v3 = vrot.slane %v4501_v11, %v8116_v20 }
 0x34a   : > { %v4230_v5 = vpop.permute.xlu1 %4229  ;;  %v4226_v28 = vpop.permute.xlu0 %4225 }
 0x34b   : > { %7698 = vmatmul.mubr.msk.bf16.vlgmr.msra.gmra.mrb[44].mxu0 %vm4681_vm9, %v7783_v0  ;;  %v4557_v9 = vcombine.high %v4222_v38, %v4230_v5  ;;  %v4492_v61 = vrot.slane %v4484_v33, %v8116_v20 }
 0x34c   : > { %4909 = vmatpush1.bf16.msra.mxu0 %v4713_v29  ;;  %4940 = vmatprep.mubr.bf16.mxu0 %v10362_v30  ;;  %v4451_v29 = vrot.slane %v4437_v51, %v8114_v19 }
 0x34d   : > { %4994 = vmatprep.subr.bf16.mxu0 %v4728_v34  ;;  %7699 = vmatmul.mubr.msk.bf16.vlgmr.msra.gmra.mrb[60].mxu1 %vm4681_vm9, %v7783_v0  ;;  %v4556_v34 = vcombine.low %v4222_v38, %v4230_v5  ;;  %v4485_v38 = vcombine.high %v4419_v59, %v4435_v17  ;;  %v4571_v5 = vrot.slane %v4557_v9, %v8114_v19 }
 0x34e   : > { %4952 = vmatpush1.bf16.msra.mxu1 %v4719_v7  ;;  %4983 = vmatprep.mubr.bf16.mxu1 %v10362_v30  ;;  %v4238_v1 = vpop.permute.xlu1 %4237  ;;  %v4234_v8 = vpop.permute.xlu0 %4233  ;;  %v4540_v7 = vcombine.low %v4218_v36, %v4226_v28 }
 0x34f   : > { %5037 = vmatprep.subr.bf16.mxu1 %v4734_v10  ;;  %v4541_v10 = vcombine.high %v4218_v36, %v4226_v28  ;;  %v4564_v23 = vrot.slane %v4556_v34, %v8114_v19 }
 0x351   : > { %v4555_v28 = vrot.slane %v4541_v10, %v8114_v19 }
 0x352   : > { %v4246_v58 = vpop.permute.xlu1 %4245  ;;  %v4242_v6 = vpop.permute.xlu0 %4241 }
 0x353   : > { %7700 = vmatmul.mubr.msk.bf16.vlgmr.msra.gmra.mrb[48].mxu0 %vm4681_vm9, %v7783_v0  ;;  %v4588_v60 = vcombine.low %v4238_v1, %v4246_v58  ;;  %v4572_v37 = vcombine.low %v4234_v8, %v4242_v6  ;;  %v4589_v41 = vcombine.high %v4238_v1, %v4246_v58  ;;  %v4573_v43 = vcombine.high %v4234_v8, %v4242_v6 }
 0x354   : > { %4995 = vmatpush1.bf16.msra.mxu0 %v4725_v44  ;;  %5026 = vmatprep.mubr.bf16.mxu0 %v10362_v30  ;;  %v4500_v44 = vcombine.low %v4444_v16, %v4460_v39  ;;  %v4548_v1 = vrot.slane %v4540_v7, %v8114_v19  ;;  %v4620_v40 = vcombine.low %v4555_v28, %v4571_v5 }
 0x355   : > { %7701 = vmatmul.mubr.msk.bf16.vlgmr.msra.gmra.mrb[64].mxu1 %vm4681_vm9, %v7783_v0  ;;  %v4580_v35 = vrot.slane %v4572_v37, %v8114_v19  ;;  %v4603_v4 = vrot.slane %v4589_v41, %v8114_v19  ;;  %v4499_v39 = vrot.slane %v4485_v38, %v8116_v20 }
 0x356   : > { %5038 = vmatpush1.bf16.msra.mxu1 %v4731_v50  ;;  %5069 = vmatprep.mubr.bf16.mxu1 %v10362_v30  ;;  %v4596_v50 = vrot.slane %v4588_v60, %v8114_v19  ;;  %v4508_v21 = vrot.slane %v4500_v44, %v8116_v20  ;;  %v4604_v58 = vcombine.low %v4548_v1, %v4564_v23 }
 0x357   : > { %v4605_v6 = vcombine.high %v4548_v1, %v4564_v23  ;;  %v4621_v60 = vcombine.high %v4555_v28, %v4571_v5 }
 0x358   : > { %v4636_v8 = vcombine.low %v4580_v35, %v4596_v50  ;;  %v4637_v63 = vcombine.high %v4580_v35, %v4596_v50  ;;  %v9350_v37 = vcombine.low %v4476_v62, %v4508_v21  ;;  %v9354_v41 = vcombine.high %v4476_v62, %v4508_v21 }
 0x359   : > { %v4612_v7 = vrot.slane %v4604_v58, %v8116_v20  ;;  %v4619_v9 = vrot.slane %v4605_v6, %v8116_v20  ;;  %v4628_v35 = vrot.slane %v4620_v40, %v8116_v20  ;;  %v4635_v1 = vrot.slane %v4621_v60, %v8116_v20 }
 0x35a   : > { %v4644_v17 = vrot.slane %v4636_v8, %v8116_v20  ;;  %v4651_v59 = vrot.slane %v4637_v63, %v8116_v20 }
 0x35b   : > { %7702 = vmatmul.mubr.msk.bf16.vlgmr.msra.gmra.mrb[52].mxu0 %vm4681_vm9, %v7783_v0 }
 0x35c   : > { %6121 = vmatprep.mubr.bf16.mxu0 %v10362_v30  ;;  %v9377_v23 = vcombine.low %v4619_v9, %v4651_v59  ;;  %v9382_v8 = vcombine.high %v4619_v9, %v4651_v59 }
 0x35d   : > { %7703 = vmatmul.mubr.msk.bf16.vlgmr.msra.gmra.mrb[68].mxu1 %vm4681_vm9, %v7783_v0  ;;  %v4453_v0 = vcombine.high %v4206_v2, %v4214_v32  ;;  %v4587_v2 = vrot.slane %v4573_v43, %v8114_v19  ;;  %v9356_v43 = vcombine.low %v4483_v13, %v4515_v3 }
 0x35e   : > { %6172 = vmatprep.mubr.bf16.mxu1 %v10362_v30 }
 0x35f   : > { %v4467_v14 = vrot.slane %v4453_v0, %v8114_v19  ;;  %v4652_v46 = vcombine.low %v4587_v2, %v4603_v4  ;;  %v4653_v0 = vcombine.high %v4587_v2, %v4603_v4  ;;  %v9373_v4 = vcombine.low %v4612_v7, %v4644_v17 }
 0x361   : > { %v4516_v32 = vcombine.low %v4451_v29, %v4467_v14  ;;  %v4517_v36 = vcombine.high %v4451_v29, %v4467_v14  ;;  %v9358_v14 = vcombine.high %v4483_v13, %v4515_v3  ;;  %v4660_v29 = vrot.slane %v4652_v46, %v8116_v20 }
 0x362   : > { %v4667_v47 = vrot.slane %v4653_v0, %v8116_v20 }
 0x363   : > { %v4524_v51 = vrot.slane %v4516_v32, %v8116_v20  ;;  %v4531_v16 = vrot.slane %v4517_v36, %v8116_v20  ;;  %v9375_v32 = vcombine.high %v4612_v7, %v4644_v17  ;;  %v9384_v63 = vcombine.low %v4628_v35, %v4660_v29 }
 0x364   : > { %v9388_v13 = vcombine.high %v4628_v35, %v4660_v29  ;;  %v9390_v3 = vcombine.low %v4635_v1, %v4667_v47 }
 0x365   : > { %v9363_v10 = vcombine.low %v4492_v61, %v4524_v51  ;;  %v9366_v50 = vcombine.high %v4492_v61, %v4524_v51  ;;  %v9369_v48 = vcombine.low %v4499_v39, %v4531_v16  ;;  %v9371_v11 = vcombine.high %v4499_v39, %v4531_v16 }
 0x416   : > { %v4770_v34 = vpop.f32.mrb[40].mxu0 }
 0x417   : > { %v4772_v44 = vpop.f32.mrb[41].mxu0  ;;  %v4771_v38 = vadd.f32 %v4770_v34, %v9350_v37 }
 0x418   : > { %v4774_v2 = vpop.f32.mrb[42].mxu0  ;;  %v4813_v33 = vpop.f32.mrb[56].mxu1  ;;  %v4773_v21 = vadd.f32 %v4772_v44, %v9354_v41 }
 0x419   : > { %v4814_v36 = vadd.f32 %v4813_v33, %v9356_v43  ;;  %v4776_v5 = vpop.f32.mrb[43].mxu0  ;;  %v4815_v28 = vpop.f32.mrb[57].mxu1  ;;  %v4775_v58 = vadd.f32 %v4774_v2, %v9373_v4 }
 0x41a   : > { %v4816_v46 = vadd.f32 %v4815_v28, %v9358_v14  ;;  %v4817_v62 = vpop.f32.mrb[58].mxu1  ;;  %v4777_v61 = vadd.f32 %v4776_v5, %v9375_v32  ;;  %v9403_v28 = vcombine.high %v4635_v1, %v4667_v47 }
 0x41b   : > { %v5080_v6 = vcombine.low %v4771_v38, %v4814_v36  ;;  %v5081_v0 = vcombine.high %v4771_v38, %v4814_v36  ;;  %v4818_v51 = vadd.f32 %v4817_v62, %v9377_v23  ;;  %v4819_v40 = vpop.f32.mrb[59].mxu1 }
 0x41c   : > { %v5096_v39 = vcombine.low %v4773_v21, %v4816_v46  ;;  %v5097_v16 = vcombine.high %v4773_v21, %v4816_v46  ;;  %v4820_v60 = vadd.f32 %v4819_v40, %v9382_v8 }
 0x41d   : > { %v5088_v17 = vrot.slane %v5080_v6, %v8114_v19  ;;  %v5095_v59 = vrot.slane %v5081_v0, %v8114_v19  ;;  %v5352_v29 = vcombine.low %v4775_v58, %v4818_v51  ;;  %v5353_v34 = vcombine.high %v4775_v58, %v4818_v51 }
 0x41e   : > { %v5104_v7 = vrot.slane %v5096_v39, %v8114_v19  ;;  %v5111_v9 = vrot.slane %v5097_v16, %v8114_v19  ;;  %v5368_v44 = vcombine.low %v4777_v61, %v4820_v60  ;;  %v5369_v35 = vcombine.high %v4777_v61, %v4820_v60  ;;  %v4856_v2 = vpop.f32.mrb[44].mxu0 }
 0x41f   : > { %v5360_v33 = vrot.slane %v5352_v29, %v8114_v19  ;;  %v5367_v38 = vrot.slane %v5353_v34, %v8114_v19  ;;  %v4857_v36 = vadd.f32 %v4856_v2, %v9363_v10  ;;  %v4858_v5 = vpop.f32.mrb[45].mxu0 }
 0x420   : > { %v5144_v21 = vcombine.low %v5088_v17, %v5104_v7  ;;  %v5145_v46 = vcombine.high %v5088_v17, %v5104_v7  ;;  %v5160_v62 = vcombine.low %v5095_v59, %v5111_v9  ;;  %v5161_v58 = vcombine.high %v5095_v59, %v5111_v9  ;;  %v4860_v6 = vpop.f32.mrb[46].mxu0  ;;  %v4899_v0 = vpop.f32.mrb[60].mxu1 }
 0x421   : > { %v5376_v51 = vrot.slane %v5368_v44, %v8114_v19  ;;  %v5383_v40 = vrot.slane %v5369_v35, %v8114_v19  ;;  %v4859_v61 = vadd.f32 %v4858_v5, %v9366_v50  ;;  %v4861_v39 = vadd.f32 %v4860_v6, %v9384_v63  ;;  %v4862_v16 = vpop.f32.mrb[47].mxu0  ;;  %v4901_v60 = vpop.f32.mrb[61].mxu1 }
 0x422   : > { %v5152_v29 = vrot.slane %v5144_v21, %v8116_v20  ;;  %v5159_v47 = vrot.slane %v5145_v46, %v8116_v20  ;;  %v5168_v1 = vrot.slane %v5160_v62, %v8116_v20  ;;  %v9413_v17 = vrot.slane %v5161_v58, %v8116_v20  ;;  %v4903_v59 = vpop.f32.mrb[62].mxu1 }
 0x423   : > { %v5416_v34 = vcombine.low %v5360_v33, %v5376_v51  ;;  %v5417_v7 = vcombine.high %v5360_v33, %v5376_v51  ;;  %v5432_v9 = vcombine.low %v5367_v38, %v5383_v40  ;;  %v5433_v44 = vcombine.high %v5367_v38, %v5383_v40  ;;  %v4905_v35 = vpop.f32.mrb[63].mxu1 }
 0x424   : > { %v4900_v2 = vadd.f32 %v4899_v0, %v9369_v48  ;;  %v4863_v5 = vadd.f32 %v4862_v16, %v9388_v13  ;;  %v4902_v6 = vadd.f32 %v4901_v60, %v9371_v11  ;;  %v4904_v21 = vadd.f32 %v4903_v59, %v9390_v3 }
 0x425   : > { %v9420_v46 = vrot.slane %v5416_v34, %v8116_v20  ;;  %v9423_v62 = vrot.slane %v5417_v7, %v8116_v20  ;;  %v9426_v58 = vrot.slane %v5432_v9, %v8116_v20  ;;  %v9429_v33 = vrot.slane %v5433_v44, %v8116_v20 }
 0x426   : > { %v5112_v38 = vcombine.low %v4857_v36, %v4900_v2  ;;  %v5113_v0 = vcombine.high %v4857_v36, %v4900_v2  ;;  %v5128_v51 = vcombine.low %v4859_v61, %v4902_v6  ;;  %v5129_v40 = vcombine.high %v4859_v61, %v4902_v6  ;;  %v4942_v16 = vpop.f32.mrb[48].mxu0 }
 0x427   : > { %v5384_v60 = vcombine.low %v4861_v39, %v4904_v21  ;;  %v5385_v53 = vcombine.high %v4861_v39, %v4904_v21  ;;  %v4906_v59 = vadd.f32 %v4905_v35, %v9403_v28  ;;  %v9433_v34 = vadd.f32 %v4942_v16, %v9350_v37  ;;  %v4944_v7 = vpop.f32.mrb[49].mxu0 }
 0x428   : > { %v5120_v24 = vrot.slane %v5112_v38, %v8114_v19  ;;  %v5127_v9 = vrot.slane %v5113_v0, %v8114_v19  ;;  %v5136_v44 = vrot.slane %v5128_v51, %v8114_v19  ;;  %v5143_v18 = vrot.slane %v5129_v40, %v8114_v19  ;;  %v4946_v36 = vpop.f32.mrb[50].mxu0  ;;  %v9439_v2 = vpop.f32.mrb[64].mxu1 }
 0x429   : > { %v5392_v61 = vrot.slane %v5384_v60, %v8114_v19  ;;  %v9443_v39 = vrot.slane %v5385_v53, %v8114_v19  ;;  %v5400_v35 = vcombine.low %v4863_v5, %v4906_v59  ;;  %v5401_v37 = vcombine.high %v4863_v5, %v4906_v59  ;;  %v9445_v6 = vpop.f32.mrb[51].mxu0  ;;  %v9447_v21 = vpop.f32.mrb[65].mxu1 }
 0x42a   : > { %v5176_v38 = vcombine.low %v5120_v24, %v5136_v44  ;;  %v5177_v0 = vcombine.high %v5120_v24, %v5136_v44  ;;  %v5192_v16 = vcombine.low %v5127_v9, %v5143_v18  ;;  %v5193_v51 = vcombine.high %v5127_v9, %v5143_v18  ;;  %v9449_v52 = vpop.f32.mrb[66].mxu1 }
 0x42b   : > { %v5408_v40 = vrot.slane %v5400_v35, %v8114_v19  ;;  %v5415_v42 = vrot.slane %v5401_v37, %v8114_v19  ;;  %v9454_v60 = vadd.f32 %v4944_v7, %v9354_v41  ;;  %v9457_v53 = vadd.f32 %v4946_v36, %v9373_v4  ;;  %v9459_v5 = vpop.f32.mrb[67].mxu1 }
 0x42c   : > { %v5184_v59 = vrot.slane %v5176_v38, %v8116_v20  ;;  %v5191_v24 = vrot.slane %v5177_v0, %v8116_v20  ;;  %v5200_v18 = vrot.slane %v5192_v16, %v8116_v20  ;;  %v5207_v9 = vrot.slane %v5193_v51, %v8116_v20 }
 0x42d   : > { %v5448_v44 = vcombine.low %v5392_v61, %v5408_v40  ;;  %v5449_v35 = vcombine.high %v5392_v61, %v5408_v40  ;;  %v5464_v37 = vcombine.low %v9443_v39, %v5415_v42  ;;  %v5465_v41 = vcombine.high %v9443_v39, %v5415_v42 }
 0x42e   : > { %v5208_v7 = vcombine.low %v5152_v29, %v5184_v59  ;;  %v5209_v54 = vcombine.high %v5152_v29, %v5184_v59  ;;  %v5210_v4 = vcombine.low %v5159_v47, %v5191_v24  ;;  %v5211_v36 = vcombine.high %v5159_v47, %v5191_v24  ;;  %v9467_v25 = vpop.f32.mrb[52].mxu0 }
 0x42f   : > { %v5212_v55 = vcombine.low %v5168_v1, %v5200_v18  ;;  %v5213_v38 = vcombine.high %v5168_v1, %v5200_v18  ;;  %v5214_v0 = vcombine.low %v9413_v17, %v5207_v9  ;;  %v5215_v16 = vcombine.high %v9413_v17, %v5207_v9  ;;  %v9471_v12 = vpop.f32.mrb[53].mxu0 }
 0x430   : > { %vm5624_vm10 = vcmp.ge.f32.partialorder %v5208_v7, 0.0  ;;  %vm5626_vm12 = vcmp.ge.f32.partialorder %v5209_v54, 0.0  ;;  %vm5628_vm13 = vcmp.ge.f32.partialorder %v5210_v4, 0.0  ;;  %vm5630_vm14 = vcmp.ge.f32.partialorder %v5211_v36, 0.0  ;;  %v9473_v61 = vpop.f32.mrb[54].mxu0  ;;  %v9475_v42 = vpop.f32.mrb[68].mxu1 }
 0x431   : > { %vm5632_vm15 = vcmp.ge.f32.partialorder %v5212_v55, 0.0  ;;  %vm5634_vm0 = vcmp.ge.f32.partialorder %v5213_v38, 0.0  ;;  %vm5636_vm1 = vcmp.ge.f32.partialorder %v5214_v0, 0.0  ;;  %vm5638_vm3 = vcmp.ge.f32.partialorder %v5215_v16, 0.0  ;;  %v9477_v29 = vpop.f32.mrb[55].mxu0  ;;  %v9479_v47 = vpop.f32.mrb[69].mxu1 }
 0x432   : > { %v5656_v1 = vmul.f32 0.01, %v5208_v7  ;;  %v5658_v17 = vmul.f32 0.01, %v5209_v54  ;;  %v5660_v39 = vmul.f32 0.01, %v5210_v4  ;;  %v5456_v51 = vrot.slane %v5448_v44, %v8116_v20 }
 0x433   : > { %v5662_v40 = vmul.f32 0.01, %v5211_v36  ;;  %v5664_v59 = vmul.f32 0.01, %v5212_v55  ;;  %v5666_v24 = vmul.f32 0.01, %v5213_v38  ;;  %v5463_v18 = vrot.slane %v5449_v35, %v8116_v20 }
 0x434   : > { %v5668_v9 = vmul.f32 0.01, %v5214_v0  ;;  %v5670_v22 = vmul.f32 0.01, %v5215_v16  ;;  %v9484_v56 = vsel %vm5624_vm10, %v5208_v7, %v5656_v1  ;;  %v9487_v26 = vsel %vm5626_vm12, %v5209_v54, %v5658_v17  ;;  %v9489_v57 = vpop.f32.mrb[70].mxu1 }
 0x435   : > { %v9492_v31 = vsel %vm5628_vm13, %v5210_v4, %v5660_v39  ;;  %v9495_v44 = vsel %vm5630_vm14, %v5211_v36, %v5662_v40  ;;  %v9498_v49 = vsel %vm5632_vm15, %v5212_v55, %v5664_v59  ;;  %v9501_v35 = vsel %vm5634_vm0, %v5213_v38, %v5666_v24  ;;  %v9503_v27 = vpop.f32.mrb[71].mxu1 }
 0x436   : > { %v9506_v7 = vsel %vm5636_vm1, %v5214_v0, %v5668_v9  ;;  %v9509_v54 = vsel %vm5638_vm3, %v5215_v16, %v5670_v22  ;;  %v5472_v4 = vrot.slane %v5464_v37, %v8116_v20  ;;  %v5479_v1 = vrot.slane %v5465_v41, %v8116_v20 }
 0x437   : > { %v5480_v36 = vcombine.low %v9420_v46, %v5456_v51  ;;  %v5481_v55 = vcombine.high %v9420_v46, %v5456_v51  ;;  %v5482_v17 = vcombine.low %v9423_v62, %v5463_v18  ;;  %v5483_v38 = vcombine.high %v9423_v62, %v5463_v18 }
 0x438   : > { %v5484_v39 = vcombine.low %v9426_v58, %v5472_v4  ;;  %v5485_v0 = vcombine.high %v9426_v58, %v5472_v4  ;;  %v5486_v40 = vcombine.low %v9429_v33, %v5479_v1  ;;  %v5487_v22 = vcombine.high %v9429_v33, %v5479_v1 }
 0x439   : > { %vm5640_vm4 = vcmp.ge.f32.partialorder %v5480_v36, 0.0  ;;  %vm5642_vm5 = vcmp.ge.f32.partialorder %v5481_v55, 0.0  ;;  %vm5644_vm9 = vcmp.ge.f32.partialorder %v5482_v17, 0.0  ;;  %vm5646_vm10 = vcmp.ge.f32.partialorder %v5483_v38, 0.0 }
 0x43a   : > { %vm5648_vm12 = vcmp.ge.f32.partialorder %v5484_v39, 0.0  ;;  %vm5650_vm13 = vcmp.ge.f32.partialorder %v5485_v0, 0.0  ;;  %vm5652_vm14 = vcmp.ge.f32.partialorder %v5486_v40, 0.0  ;;  %vm5654_vm15 = vcmp.ge.f32.partialorder %v5487_v22, 0.0 }
 0x43b   : > { %v5672_v46 = vmul.f32 0.01, %v5480_v36  ;;  %v5674_v37 = vmul.f32 0.01, %v5481_v55  ;;  %v5676_v41 = vmul.f32 0.01, %v5482_v17  ;;  %v4986_v62 = vadd.f32 %v9439_v2, %v9356_v43 }
 0x43c   : > { %v5678_v16 = vmul.f32 0.01, %v5483_v38  ;;  %v5680_v58 = vmul.f32 0.01, %v5484_v39  ;;  %v5682_v51 = vmul.f32 0.01, %v5485_v0  ;;  %v4949_v33 = vadd.f32 %v9445_v6, %v9375_v32 }
 0x43d   : > { %v5684_v59 = vmul.f32 0.01, %v5486_v40  ;;  %v5686_v24 = vmul.f32 0.01, %v5487_v22  ;;  %v9526_v18 = vsel %vm5640_vm4, %v5480_v36, %v5672_v46  ;;  %v9529_v9 = vsel %vm5642_vm5, %v5481_v55, %v5674_v37 }
 0x43e   : > { %v9532_v4 = vsel %vm5644_vm9, %v5482_v17, %v5676_v41  ;;  %v9535_v1 = vsel %vm5646_vm10, %v5483_v38, %v5678_v16  ;;  %v9538_v43 = vsel %vm5648_vm12, %v5484_v39, %v5680_v58  ;;  %v9541_v2 = vsel %vm5650_vm13, %v5485_v0, %v5682_v51 }
 0x43f   : > { %v9544_v32 = vsel %vm5652_vm14, %v5486_v40, %v5684_v59  ;;  %v9547_v6 = vsel %vm5654_vm15, %v5487_v22, %v5686_v24  ;;  %v5216_v36 = vcombine.low %v9433_v34, %v4986_v62  ;;  %v5217_v55 = vcombine.high %v9433_v34, %v4986_v62 }
 0x440   : > { %v4988_v17 = vadd.f32 %v9447_v21, %v9358_v14  ;;  %v4990_v38 = vadd.f32 %v9449_v52, %v9377_v23  ;;  %v4992_v39 = vadd.f32 %v9459_v5, %v9382_v8  ;;  %v5029_v0 = vadd.f32 %v9467_v25, %v9363_v10 }
 0x441   : > { %v5224_v40 = vrot.slane %v5216_v36, %v8114_v19  ;;  %v5231_v22 = vrot.slane %v5217_v55, %v8114_v19  ;;  %v5031_v46 = vadd.f32 %v9471_v12, %v9366_v50  ;;  %v5033_v34 = vadd.f32 %v9473_v61, %v9384_v63 }
 0x442   : > { %v5232_v14 = vcombine.low %v9454_v60, %v4988_v17  ;;  %v5233_v52 = vcombine.high %v9454_v60, %v4988_v17  ;;  %v5488_v23 = vcombine.low %v9457_v53, %v4990_v38  ;;  %v5489_v8 = vcombine.high %v9457_v53, %v4990_v38 }
 0x443   : > { %v5504_v21 = vcombine.low %v4949_v33, %v4992_v39  ;;  %v5505_v25 = vcombine.high %v4949_v33, %v4992_v39  ;;  %v5072_v10 = vadd.f32 %v9475_v42, %v9369_v48  ;;  %v5035_v5 = vadd.f32 %v9477_v29, %v9388_v13 }
 0x444   : > { %v5240_v12 = vrot.slane %v5232_v14, %v8114_v19  ;;  %v5247_v50 = vrot.slane %v5233_v52, %v8114_v19  ;;  %v5496_v63 = vrot.slane %v5488_v23, %v8114_v19  ;;  %v5503_v60 = vrot.slane %v5489_v8, %v8114_v19 }
 0x445   : > { %v5512_v61 = vrot.slane %v5504_v21, %v8114_v19  ;;  %v5519_v53 = vrot.slane %v5505_v25, %v8114_v19  ;;  %v5248_v37 = vcombine.low %v5029_v0, %v5072_v10  ;;  %v5249_v41 = vcombine.high %v5029_v0, %v5072_v10 }
 0x446   : > { %v5280_v62 = vcombine.low %v5224_v40, %v5240_v12  ;;  %v5281_v16 = vcombine.high %v5224_v40, %v5240_v12  ;;  %v5296_v48 = vcombine.low %v5231_v22, %v5247_v50  ;;  %v5297_v42 = vcombine.high %v5231_v22, %v5247_v50 }
 0x447   : > { %v5552_v58 = vcombine.low %v5496_v63, %v5512_v61  ;;  %v5553_v13 = vcombine.high %v5496_v63, %v5512_v61  ;;  %v5568_v29 = vcombine.low %v5503_v60, %v5519_v53  ;;  %v5569_v51 = vcombine.high %v5503_v60, %v5519_v53 }
 0x448   : > { %v5288_v33 = vrot.slane %v5280_v62, %v8116_v20  ;;  %v5295_v59 = vrot.slane %v5281_v16, %v8116_v20  ;;  %v5304_v24 = vrot.slane %v5296_v48, %v8116_v20  ;;  %v5311_v36 = vrot.slane %v5297_v42, %v8116_v20 }
 0x449   : > { %v9584_v55 = vrot.slane %v5552_v58, %v8116_v20  ;;  %v9587_v17 = vrot.slane %v5553_v13, %v8116_v20  ;;  %v9590_v38 = vrot.slane %v5568_v29, %v8116_v20  ;;  %v9593_v39 = vrot.slane %v5569_v51, %v8116_v20 }
 0x44a   : > { %v5256_v0 = vrot.slane %v5248_v37, %v8114_v19  ;;  %v5263_v40 = vrot.slane %v5249_v41, %v8114_v19  ;;  %v5074_v22 = vadd.f32 %v9479_v47, %v9371_v11  ;;  %v5076_v14 = vadd.f32 %v9489_v57, %v9390_v3 }
 0x44b   : > { %v5078_v52 = vadd.f32 %v9503_v27, %v9403_v28  ;;  %v7704_v23 = vpack.c.bf16 %v9498_v49, %v9484_v56  ;;  %v7706_v8 = vpack.c.bf16 %v9506_v7, %v9492_v31  ;;  %v7708_v21 = vpack.c.bf16 %v9538_v43, %v9526_v18 }
 0x44c   : > { %v5264_v25 = vcombine.low %v5031_v46, %v5074_v22  ;;  %v5265_v10 = vcombine.high %v5031_v46, %v5074_v22  ;;  %v5520_v12 = vcombine.low %v5033_v34, %v5076_v14  ;;  %v5521_v50 = vcombine.high %v5033_v34, %v5076_v14 }
 0x44d   : > { %v5536_v11 = vcombine.low %v5035_v5, %v5078_v52  ;;  %v5537_v47 = vcombine.high %v5035_v5, %v5078_v52  ;;  %v9610_v57 = vrot.slane %v7704_v23, %v8114_v19  ;;  %v9613_v27 = vrot.slane %v7706_v8, %v8114_v19 }
 0x44e   : > { %v5272_v49 = vrot.slane %v5264_v25, %v8114_v19  ;;  %v5279_v56 = vrot.slane %v5265_v10, %v8114_v19  ;;  %v5528_v31 = vrot.slane %v5520_v12, %v8114_v19  ;;  %v5535_v3 = vrot.slane %v5521_v50, %v8114_v19 }
 0x44f   : > { %v5544_v28 = vrot.slane %v5536_v11, %v8114_v19  ;;  %v5551_v7 = vrot.slane %v5537_v47, %v8114_v19  ;;  %v9622_v18 = vrot.slane %v7708_v21, %v8114_v19  ;;  %v7710_v43 = vpack.c.bf16 %v9544_v32, %v9532_v4 }
 0x450   : > { %v5312_v46 = vcombine.low %v5256_v0, %v5272_v49  ;;  %v5313_v34 = vcombine.high %v5256_v0, %v5272_v49  ;;  %v5328_v5 = vcombine.low %v5263_v40, %v5279_v56  ;;  %v5329_v63 = vcombine.high %v5263_v40, %v5279_v56 }
 0x451   : > { %v5584_v60 = vcombine.low %v5528_v31, %v5544_v28  ;;  %v5585_v61 = vcombine.high %v5528_v31, %v5544_v28  ;;  %v5600_v53 = vcombine.low %v5535_v3, %v5551_v7  ;;  %v5601_v37 = vcombine.high %v5535_v3, %v5551_v7 }
 0x452   : > { %v5320_v41 = vrot.slane %v5312_v46, %v8116_v20  ;;  %v5327_v62 = vrot.slane %v5313_v34, %v8116_v20  ;;  %v5336_v16 = vrot.slane %v5328_v5, %v8116_v20  ;;  %v5343_v48 = vrot.slane %v5329_v63, %v8116_v20 }
 0x453   : > { %v5592_v42 = vrot.slane %v5584_v60, %v8116_v20  ;;  %v5599_v58 = vrot.slane %v5585_v61, %v8116_v20  ;;  %v5608_v13 = vrot.slane %v5600_v53, %v8116_v20  ;;  %v5615_v29 = vrot.slane %v5601_v37, %v8116_v20 }
 0x454   : > { %v5344_v51 = vcombine.low %v5288_v33, %v5320_v41  ;;  %v5345_v0 = vcombine.high %v5288_v33, %v5320_v41  ;;  %v5346_v40 = vcombine.low %v5295_v59, %v5327_v62  ;;  %v5347_v22 = vcombine.high %v5295_v59, %v5327_v62 }
 0x455   : > { %v5348_v14 = vcombine.low %v5304_v24, %v5336_v16  ;;  %v5349_v52 = vcombine.high %v5304_v24, %v5336_v16  ;;  %v5350_v23 = vcombine.low %v5311_v36, %v5343_v48  ;;  %v5351_v8 = vcombine.high %v5311_v36, %v5343_v48 }
 0x456   : > { %vm5625_vm0 = vcmp.ge.f32.partialorder %v5344_v51, 0.0  ;;  %vm5627_vm1 = vcmp.ge.f32.partialorder %v5345_v0, 0.0  ;;  %vm5629_vm3 = vcmp.ge.f32.partialorder %v5346_v40, 0.0  ;;  %vm5631_vm4 = vcmp.ge.f32.partialorder %v5347_v22, 0.0 }
 0x457   : > { %vm5633_vm5 = vcmp.ge.f32.partialorder %v5348_v14, 0.0  ;;  %vm5635_vm9 = vcmp.ge.f32.partialorder %v5349_v52, 0.0  ;;  %vm5637_vm10 = vcmp.ge.f32.partialorder %v5350_v23, 0.0  ;;  %vm5639_vm12 = vcmp.ge.f32.partialorder %v5351_v8, 0.0 }
 0x458   : > { %v5657_v21 = vmul.f32 0.01, %v5344_v51  ;;  %v5659_v25 = vmul.f32 0.01, %v5345_v0  ;;  %v5661_v10 = vmul.f32 0.01, %v5346_v40  ;;  %v5616_v12 = vcombine.low %v9584_v55, %v5592_v42 }
 0x459   : > { %v5663_v33 = vmul.f32 0.01, %v5347_v22  ;;  %v5665_v50 = vmul.f32 0.01, %v5348_v14  ;;  %v5667_v59 = vmul.f32 0.01, %v5349_v52  ;;  %v5617_v24 = vcombine.high %v9584_v55, %v5592_v42 }
 0x45a   : > { %v5669_v11 = vmul.f32 0.01, %v5350_v23  ;;  %v5671_v36 = vmul.f32 0.01, %v5351_v8  ;;  %v9637_v47 = vsel %vm5625_vm0, %v5344_v51, %v5657_v21  ;;  %v9640_v49 = vsel %vm5627_vm1, %v5345_v0, %v5659_v25 }
 0x45b   : > { %v9643_v56 = vsel %vm5629_vm3, %v5346_v40, %v5661_v10  ;;  %v9646_v31 = vsel %vm5631_vm4, %v5347_v22, %v5663_v33  ;;  %v9649_v3 = vsel %vm5633_vm5, %v5348_v14, %v5665_v50  ;;  %v9652_v28 = vsel %vm5635_vm9, %v5349_v52, %v5667_v59 }
 0x45c   : > { %v9655_v55 = vsel %vm5637_vm10, %v5350_v23, %v5669_v11  ;;  %v9658_v7 = vsel %vm5639_vm12, %v5351_v8, %v5671_v36  ;;  %v5618_v46 = vcombine.low %v9587_v17, %v5599_v58  ;;  %v5619_v34 = vcombine.high %v9587_v17, %v5599_v58 }
 0x45d   : > { %v5620_v5 = vcombine.low %v9590_v38, %v5608_v13  ;;  %v5621_v63 = vcombine.high %v9590_v38, %v5608_v13  ;;  %v5622_v60 = vcombine.low %v9593_v39, %v5615_v29  ;;  %v5623_v61 = vcombine.high %v9593_v39, %v5615_v29 }
 0x45e   : > { %vm5641_vm13 = vcmp.ge.f32.partialorder %v5616_v12, 0.0  ;;  %vm5643_vm14 = vcmp.ge.f32.partialorder %v5617_v24, 0.0  ;;  %vm5645_vm15 = vcmp.ge.f32.partialorder %v5618_v46, 0.0  ;;  %vm5647_vm0 = vcmp.ge.f32.partialorder %v5619_v34, 0.0 }
 0x45f   : > { %vm5649_vm1 = vcmp.ge.f32.partialorder %v5620_v5, 0.0  ;;  %vm5651_vm3 = vcmp.ge.f32.partialorder %v5621_v63, 0.0  ;;  %vm5653_vm4 = vcmp.ge.f32.partialorder %v5622_v60, 0.0  ;;  %vm5655_vm5 = vcmp.ge.f32.partialorder %v5623_v61, 0.0 }
 0x460   : > { %v5673_v53 = vmul.f32 0.01, %v5616_v12  ;;  %v5675_v37 = vmul.f32 0.01, %v5617_v24  ;;  %v5677_v41 = vmul.f32 0.01, %v5618_v46  ;;  %v5795_v17 = vrot.slane %v7710_v43, %v8114_v19 }
 0x461   : > { %v5679_v38 = vmul.f32 0.01, %v5619_v34  ;;  %v5681_v62 = vmul.f32 0.01, %v5620_v5  ;;  %v5683_v16 = vmul.f32 0.01, %v5621_v63  ;;  %v5803_v39 = vcombine.low %v9610_v57, %v9613_v27 }
 0x462   : > { %v5685_v48 = vmul.f32 0.01, %v5622_v60  ;;  %v5687_v42 = vmul.f32 0.01, %v5623_v61  ;;  %v5705_v58 = vsel %vm5641_vm13, %v5616_v12, %v5673_v53  ;;  %v9674_v13 = vsel %vm5643_vm14, %v5617_v24, %v5675_v37 }
 0x463   : > { %v5709_v29 = vsel %vm5645_vm15, %v5618_v46, %v5677_v41  ;;  %v9678_v51 = vsel %vm5647_vm0, %v5619_v34, %v5679_v38  ;;  %v5713_v4 = vsel %vm5649_vm1, %v5620_v5, %v5681_v62  ;;  %v9682_v32 = vsel %vm5651_vm3, %v5621_v63, %v5683_v16 }
 0x464   : > { %v5717_v43 = vsel %vm5653_vm4, %v5622_v60, %v5685_v48  ;;  %v9686_v0 = vsel %vm5655_vm5, %v5623_v61, %v5687_v42  ;;  %v5811_v40 = vrot.slane %v5803_v39, %v8116_v20  ;;  %v5835_v22 = vcombine.low %v9622_v18, %v5795_v17 }
 0x465   : > { %v7712_v14 = vpack.c.bf16 %v9501_v35, %v9487_v26  ;;  %v7714_v52 = vpack.c.bf16 %v9509_v54, %v9495_v44  ;;  %v7716_v23 = vpack.c.bf16 %v9541_v2, %v9529_v9  ;;  %v7718_v8 = vpack.c.bf16 %v9547_v6, %v9535_v1 }
 0x466   : > { %v5843_v21 = vrot.slane %v5835_v22, %v8116_v20  ;;  %v5804_v25 = vcombine.high %v9610_v57, %v9613_v27  ;;  %v5836_v10 = vcombine.high %v9622_v18, %v5795_v17  ;;  %v7705_v12 = vpack.c.bf16 %v9649_v3, %v9637_v47 }
 0x467   : > { %v5883_v26 = vrot.slane %v7712_v14, %v8114_v19  ;;  %v5899_v44 = vrot.slane %v7714_v52, %v8114_v19  ;;  %v5915_v35 = vrot.slane %v7716_v23, %v8114_v19  ;;  %v5931_v54 = vrot.slane %v7718_v8, %v8114_v19 }
 0x468   : > { %v5867_v9 = vcombine.low %v5811_v40, %v5843_v21  ;;  %v5868_v1 = vcombine.high %v5811_v40, %v5843_v21  ;;  %v5818_v2 = vrot.slane %v5804_v25, %v8116_v20  ;;  %v5850_v6 = vrot.slane %v5836_v10, %v8116_v20 }
 0x469   : > { %v5939_v57 = vcombine.low %v5883_v26, %v5899_v44  ;;  %v5971_v27 = vcombine.low %v5915_v35, %v5931_v54  ;;  %v5940_v18 = vcombine.high %v5883_v26, %v5899_v44  ;;  %v5972_v33 = vcombine.high %v5915_v35, %v5931_v54 }
 0x46a   : > { %v6015_v50 = vshrl.u32 %v5867_v9, 16  ;;  %v6023_v59 = vshrl.u32 %v5868_v1, 16  ;;  %v5869_v24 = vcombine.low %v5818_v2, %v5850_v6  ;;  %v5870_v11 = vcombine.high %v5818_v2, %v5850_v6 }
 0x46b   : > { %v5947_v36 = vrot.slane %v5939_v57, %v8116_v20  ;;  %v5979_v47 = vrot.slane %v5971_v27, %v8116_v20  ;;  %v5954_v3 = vrot.slane %v5940_v18, %v8116_v20  ;;  %v5986_v46 = vrot.slane %v5972_v33, %v8116_v20 }
 0x46c   : > { %v6031_v34 = vshrl.u32 %v5869_v24, 16  ;;  %v6039_v5 = vshrl.u32 %v5870_v11, 16  ;;  %v5754_v63 = vrot.slane %v7705_v12, %v8114_v19  ;;  %v7707_v60 = vpack.c.bf16 %v9655_v55, %v9643_v56 }
 0x46d   : > { %v6003_v61 = vcombine.low %v5947_v36, %v5979_v47  ;;  %v6004_v53 = vcombine.high %v5947_v36, %v5979_v47  ;;  %v6005_v37 = vcombine.low %v5954_v3, %v5986_v46  ;;  %v6006_v41 = vcombine.high %v5954_v3, %v5986_v46 }
 0x46e   : > { %v5770_v17 = vrot.slane %v7707_v60, %v8114_v19  ;;  %v7709_v38 = vpack.c.bf16 %v5713_v4, %v5705_v58  ;;  %v7711_v62 = vpack.c.bf16 %v5717_v43, %v5709_v29  ;;  %v7713_v16 = vpack.c.bf16 %v9652_v28, %v9640_v49  ;;  %v9726_v49 = vld [vmem:[%s10242_s11] sm:$0xff]  }
 0x46f   : > { %v6016_v39 = vshrl.u32 %v6003_v61, 16  ;;  %v6024_v48 = vshrl.u32 %v6004_v53, 16  ;;  %v6013_v42 = vpack.i.b16 %v6003_v61, %v5867_v9  ;;  %v6021_v40 = vpack.i.b16 %v6004_v53, %v5868_v1 }
 0x470   : > { %v6032_v22 = vshrl.u32 %v6005_v37, 16  ;;  %v6040_v14 = vshrl.u32 %v6006_v41, 16  ;;  %v6029_v52 = vpack.i.b16 %v6005_v37, %v5869_v24  ;;  %v6037_v23 = vpack.i.b16 %v6006_v41, %v5870_v11 }
 0x471   : > { %v6017_v56 = vpack.i.b16 %v6016_v39, %v6015_v50  ;;  %v6025_v55 = vpack.i.b16 %v6024_v48, %v6023_v59  ;;  %v5786_v8 = vrot.slane %v7709_v38, %v8114_v19  ;;  %v5802_v21 = vrot.slane %v7711_v62, %v8114_v19  ;;  %v9752_v59 = vld [vmem:[%s10242_s11 + $0x8] ss:$0 sps:$4 sm:$0x33]  }
 0x472   : > { %v6033_v25 = vpack.i.b16 %v6032_v22, %v6031_v34  ;;  %v6041_v58 = vpack.i.b16 %v6040_v14, %v6039_v5  ;;  %v5819_v29 = vcombine.low %v5754_v63, %v5770_v17  ;;  %v5890_v4 = vrot.slane %v7713_v16, %v8114_v19  ;;  %v7791_v22 = vld [vmem:[%s8109_s20] sm:$0xff]  ;;  %v7792_v14 = vld [vmem:[%s8109_s20 + $0x8] sm:$0xff] }
 0x473   : > { %6089 = vmatprep.subr.bf16.mxu0 %v6017_v56  ;;  %6140 = vmatprep.subr.bf16.mxu1 %v6025_v55  ;;  %v5851_v28 = vcombine.low %v5786_v8, %v5802_v21  ;;  %v7715_v43 = vpack.c.bf16 %v9658_v7, %v9646_v31  ;;  %v7717_v10 = vpack.c.bf16 %v9682_v32, %v9674_v13  ;;  %v10365_v56 = vld [vmem:[#allocation31_spill] sm:$0xff]  ;;  %v10366_v55 = vld [vmem:[#allocation30_spill] sm:$0xff] }
 0x474   : > { %6090 = vmatpush1.bf16.msra.mxu0 %v6013_v42  ;;  %6141 = vmatpush1.bf16.msra.mxu1 %v6021_v40  ;;  %v5827_v12 = vrot.slane %v5819_v29, %v8116_v20  ;;  %v7719_v26 = vpack.c.bf16 %v9686_v0, %v9678_v51  ;;  %v5820_v44 = vcombine.high %v5754_v63, %v5770_v17 }
 0x475   : > { %6191 = vmatprep.subr.bf16.mxu0 %v6033_v25  ;;  %6242 = vmatprep.subr.bf16.mxu1 %v6041_v58  ;;  %v5859_v35 = vrot.slane %v5851_v28, %v8116_v20  ;;  %v5906_v54 = vrot.slane %v7715_v43, %v8114_v19  ;;  %v5922_v9 = vrot.slane %v7717_v10, %v8114_v19  ;;  %v10369_v25 = vld [vmem:[#allocation32_spill] sm:$0xff]  ;;  %v10374_v43 = vld [vmem:[#allocation13_spill] sm:$0xff] }
 0x476   : > { %v5938_v31 = vrot.slane %v7719_v26, %v8114_v19  ;;  %v5834_v7 = vrot.slane %v5820_v44, %v8116_v20  ;;  %v5852_v13 = vcombine.high %v5786_v8, %v5802_v21  ;;  %v10367_v8 = vpack.c.bf16 %v10365_v56, %v10366_v55  ;;  %v10368_v21 = vld [vmem:[#allocation33_spill] sm:$0xff] }
 0x477   : > { %7722 = vmatmul.mubr.msk.bf16.vlgmr.msra.gmra.mrb[56].mxu0 %vm2606_vm6, %v9726_v49  ;;  %7724 = vmatmul.mubr.msk.bf16.vlgmr.msra.gmra.mrb[72].mxu1 %vm2606_vm6, %v9726_v49  ;;  %v5871_v51 = vcombine.low %v5827_v12, %v5859_v35  ;;  %v5955_v32 = vcombine.low %v5890_v4, %v5906_v54  ;;  %v5872_v0 = vcombine.high %v5827_v12, %v5859_v35  ;;  %v10375_v12 = vld [vmem:[#allocation14_spill] sm:$0xff] }
 0x478   : > { %6192 = vmatpush1.bf16.msra.mxu0 %v6029_v52  ;;  %6243 = vmatpush1.bf16.msra.mxu1 %v6037_v23  ;;  %v5987_v1 = vcombine.low %v5922_v9, %v5938_v31  ;;  %v5866_v2 = vrot.slane %v5852_v13, %v8116_v20  ;;  %v5956_v6 = vcombine.high %v5890_v4, %v5906_v54  ;;  %v7788_v4 = vld [vmem:[%s10244_s13 + $0x4] ss:$8 sps:$4 sm:$0x1f]   ;;  %v10376_v54 = vld [vmem:[#allocation15_spill] sm:$0xff] }
 0x479   : > { %6131 = vmatprep.mubr.bf16.mxu0 %v10362_v30  ;;  %6182 = vmatprep.mubr.bf16.mxu1 %v10362_v30  ;;  %v5988_v57 = vcombine.high %v5922_v9, %v5938_v31  ;;  %v5963_v27 = vrot.slane %v5955_v32, %v8116_v20  ;;  %v6047_v47 = vshrl.u32 %v5871_v51, 16  ;;  %v6055_v46 = vshrl.u32 %v5872_v0, 16  ;;  %v10377_v31 = vld [vmem:[#allocation16_spill] sm:$0xff] }
 0x47a   : > { %v5995_v18 = vrot.slane %v5987_v1, %v8116_v20  ;;  %v5873_v33 = vcombine.low %v5834_v7, %v5866_v2  ;;  %v5874_v50 = vcombine.high %v5834_v7, %v5866_v2  ;;  %v5970_v24 = vrot.slane %v5956_v6, %v8116_v20 }
 0x47b   : > { %v6002_v11 = vrot.slane %v5988_v57, %v8116_v20  ;;  %v7412_v52 = vpack.c.bf16 %v7792_v14, %v7791_v22  ;;  %v10364_v23 = vpack.c.bf16 %v9221_v45, %v9218_v15  ;;  %v10370_v58 = vpack.c.bf16 %v10368_v21, %v10369_v25  ;;  %v10371_v15 = vld [vmem:[#allocation26_spill] sm:$0xff]  ;;  %v10372_v45 = vld [vmem:[#allocation23_spill] sm:$0xff] }
 0x47c   : > { %v6007_v36 = vcombine.low %v5963_v27, %v5995_v18  ;;  %v6008_v3 = vcombine.high %v5963_v27, %v5995_v18  ;;  %v6063_v5 = vshrl.u32 %v5873_v33, 16  ;;  %v6071_v60 = vshrl.u32 %v5874_v50, 16 }
 0x47d   : > { %v6009_v34 = vcombine.low %v5970_v24, %v6002_v11  ;;  %v6010_v63 = vcombine.high %v5970_v24, %v6002_v11  ;;  %v10373_v29 = vpack.c.bf16 %v10371_v15, %v10372_v45  ;;  %v10380_v15 = vld [vmem:[#allocation18_spill] sm:$0xff] }
 0x47e   : > { %v6048_v61 = vshrl.u32 %v6007_v36, 16  ;;  %v6056_v53 = vshrl.u32 %v6008_v3, 16  ;;  %v6045_v37 = vpack.i.b16 %v6007_v36, %v5871_v51  ;;  %v6053_v41 = vpack.i.b16 %v6008_v3, %v5872_v0 }
 0x47f   : > { %7723 = vmatmul.mubr.msk.bf16.gmra.mrb[60].mxu0 %vm2606_vm6, %v9752_v59  ;;  %7725 = vmatmul.mubr.msk.bf16.gmra.mrb[76].mxu1 %vm2606_vm6, %v9752_v59  ;;  %v6064_v17 = vshrl.u32 %v6009_v34, 16  ;;  %v6072_v38 = vshrl.u32 %v6010_v63, 16  ;;  %v6061_v62 = vpack.i.b16 %v6009_v34, %v5873_v33  ;;  %v6069_v16 = vpack.i.b16 %v6010_v63, %v5874_v50 }
 0x480   : > { %v6049_v39 = vpack.i.b16 %v6048_v61, %v6047_v47  ;;  %v6057_v48 = vpack.i.b16 %v6056_v53, %v6055_v46  ;;  %6223 = vmatprep.mubr.bf16.mxu0 %v10362_v30  ;;  %6274 = vmatprep.mubr.bf16.mxu1 %v10362_v30 }
 0x481   : > { %v6065_v42 = vpack.i.b16 %v6064_v17, %v6063_v5  ;;  %v6073_v40 = vpack.i.b16 %v6072_v38, %v6071_v60 }
 0x482   : > { %6293 = vmatprep.subr.bf16.mxu0 %v6049_v39  ;;  %6344 = vmatprep.subr.bf16.mxu1 %v6057_v48  ;;  %v10379_v48 = vld [vmem:[#allocation12_spill] sm:$0xff] }
 0x487   : > { %7726 = vmatmul.mubr.msk.bf16.vlgmr.msra.gmra.mrb[64].mxu0 %vm2606_vm6, %v9726_v49  ;;  %7728 = vmatmul.mubr.msk.bf16.vlgmr.msra.gmra.mrb[80].mxu1 %vm2606_vm6, %v9726_v49 }
 0x488   : > { %6294 = vmatpush1.bf16.msra.mxu0 %v6045_v37  ;;  %6345 = vmatpush1.bf16.msra.mxu1 %v6053_v41 }
 0x489   : > { %6395 = vmatprep.subr.bf16.mxu0 %v6065_v42  ;;  %6446 = vmatprep.subr.bf16.mxu1 %v6073_v40 }
 0x48a   : > { %6233 = vmatprep.mubr.bf16.mxu0 %v10362_v30  ;;  %6284 = vmatprep.mubr.bf16.mxu1 %v10362_v30 }
 0x48f   : > { %7727 = vmatmul.mubr.msk.bf16.gmra.mrb[68].mxu0 %vm2606_vm6, %v9752_v59  ;;  %7729 = vmatmul.mubr.msk.bf16.gmra.mrb[84].mxu1 %vm2606_vm6, %v9752_v59 }
 0x490   : > { %6325 = vmatprep.mubr.bf16.mxu0 %v10362_v30  ;;  %6376 = vmatprep.mubr.bf16.mxu1 %v10362_v30 }
 0x497   : > { %7730 = vmatmul.mubr.msk.bf16.vlgmr.msra.gmra.mrb[72].mxu0 %vm2606_vm6, %v9726_v49  ;;  %7732 = vmatmul.mubr.msk.bf16.vlgmr.msra.gmra.mrb[88].mxu1 %vm2606_vm6, %v9726_v49 }
 0x498   : > { %6396 = vmatpush1.bf16.msra.mxu0 %v6061_v62  ;;  %6447 = vmatpush1.bf16.msra.mxu1 %v6069_v16  ;;  %v10378_v16 = vld [vmem:[#allocation11_spill] sm:$0xff] }
 0x499   : > { %6335 = vmatprep.mubr.bf16.mxu0 %v10362_v30  ;;  %6386 = vmatprep.mubr.bf16.mxu1 %v10362_v30 }
 0x49a   : > { %7435 = vmatprep.subr.bf16.mxu0 %v10362_v30 }
 0x49f   : > { %7731 = vmatmul.mubr.msk.bf16.gmra.mrb[76].mxu0 %vm2606_vm6, %v9752_v59  ;;  %7733 = vmatmul.mubr.msk.bf16.gmra.mrb[92].mxu1 %vm2606_vm6, %v9752_v59 }
 0x4a0   : > { %6427 = vmatprep.mubr.bf16.mxu0 %v10362_v30  ;;  %6478 = vmatprep.mubr.bf16.mxu1 %v10362_v30 }
 0x4a7   : > { %7734 = vmatmul.mubr.msk.bf16.vlgmr.msra.gmra.mrb[80].mxu0 %vm2606_vm6, %v9726_v49  ;;  %7736 = vmatmul.mubr.msk.bf16.vlgmr.msra.gmra.mrb[96].mxu1 %vm2606_vm6, %v9726_v49 }
 0x4a8   : > { %7436 = vmatpush1.bf16.msra.mxu0 %v7412_v52  ;;  %6437 = vmatprep.mubr.bf16.mxu0 %v10362_v30 }
 0x4a9   : > { %7437 = vmatprep.subr.bf16.mxu0 %v10362_v30  ;;  %6488 = vmatprep.mubr.bf16.mxu1 %v10362_v30 }
 0x4ac   : > { %7438 = vmatpush1.bf16.msra.mxu0 %v10364_v23 }
 0x4ad   : > { %7439 = vmatprep.subr.bf16.mxu0 %v10362_v30 }
 0x4af   : > { %7735 = vmatmul.mubr.msk.bf16.gmra.mrb[84].mxu0 %vm2606_vm6, %v9752_v59  ;;  %7737 = vmatmul.mubr.msk.bf16.gmra.mrb[100].mxu1 %vm2606_vm6, %v9752_v59 }
 0x4b0   : > { %7440 = vmatpush1.bf16.msra.mxu0 %v10367_v8  ;;  %7744 = vmatprep.mubr.msk.bf16.mxu0 %vm2606_vm6, %v7788_v4 }
 0x4b1   : > { %7441 = vmatprep.subr.bf16.mxu0 %v10362_v30 }
 0x4b4   : > { %7442 = vmatpush1.bf16.msra.mxu0 %v10370_v58 }
 0x4b5   : > { %7443 = vmatprep.subr.bf16.mxu0 %v10362_v30 }
 0x4b8   : > { %7444 = vmatpush1.bf16.msra.mxu0 %v10373_v29  ;;  %v10381_v29 = vld [vmem:[#allocation20_spill] sm:$0xff] }
 0x4b9   : > { %7445 = vmatprep.subr.bf16.mxu0 %v10362_v30 }
 0x54a   : > { %v6123_v49 = vpop.f32.mrb[56].mxu0  ;;  %v6174_v28 = vpop.f32.mrb[72].mxu1 }
 0x54b   : > { %v6124_v10 = vadd.f32 %v6123_v49, %v10374_v43  ;;  %v6175_v26 = vadd.f32 %v6174_v28, %v10375_v12  ;;  %v6125_v44 = vpop.f32.mrb[57].mxu0  ;;  %v6176_v35 = vpop.f32.mrb[73].mxu1 }
 0x54c   : > { %v6126_v9 = vadd.f32 %v6125_v44, %v10376_v54  ;;  %v6177_v7 = vadd.f32 %v6176_v35, %v10377_v31  ;;  %v6127_v13 = vpop.f32.mrb[58].mxu0  ;;  %v6178_v51 = vpop.f32.mrb[74].mxu1 }
 0x54d   : > { %v6497_v32 = vcombine.low %v6124_v10, %v6175_v26  ;;  %v6498_v0 = vcombine.high %v6124_v10, %v6175_v26  ;;  %v6128_v1 = vadd.f32 %v6127_v13, %v10374_v43  ;;  %v6179_v2 = vadd.f32 %v6178_v51, %v10375_v12  ;;  %v6129_v6 = vpop.f32.mrb[59].mxu0  ;;  %v6180_v57 = vpop.f32.mrb[75].mxu1  ;;  %v10383_v51 = vld [vmem:[#allocation27_spill] sm:$0xff] }
 0x54e   : > { %v6513_v27 = vcombine.low %v6126_v9, %v6177_v7  ;;  %v6514_v18 = vcombine.high %v6126_v9, %v6177_v7  ;;  %v6130_v33 = vadd.f32 %v6129_v6, %v10376_v54  ;;  %v6181_v50 = vadd.f32 %v6180_v57, %v10377_v31  ;;  %v10382_v7 = vld [vmem:[#allocation22_spill] sm:$0xff]  ;;  %v10384_v57 = vld [vmem:[#allocation24_spill] sm:$0xff] }
 0x54f   : > { %v6505_v59 = vrot.slane %v6497_v32, %v8114_v19  ;;  %v6512_v24 = vrot.slane %v6498_v0, %v8114_v19  ;;  %v6769_v11 = vcombine.low %v6128_v1, %v6179_v2  ;;  %v6770_v36 = vcombine.high %v6128_v1, %v6179_v2 }
 0x550   : > { %v6521_v47 = vrot.slane %v6513_v27, %v8114_v19  ;;  %v6528_v3 = vrot.slane %v6514_v18, %v8114_v19  ;;  %v6785_v46 = vcombine.low %v6130_v33, %v6181_v50  ;;  %v6786_v34 = vcombine.high %v6130_v33, %v6181_v50  ;;  %v10385_v18 = vld [vmem:[#allocation28_spill] sm:$0xff] }
 0x551   : > { %v6777_v5 = vrot.slane %v6769_v11, %v8114_v19  ;;  %v9834_v63 = vrot.slane %v6770_v36, %v8114_v19 }
 0x552   : > { %v6561_v60 = vcombine.low %v6505_v59, %v6521_v47  ;;  %v6562_v61 = vcombine.high %v6505_v59, %v6521_v47  ;;  %v6577_v53 = vcombine.low %v6512_v24, %v6528_v3  ;;  %v6578_v37 = vcombine.high %v6512_v24, %v6528_v3  ;;  %v6133_v41 = vpop.f32.mrb[60].mxu0  ;;  %v6184_v17 = vpop.f32.mrb[76].mxu1 }
 0x553   : > { %v6793_v38 = vrot.slane %v6785_v46, %v8114_v19  ;;  %v9838_v62 = vrot.slane %v6786_v34, %v8114_v19  ;;  %v6134_v39 = vadd.f32 %v6133_v41, %v10378_v16  ;;  %v6185_v42 = vadd.f32 %v6184_v17, %v10379_v48  ;;  %v6135_v40 = vpop.f32.mrb[61].mxu0  ;;  %v6186_v22 = vpop.f32.mrb[77].mxu1 }
 0x554   : > { %v6137_v14 = vpop.f32.mrb[62].mxu0  ;;  %v6188_v52 = vpop.f32.mrb[78].mxu1  ;;  %v6136_v45 = vadd.f32 %v6135_v40, %v10380_v15  ;;  %v6187_v4 = vadd.f32 %v6186_v22, %v10381_v29  ;;  %v9855_v35 = vrot.slane %v6561_v60, %v8116_v20  ;;  %v9858_v9 = vrot.slane %v6562_v61, %v8116_v20 }
 0x555   : > { %v6833_v23 = vcombine.low %v6777_v5, %v6793_v38  ;;  %v6834_v56 = vcombine.high %v6777_v5, %v6793_v38  ;;  %v6849_v55 = vcombine.low %v9834_v63, %v9838_v62  ;;  %v6850_v8 = vcombine.high %v9834_v63, %v9838_v62  ;;  %v6138_v21 = vpop.f32.mrb[63].mxu0  ;;  %v6189_v25 = vpop.f32.mrb[79].mxu1  ;;  %v10389_v62 = vld [vmem:[#allocation25_spill] sm:$0xff] }
 0x556   : > { %v7041_v58 = vcombine.low %v6134_v39, %v6185_v42  ;;  %v7049_v28 = vcombine.low %v6136_v45, %v6187_v4  ;;  %v6585_v34 = vrot.slane %v6577_v53, %v8116_v20  ;;  %v6592_v5 = vrot.slane %v6578_v37, %v8116_v20 }
 0x557   : > { %v9879_v53 = vrot.slane %v6833_v23, %v8116_v20  ;;  %v9882_v37 = vrot.slane %v6834_v56, %v8116_v20  ;;  %v9885_v52 = vrot.slane %v6849_v55, %v8116_v20 }
 0x558   : > { %v9849_v49 = vrot.slane %v7041_v58, %v8114_v19  ;;  %v9852_v10 = vrot.slane %v7049_v28, %v8114_v19 }
 0x55a   : > { %v6225_v26 = vpop.f32.mrb[64].mxu0  ;;  %v6276_v44 = vpop.f32.mrb[80].mxu1  ;;  %v7073_v2 = vcombine.low %v9849_v49, %v9852_v10  ;;  %v7074_v6 = vcombine.high %v9849_v49, %v9852_v10 }
 0x55b   : > { %v6226_v13 = vadd.f32 %v6225_v26, %v10382_v7  ;;  %v6277_v32 = vadd.f32 %v6276_v44, %v10383_v51  ;;  %v6227_v0 = vpop.f32.mrb[65].mxu0  ;;  %v6278_v1 = vpop.f32.mrb[81].mxu1 }
 0x55c   : > { %v6228_v27 = vadd.f32 %v6227_v0, %v10384_v57  ;;  %v6279_v33 = vadd.f32 %v6278_v1, %v10385_v18  ;;  %v6229_v50 = vpop.f32.mrb[66].mxu0  ;;  %v6280_v59 = vpop.f32.mrb[82].mxu1  ;;  %v10387_v0 = vld [vmem:[#allocation21_spill] sm:$0xff] }
 0x55d   : > { %v6529_v24 = vcombine.low %v6226_v13, %v6277_v32  ;;  %v6530_v11 = vcombine.high %v6226_v13, %v6277_v32  ;;  %v6230_v36 = vadd.f32 %v6229_v50, %v10382_v7  ;;  %v6281_v47 = vadd.f32 %v6280_v59, %v10383_v51  ;;  %v6231_v3 = vpop.f32.mrb[67].mxu0  ;;  %v6282_v46 = vpop.f32.mrb[83].mxu1  ;;  %v10386_v32 = vld [vmem:[#allocation19_spill] sm:$0xff] }
 0x55e   : > { %v6545_v60 = vcombine.low %v6228_v27, %v6279_v33  ;;  %v6546_v61 = vcombine.high %v6228_v27, %v6279_v33  ;;  %v6232_v22 = vadd.f32 %v6231_v3, %v10384_v57  ;;  %v6283_v14 = vadd.f32 %v6282_v46, %v10385_v18 }
 0x55f   : > { %v6537_v41 = vrot.slane %v6529_v24, %v8114_v19  ;;  %v6544_v17 = vrot.slane %v6530_v11, %v8114_v19  ;;  %v6801_v38 = vcombine.low %v6230_v36, %v6281_v47  ;;  %v6802_v39 = vcombine.high %v6230_v36, %v6281_v47 }
 0x560   : > { %v6553_v42 = vrot.slane %v6545_v60, %v8114_v19  ;;  %v6560_v40 = vrot.slane %v6546_v61, %v8114_v19  ;;  %v6817_v44 = vcombine.low %v6232_v22, %v6283_v14  ;;  %v6818_v13 = vcombine.high %v6232_v22, %v6283_v14 }
 0x561   : > { %v9888_v21 = vrot.slane %v6801_v38, %v8114_v19  ;;  %v6816_v36 = vrot.slane %v6802_v39, %v8114_v19 }
 0x562   : > { %v6593_v25 = vcombine.low %v6537_v41, %v6553_v42  ;;  %v6594_v58 = vcombine.high %v6537_v41, %v6553_v42  ;;  %v6609_v45 = vcombine.low %v6544_v17, %v6560_v40  ;;  %v6610_v4 = vcombine.high %v6544_v17, %v6560_v40  ;;  %v6235_v28 = vpop.f32.mrb[68].mxu0  ;;  %v6286_v26 = vpop.f32.mrb[84].mxu1 }
 0x563   : > { %v9891_v23 = vadd.f32 %v6235_v28, %v10386_v32  ;;  %v9894_v56 = vadd.f32 %v6286_v26, %v10387_v0  ;;  %v6237_v1 = vpop.f32.mrb[69].mxu0  ;;  %v6288_v55 = vpop.f32.mrb[85].mxu1  ;;  %v6825_v47 = vrot.slane %v6817_v44, %v8114_v19  ;;  %v6832_v3 = vrot.slane %v6818_v13, %v8114_v19 }
 0x564   : > { %v6601_v27 = vrot.slane %v6593_v25, %v8116_v20  ;;  %v6608_v33 = vrot.slane %v6594_v58, %v8116_v20  ;;  %v6617_v50 = vrot.slane %v6609_v45, %v8116_v20  ;;  %v6624_v59 = vrot.slane %v6610_v4, %v8116_v20  ;;  %v6239_v24 = vpop.f32.mrb[70].mxu0  ;;  %v6290_v11 = vpop.f32.mrb[86].mxu1 }
 0x565   : > { %v6240_v60 = vpop.f32.mrb[71].mxu0  ;;  %v6291_v61 = vpop.f32.mrb[87].mxu1  ;;  %v6882_v24 = vcombine.high %v6816_v36, %v6832_v3 }
 0x566   : > { %v6625_v41 = vcombine.low %v9855_v35, %v6601_v27  ;;  %v6626_v17 = vcombine.high %v9855_v35, %v6601_v27  ;;  %v6627_v38 = vcombine.low %v9858_v9, %v6608_v33  ;;  %v6628_v42 = vcombine.high %v9858_v9, %v6608_v33 }
 0x567   : > { %v6629_v40 = vcombine.low %v6585_v34, %v6617_v50  ;;  %v6630_v22 = vcombine.high %v6585_v34, %v6617_v50  ;;  %v6631_v39 = vcombine.low %v6592_v5, %v6624_v59  ;;  %v6632_v14 = vcombine.high %v6592_v5, %v6624_v59 }
 0x568   : > { %v9909_v25 = vrot.slane %v6625_v41, 6  ;;  %v9911_v58 = vrot.slane %v6626_v17, 6  ;;  %v9913_v45 = vrot.slane %v6627_v38, 6  ;;  %v9915_v4 = vrot.slane %v6628_v42, 6  ;;  %v10390_v41 = vld [vmem:[#allocation29_spill] sm:$0xff] }
 0x569   : > { %v9921_v35 = vrot.slane %v6850_v8, %v8116_v20  ;;  %v9927_v9 = vrot.slane %v7073_v2, %v8116_v20  ;;  %v9933_v34 = vrot.slane %v7074_v6, %v8116_v20  ;;  %v9935_v5 = vrot.slane %v6629_v40, 7 }
 0x56a   : > { %v9937_v28 = vrot.slane %v6630_v22, 7  ;;  %v9939_v26 = vrot.slane %v6631_v39, 7  ;;  %v9941_v63 = vrot.slane %v6632_v14, 7  ;;  %v6238_v8 = vadd.f32 %v6237_v1, %v10389_v62  ;;  %v6327_v44 = vpop.f32.mrb[72].mxu0  ;;  %v6378_v13 = vpop.f32.mrb[88].mxu1 }
 0x56b   : > { %v7205_v2 = vsel %vm3709_vm7, 0.0, %v9909_v25  ;;  %v7206_v49 = vsel %vm3709_vm7, 0.0, %v9911_v58  ;;  %v7207_v10 = vsel %vm3709_vm7, 0.0, %v9913_v45  ;;  %v7208_v6 = vsel %vm3709_vm7, 0.0, %v9915_v4  ;;  %v6329_v27 = vpop.f32.mrb[73].mxu0  ;;  %v6380_v33 = vpop.f32.mrb[89].mxu1 }
 0x56c   : > { %10388 = vst [vmem:[#allocation7_spill] sm:$0xff] %v9941_v63  ;;  %v6865_v50 = vcombine.low %v9888_v21, %v6825_v47  ;;  %v6866_v1 = vcombine.high %v9888_v21, %v6825_v47  ;;  %v6881_v59 = vcombine.low %v6816_v36, %v6832_v3  ;;  %v6331_v11 = vpop.f32.mrb[74].mxu0  ;;  %v6382_v60 = vpop.f32.mrb[90].mxu1  ;;  %v7245_v61 = vsel %vm1148_vm2, 0.0, %v9935_v5 }
 0x56d   : > { %v6289_v17 = vadd.f32 %v6288_v55, %v10390_v41  ;;  %v6328_v38 = vadd.f32 %v6327_v44, %v10374_v43  ;;  %v6379_v42 = vadd.f32 %v6378_v13, %v10375_v12  ;;  %v6333_v40 = vpop.f32.mrb[75].mxu0  ;;  %v6384_v22 = vpop.f32.mrb[91].mxu1  ;;  %v9965_v36 = vrot.slane %v6882_v24, %v8116_v20 }
 0x56e   : > { %v6873_v39 = vrot.slane %v6865_v50, %v8116_v20  ;;  %v6880_v14 = vrot.slane %v6866_v1, %v8116_v20  ;;  %v9962_v21 = vrot.slane %v6881_v59, %v8116_v20  ;;  %v7246_v47 = vsel %vm1148_vm2, 0.0, %v9937_v28 }
 0x56f   : > { %v7065_v55 = vcombine.low %v6238_v8, %v6289_v17  ;;  %v6633_v3 = vcombine.low %v6328_v38, %v6379_v42  ;;  %v6634_v44 = vcombine.high %v6328_v38, %v6379_v42 }
 0x570   : > { %v6897_v13 = vcombine.low %v9879_v53, %v6873_v39  ;;  %v6898_v46 = vcombine.high %v9879_v53, %v6873_v39  ;;  %v6899_v50 = vcombine.low %v9882_v37, %v6880_v14  ;;  %v6900_v1 = vcombine.high %v9882_v37, %v6880_v14 }
 0x571   : > { %v6901_v59 = vcombine.low %v9885_v52, %v9962_v21  ;;  %v6902_v24 = vcombine.high %v9885_v52, %v9962_v21  ;;  %v7247_v37 = vsel %vm1148_vm2, 0.0, %v9939_v26  ;;  %v7248_v52 = vsel %vm1148_vm2, 0.0, %v9941_v63 }
 0x572   : > { %v7209_v17 = vadd.f32 %v7205_v2, %v6897_v13  ;;  %v7211_v38 = vadd.f32 %v7206_v49, %v6898_v46  ;;  %v7213_v42 = vadd.f32 %v7207_v10, %v6899_v50  ;;  %v7215_v53 = vadd.f32 %v7208_v6, %v6900_v1  ;;  %v9981_v39 = vpop.f32.mrb[76].mxu0  ;;  %v9983_v41 = vpop.f32.mrb[92].mxu1 }
 0x573   : > { %v10391_v14 = vcombine.low %v9891_v23, %v9894_v56  ;;  %v6330_v2 = vadd.f32 %v6329_v27, %v10376_v54  ;;  %v6339_v46 = vpop.f32.mrb[77].mxu0  ;;  %v6390_v49 = vpop.f32.mrb[93].mxu1  ;;  %v7072_v30 = vrot.slane %v7065_v55, %v8114_v19  ;;  %v6641_v63 = vrot.slane %v6633_v3, %v8114_v19 }
 0x574   : > { %v9994_v10 = vadd.f32 %v7245_v61, %v7209_v17  ;;  %v9996_v6 = vadd.f32 %v7246_v47, %v7211_v38  ;;  %v9998_v13 = vadd.f32 %v7247_v37, %v7213_v42  ;;  %v10000_v50 = vadd.f32 %v7248_v52, %v7215_v53  ;;  %v6341_v1 = vpop.f32.mrb[78].mxu0  ;;  %v6392_v8 = vpop.f32.mrb[94].mxu1 }
 0x575   : > { %v7064_v21 = vrot.slane %v10391_v14, %v8114_v19  ;;  %v6648_v23 = vrot.slane %v6634_v44, %v8114_v19  ;;  %v6381_v56 = vadd.f32 %v6380_v33, %v10377_v31  ;;  %v6342_v27 = vpop.f32.mrb[79].mxu0  ;;  %v6393_v14 = vpop.f32.mrb[95].mxu1  ;;  %v6332_v61 = vadd.f32 %v6331_v11, %v10374_v43 }
 0x576   : > { %v6383_v47 = vadd.f32 %v6382_v60, %v10375_v12  ;;  %v6334_v17 = vadd.f32 %v6333_v40, %v10376_v54  ;;  %v6385_v38 = vadd.f32 %v6384_v22, %v10377_v31 }
 0x577   : > { %v7089_v42 = vcombine.low %v7064_v21, %v7072_v30  ;;  %v7090_v8 = vcombine.high %v7064_v21, %v7072_v30  ;;  %v6649_v53 = vcombine.low %v6330_v2, %v6381_v56  ;;  %v6650_v55 = vcombine.high %v6330_v2, %v6381_v56 }
 0x578   : > { %v6905_v37 = vcombine.low %v6332_v61, %v6383_v47  ;;  %v6906_v3 = vcombine.high %v6332_v61, %v6383_v47  ;;  %v6921_v52 = vcombine.low %v6334_v17, %v6385_v38  ;;  %v6922_v44 = vcombine.high %v6334_v17, %v6385_v38 }
 0x579   : > { %v10011_v33 = vrot.slane %v7089_v42, %v8116_v20  ;;  %v10014_v1 = vrot.slane %v7090_v8, %v8116_v20  ;;  %v6657_v43 = vrot.slane %v6649_v53, %v8114_v19  ;;  %v6664_v12 = vrot.slane %v6650_v55, %v8114_v19 }
 0x57a   : > { %v6913_v54 = vrot.slane %v6905_v37, %v8114_v19  ;;  %v10020_v30 = vrot.slane %v6906_v3, %v8114_v19  ;;  %v6929_v31 = vrot.slane %v6921_v52, %v8114_v19  ;;  %v10024_v11 = vrot.slane %v6922_v44, %v8114_v19  ;;  %v6429_v60 = vpop.f32.mrb[80].mxu0  ;;  %v6480_v40 = vpop.f32.mrb[96].mxu1 }
 0x57b   : > { %v7105_v22 = vcombine.low %v9927_v9, %v10011_v33  ;;  %v6431_v27 = vpop.f32.mrb[81].mxu0  ;;  %v6482_v14 = vpop.f32.mrb[97].mxu1  ;;  %v6697_v61 = vcombine.low %v6641_v63, %v6657_v43  ;;  %v6698_v47 = vcombine.high %v6641_v63, %v6657_v43  ;;  %v6713_v17 = vcombine.low %v6648_v23, %v6664_v12 }
 0x57c   : > { %v6714_v38 = vcombine.high %v6648_v23, %v6664_v12  ;;  %v6433_v42 = vpop.f32.mrb[82].mxu0  ;;  %v6484_v8 = vpop.f32.mrb[98].mxu1  ;;  %v10034_v53 = vrot.slane %v6901_v59, 1  ;;  %v10036_v55 = vrot.slane %v6902_v24, 1  ;;  %v10392_v52 = vcombine.low %v9921_v35, %v9965_v36 }
 0x57d   : > { %v6435_v37 = vpop.f32.mrb[83].mxu0  ;;  %v6486_v3 = vpop.f32.mrb[99].mxu1  ;;  %v10393_v56 = vcombine.high %v9921_v35, %v9965_v36  ;;  %v10049_v63 = vrot.slane %v6697_v61, %v8116_v20  ;;  %v10052_v59 = vrot.slane %v6698_v47, %v8116_v20  ;;  %v6969_v24 = vcombine.low %v6913_v54, %v6929_v31 }
 0x57e   : > { %v10041_v44 = vrot.slane %v10392_v52, 1  ;;  %v6970_v23 = vcombine.high %v6913_v54, %v6929_v31  ;;  %v6985_v43 = vcombine.low %v10020_v30, %v10024_v11  ;;  %v6986_v12 = vcombine.high %v10020_v30, %v10024_v11 }
 0x57f   : > { %v10046_v2 = vrot.slane %v10393_v56, 1  ;;  %v6338_v52 = vadd.f32 %v9981_v39, %v10378_v16  ;;  %v6389_v35 = vadd.f32 %v9983_v41, %v10379_v48  ;;  %v6340_v36 = vadd.f32 %v6339_v46, %v10380_v15 }
 0x580   : > { %v6391_v56 = vadd.f32 %v6390_v49, %v10381_v29  ;;  %v10065_v61 = vrot.slane %v6713_v17, %v8116_v20  ;;  %v10068_v54 = vrot.slane %v6714_v38, %v8116_v20  ;;  %v10071_v31 = vrot.slane %v6969_v24, %v8116_v20 }
 0x581   : > { %v10074_v30 = vrot.slane %v6970_v23, %v8116_v20  ;;  %v7109_v16 = vcombine.low %v6338_v52, %v6389_v35  ;;  %v6430_v48 = vadd.f32 %v6429_v60, %v10382_v7  ;;  %v6481_v15 = vadd.f32 %v6480_v40, %v10383_v51 }
 0x582   : > { %v7117_v39 = vcombine.low %v6340_v36, %v6391_v56  ;;  %v6439_v41 = vpop.f32.mrb[84].mxu0  ;;  %v6490_v29 = vpop.f32.mrb[100].mxu1  ;;  %v6432_v46 = vadd.f32 %v6431_v27, %v10384_v57  ;;  %v6483_v49 = vadd.f32 %v6482_v14, %v10385_v18  ;;  %v6434_v11 = vadd.f32 %v6433_v42, %v10382_v7 }
 0x583   : > { %v6485_v47 = vadd.f32 %v6484_v8, %v10383_v51  ;;  %v6441_v17 = vpop.f32.mrb[85].mxu0  ;;  %v10082_v38 = vpop.f32.mrb[101].mxu1  ;;  %v10085_v24 = vrot.slane %v7109_v16, %v8114_v19  ;;  %v6665_v40 = vcombine.low %v6430_v48, %v6481_v15  ;;  %v6666_v23 = vcombine.high %v6430_v48, %v6481_v15 }
 0x584   : > { %v10088_v60 = vrot.slane %v7117_v39, %v8114_v19  ;;  %v6443_v52 = vpop.f32.mrb[86].mxu0  ;;  %v6494_v35 = vpop.f32.mrb[102].mxu1  ;;  %v6681_v27 = vcombine.low %v6432_v46, %v6483_v49  ;;  %v6682_v36 = vcombine.high %v6432_v46, %v6483_v49  ;;  %v10097_v48 = vrot.slane %v6985_v43, %v8116_v20 }
 0x585   : > { %v6937_v14 = vcombine.low %v6434_v11, %v6485_v47  ;;  %v6938_v56 = vcombine.high %v6434_v11, %v6485_v47  ;;  %v6444_v7 = vpop.f32.mrb[87].mxu0  ;;  %v6495_v42 = vpop.f32.mrb[103].mxu1  ;;  %v6673_v16 = vrot.slane %v6665_v40, %v8114_v19  ;;  %v6680_v39 = vrot.slane %v6666_v23, %v8114_v19 }
 0x586   : > { %v7141_v51 = vcombine.low %v10085_v24, %v10088_v60  ;;  %v7142_v8 = vcombine.high %v10085_v24, %v10088_v60  ;;  %v10100_v15 = vrot.slane %v6986_v12, %v8116_v20  ;;  %v6689_v46 = vrot.slane %v6681_v27, %v8114_v19 }
 0x587   : > { %v6696_v49 = vrot.slane %v6682_v36, %v8114_v19  ;;  %v6945_v11 = vrot.slane %v6937_v14, %v8114_v19  ;;  %v6952_v47 = vrot.slane %v6938_v56, %v8114_v19  ;;  %v6436_v52 = vadd.f32 %v6435_v37, %v10384_v57 }
 0x588   : > { %v6487_v40 = vadd.f32 %v6486_v3, %v10385_v18  ;;  %v6729_v35 = vcombine.low %v6673_v16, %v6689_v46  ;;  %v6730_v23 = vcombine.high %v6673_v16, %v6689_v46  ;;  %v10109_v12 = vadd.f32 %v6439_v41, %v10386_v32 }
 0x589   : > { %v6745_v7 = vcombine.low %v6680_v39, %v6696_v49  ;;  %v6746_v43 = vcombine.high %v6680_v39, %v6696_v49  ;;  %v10112_v27 = vadd.f32 %v6490_v29, %v10387_v0  ;;  %v10123_v32 = vadd.f32 %v6441_v17, %v10389_v62 }
 0x58a   : > { %v6953_v42 = vcombine.low %v6436_v52, %v6487_v40  ;;  %v6954_v21 = vcombine.high %v6436_v52, %v6487_v40  ;;  %v6737_v36 = vrot.slane %v6729_v35, %v8116_v20  ;;  %v6744_v14 = vrot.slane %v6730_v23, %v8116_v20 }
 0x58b   : > { %v6753_v57 = vrot.slane %v6745_v7, %v8116_v20  ;;  %v6760_v18 = vrot.slane %v6746_v43, %v8116_v20  ;;  %v7125_v56 = vcombine.low %v10109_v12, %v10112_v27 }
 0x58c   : > { %v6961_v37 = vrot.slane %v6953_v42, %v8114_v19  ;;  %v6968_v3 = vrot.slane %v6954_v21, %v8114_v19  ;;  %v6761_v0 = vcombine.low %v10049_v63, %v6737_v36  ;;  %v6762_v41 = vcombine.high %v10049_v63, %v6737_v36 }
 0x58d   : > { %v6763_v29 = vcombine.low %v10052_v59, %v6744_v14  ;;  %v6764_v16 = vcombine.high %v10052_v59, %v6744_v14  ;;  %v6765_v39 = vcombine.low %v10065_v61, %v6753_v57  ;;  %v6766_v46 = vcombine.high %v10065_v61, %v6753_v57 }
 0x58e   : > { %v6767_v21 = vcombine.low %v10068_v54, %v6760_v18  ;;  %v6768_v49 = vcombine.high %v10068_v54, %v6760_v18  ;;  %v7186_v52 = vrot.slane %v6761_v0, 6  ;;  %v7189_v40 = vrot.slane %v6762_v41, 6  ;;  %v10394_v18 = vld [vmem:[#allocation7_spill] sm:$0xff] }
 0x58f   : > { %v7192_v62 = vrot.slane %v6763_v29, 6  ;;  %v7195_v17 = vrot.slane %v6764_v16, 6  ;;  %v7226_v35 = vrot.slane %v6765_v39, 7  ;;  %v7229_v23 = vrot.slane %v6766_v46, 7 }
 0x590   : > { %v7232_v7 = vrot.slane %v6767_v21, 7  ;;  %v7235_v63 = vrot.slane %v6768_v49, 7  ;;  %v7001_v43 = vcombine.low %v6945_v11, %v6961_v37  ;;  %v7002_v42 = vcombine.high %v6945_v11, %v6961_v37 }
 0x591   : > { %v7017_v12 = vcombine.low %v6952_v47, %v6968_v3  ;;  %v7018_v59 = vcombine.high %v6952_v47, %v6968_v3  ;;  %v7187_v27 = vsel %vm3709_vm7, %v9909_v25, %v7186_v52  ;;  %v7190_v61 = vsel %vm3709_vm7, %v9911_v58, %v7189_v40 }
 0x592   : > { %v7193_v54 = vsel %vm3709_vm7, %v9913_v45, %v7192_v62  ;;  %v7196_v36 = vsel %vm3709_vm7, %v9915_v4, %v7195_v17  ;;  %v7009_v14 = vrot.slane %v7001_v43, %v8116_v20  ;;  %v7016_v57 = vrot.slane %v7002_v42, %v8116_v20  ;;  %v10395_v43 = vld [vmem:[#allocation29_spill] sm:$0xff] }
 0x593   : > { %v7025_v11 = vrot.slane %v7017_v12, %v8116_v20  ;;  %v7032_v47 = vrot.slane %v7018_v59, %v8116_v20  ;;  %v7227_v25 = vsel %vm1148_vm2, %v9935_v5, %v7226_v35  ;;  %v7230_v58 = vsel %vm1148_vm2, %v9937_v28, %v7229_v23 }
 0x594   : > { %v7233_v45 = vsel %vm1148_vm2, %v9939_v26, %v7232_v7  ;;  %v7236_v4 = vsel %vm1148_vm2, %v10394_v18, %v7235_v63  ;;  %v7033_v37 = vcombine.low %v10071_v31, %v7009_v14  ;;  %v7034_v3 = vcombine.high %v10071_v31, %v7009_v14 }
 0x595   : > { %v7035_v0 = vcombine.low %v10074_v30, %v7016_v57  ;;  %v7036_v41 = vcombine.high %v10074_v30, %v7016_v57  ;;  %v7037_v29 = vcombine.low %v10097_v48, %v7025_v11  ;;  %v7038_v5 = vcombine.high %v10097_v48, %v7025_v11 }
 0x596   : > { %v7039_v28 = vcombine.low %v10100_v15, %v7032_v47  ;;  %v7040_v16 = vcombine.high %v10100_v15, %v7032_v47  ;;  %v7210_v26 = vadd.f32 %v7187_v27, %v7033_v37  ;;  %v7212_v39 = vadd.f32 %v7190_v61, %v7034_v3  ;;  %v7367_v3 = vpop.permute.xlu1 %7366 }
 0x597   : > { %v7214_v46 = vadd.f32 %v7193_v54, %v7035_v0  ;;  %v7216_v21 = vadd.f32 %v7196_v36, %v7036_v41  ;;  %v7266_v49 = vrot.slane %v7037_v29, 1  ;;  %v7269_v52 = vrot.slane %v7038_v5, 1 }
 0x598   : > { %v7272_v40 = vrot.slane %v7039_v28, 1  ;;  %v7275_v31 = vrot.slane %v7040_v16, 1  ;;  %v7250_v62 = vadd.f32 %v7227_v25, %v7210_v26  ;;  %v7252_v17 = vadd.f32 %v7230_v58, %v7212_v39 }
 0x599   : > { %v7254_v35 = vadd.f32 %v7233_v45, %v7214_v46  ;;  %v7256_v30 = vadd.f32 %v7236_v4, %v7216_v21  ;;  %v7285_v23 = vsel %vm3790_vm8, %v7266_v49, 0.0  ;;  %v7286_v48 = vsel %vm3790_vm8, %v7269_v52, 0.0 }
 0x59a   : > { %v7287_v7 = vsel %vm3790_vm8, %v7272_v40, 0.0  ;;  %v7288_v15 = vsel %vm3790_vm8, %v7275_v31, 0.0  ;;  %v7132_v63 = vrot.slane %v7125_v56, %v8114_v19  ;;  %v6493_v42 = vadd.f32 %v10082_v38, %v10395_v43 }
 0x59b   : > { %v7267_v12 = vsel %vm3790_vm8, %v10034_v53, %v7266_v49  ;;  %v7290_v59 = vadd.f32 %v7285_v23, %v7250_v62  ;;  %v7270_v61 = vsel %vm3790_vm8, %v10036_v55, %v7269_v52  ;;  %v7292_v54 = vadd.f32 %v7286_v48, %v7252_v17  ;;  %v7375_v48 = vpop.permute.xlu1 %7374 }
 0x59c   : > { %v7289_v27 = vadd.f32 %v7267_v12, %v9994_v10  ;;  %v7273_v36 = vsel %vm3790_vm8, %v10041_v44, %v7272_v40  ;;  %v7133_v14 = vcombine.low %v10123_v32, %v6493_v42  ;;  %v7291_v56 = vadd.f32 %v7270_v61, %v9996_v6 }
 0x59d   : > { %v7293_v57 = vadd.f32 %v7273_v36, %v9998_v13  ;;  %v7294_v38 = vadd.f32 %v7287_v7, %v7254_v35  ;;  %v7276_v53 = vsel %vm3790_vm8, %v10046_v2, %v7275_v31  ;;  %v7296_v11 = vadd.f32 %v7288_v15, %v7256_v30 }
 0x59e   : > { %v7140_v10 = vrot.slane %v7133_v14, %v8114_v19  ;;  %v7295_v47 = vadd.f32 %v7276_v53, %v10000_v50  ;;  %v7149_v44 = vrot.slane %v7141_v51, %v8116_v20  ;;  %v7156_v6 = vrot.slane %v7142_v8, %v8116_v20  ;;  %v7363_v8 = vpop.permute.xlu0 %7362 }
 0x59f   : > { %v7305_v45 = vrot.slane %v7105_v22, 2  ;;  %v10396_v51 = vcombine.high %v9927_v9, %v10011_v33  ;;  %v10398_v41 = vcombine.high %v9933_v34, %v10014_v1 }
 0x5a0   : > { %v7157_v55 = vcombine.low %v7132_v63, %v7140_v10  ;;  %v7158_v25 = vcombine.high %v7132_v63, %v7140_v10 }
 0x5a1   : > { %v7308_v18 = vrot.slane %v10396_v51, 2  ;;  %v7314_v29 = vrot.slane %v10398_v41, 2 }
 0x5a2   : > { %v7165_v13 = vrot.slane %v7157_v55, %v8116_v20  ;;  %v7172_v2 = vrot.slane %v7158_v25, %v8116_v20  ;;  %v10397_v20 = vcombine.low %v9933_v34, %v10014_v1  ;;  %v7371_v23 = vpop.permute.xlu0 %7370 }
 0x5a4   : > { %v7173_v32 = vcombine.low %v7149_v44, %v7165_v13  ;;  %v7174_v19 = vcombine.high %v7149_v44, %v7165_v13  ;;  %v7175_v58 = vcombine.low %v7156_v6, %v7172_v2  ;;  %v7176_v50 = vcombine.high %v7156_v6, %v7172_v2 }
 0x5a5   : > { %v7311_v0 = vrot.slane %v10397_v20, 2 }
 0x5a6   : > { %v7306_v4 = vrot.slane %v7173_v32, 2  ;;  %v7309_v37 = vrot.slane %v7174_v19, 2  ;;  %v7312_v24 = vrot.slane %v7175_v58, 2  ;;  %v7315_v60 = vrot.slane %v7176_v50, 2  ;;  %v7487_v36 = vpop.permute.xlu0 %7486 }
 0x5a8   : > { %v7307_v22 = vsel %vm3831_vm11, %v7305_v45, %v7306_v4  ;;  %v7325_v5 = vsel %vm3831_vm11, %v7306_v4, 0.0  ;;  %v7310_v9 = vsel %vm3831_vm11, %v7308_v18, %v7309_v37  ;;  %v7326_v33 = vsel %vm3831_vm11, %v7309_v37, 0.0 }
 0x5a9   : > { %v7329_v28 = vadd.f32 %v7307_v22, %v7289_v27  ;;  %v7330_v16 = vadd.f32 %v7325_v5, %v7290_v59  ;;  %v7331_v26 = vadd.f32 %v7310_v9, %v7291_v56  ;;  %v7332_v39 = vadd.f32 %v7326_v33, %v7292_v54  ;;  %v7786_v54 = vld [vmem:[%s10244_s13] ss:$8 sps:$4 sm:$0x1f]   ;;  %v7492_v56 = vpop.permute.xlu1 %7491 }
 0x5aa   : > { %v7313_v46 = vsel %vm3831_vm11, %v7311_v0, %v7312_v24  ;;  %v7327_v21 = vsel %vm3831_vm11, %v7312_v24, 0.0  ;;  %v7316_v49 = vsel %vm3831_vm11, %v7314_v29, %v7315_v60  ;;  %v7328_v34 = vsel %vm3831_vm11, %v7315_v60, 0.0  ;;  %v7501_v25 = vpop.permute.xlu0 %7500 }
 0x5ab   : > { %v7377_v1 = vadd.f32 %v7363_v8, %v7329_v28  ;;  %v7378_v52 = vadd.f32 %v7363_v8, %v7330_v16  ;;  %v7379_v40 = vadd.f32 %v7367_v3, %v7331_v26  ;;  %v7380_v31 = vadd.f32 %v7367_v3, %v7332_v39 }
 0x5ac   : > { %v7333_v62 = vadd.f32 %v7313_v46, %v7293_v57  ;;  %v7334_v17 = vadd.f32 %v7327_v21, %v7294_v38  ;;  %v7335_v35 = vadd.f32 %v7316_v49, %v7295_v47  ;;  %v7336_v30 = vadd.f32 %v7328_v34, %v7296_v11 }
 0x5ad   : > { %v7417_v7 = vpack.c.bf16 %v7378_v52, %v7377_v1  ;;  %v7418_v15 = vpack.c.bf16 %v7380_v31, %v7379_v40  ;;  %v10399_v59 = vmov 0   ;;  %v7506_v2 = vpop.permute.xlu1 %7505 }
 0x5ae   : > { %v7381_v63 = vadd.f32 %v7371_v23, %v7333_v62  ;;  %v7382_v43 = vadd.f32 %v7371_v23, %v7334_v17  ;;  %v7383_v42 = vadd.f32 %v7375_v48, %v7335_v35  ;;  %v7384_v12 = vadd.f32 %v7375_v48, %v7336_v30 }
 0x5af   : > { %7446 = vmatpush1.bf16.msra.mxu0 %v7417_v7 }
 0x5b0   : > { %7447 = vmatprep.subr.bf16.mxu0 %v10399_v59  ;;  %v7419_v27 = vpack.c.bf16 %v7382_v43, %v7381_v63  ;;  %v7420_v61 = vpack.c.bf16 %v7384_v12, %v7383_v42 }
 0x5b3   : > { %7448 = vmatpush1.bf16.msra.mxu0 %v7418_v15 }
 0x5b4   : > { %7449 = vmatprep.subr.bf16.mxu0 %v10399_v59 }
 0x5b7   : > { %7450 = vmatpush1.bf16.msra.mxu0 %v7419_v27 }
 0x5b8   : > { %7451 = vmatprep.subr.bf16.mxu0 %v10399_v59 }
 0x5bb   : > { %7452 = vmatpush1.bf16.msra.mxu0 %v7420_v61 }
 0x5be   : > { %7468 = vmatmul.mubr.bf16.vlgmr.msra.gmra.mrb[88].mxu0 %v7786_v54 }
 0x691   : > { %v7469_v14 = vpop.f32.mrb[88].mxu0 }
 0x692   : > { %vm7476_vm2 = vcmp.ge.f32.partialorder %v7469_v14, 0.0  ;;  %v7478_v57 = vmul.f32 0.01, %v7469_v14  ;;  %v7471_v38 = vpop.f32.mrb[89].mxu0 }
 0x693   : > { %v7472_v53 = vpop.f32.mrb[90].mxu0 }
 0x694   : > { %v7480_v11 = vsel %vm7476_vm2, %v7469_v14, %v7478_v57  ;;  %vm7477_vm6 = vcmp.ge.f32.partialorder %v7472_v53, 0.0  ;;  %v7479_v10 = vmul.f32 0.01, %v7472_v53  ;;  %v7474_v47 = vpop.f32.mrb[91].mxu0 }
 0x695   : > { %v7494_v55 = vmul.f32 %v7487_v36, %v7480_v11 }
 0x696   : > { %v7481_v44 = vsel %vm7477_vm6, %v7472_v53, %v7479_v10 }
 0x697   : > { %v7508_v6 = vadd.f32 %v7501_v25, %v7494_v55  ;;  %v7495_v13 = vmul.f32 %v7492_v56, %v7481_v44 }
 0x699   : > { %7510 = vst [vmem:[%s556_s29] sm:$0xff] %v7508_v6  ;;  %v7509_v32 = vadd.f32 %v7506_v2, %v7495_v13 }
 0x69b   : > { %7511 = vst [vmem:[%s556_s29 + $0x8] sm:$0x1] %v7509_v32 }
 0x69c PF: > { %s30_s27 = sadd.s32 1, %s7815_s27   ;;  %s10400_s25 = smov %s7811_s26 }
 0x69d   : > { %p27_p5 = scmp.ge.s32.totalorder %s30_s27, 4   ;;  %s10401_s26 = smov %s10403_s1 }
 0x69f   :  { %29 = sbr.rel (!%p27_p5) target bundleno = 3 (0x3), region = 116 }

</bundles_post_ra>
